<compile_context>
chip_gen: v7x
topology: tpu7x:2x2x1
jax: 0.10.0
libtpu: 0.0.40
codegen_flags: <defaults>
</compile_context>

<pallas_src>
import functools

import jax
import jax.numpy as jnp
from jax.experimental import pallas as pl
from jax.experimental.pallas import tpu as pltpu

KSIZE = 7              # Conv1d kernel_size
PAD = KSIZE // 2       # padding = kernel_size // 2
EDGE = 128             # lane offset of the activation inside xpad (keeps stores aligned)
BN_EPS = 1e-5          # PyTorch BatchNorm1d default eps
CHANNELS = (16, 32, 64)
NV = 3 * 6 + 1         # per block: conv1_b, g1, b1, conv2_b, g2, b2 ; + fc bias
FC_B_COL = NV - 1


def _conv_layout(input_channels):
    """Static (cin, cout) per conv and row offsets of each conv inside the bf16 slab."""
    specs = [(input_channels, CHANNELS[0]), (CHANNELS[0], CHANNELS[0]),
             (CHANNELS[0], CHANNELS[1]), (CHANNELS[1], CHANNELS[1]),
             (CHANNELS[1], CHANNELS[2]), (CHANNELS[2], CHANNELS[2])]
    bases, r = [], 0
    for _, co in specs:
        bases.append(r)
        r += KSIZE * co
    return specs, tuple(bases), r          # r == fc weight row offset


def _resnet1d_kernel(x_ref, mask_ref, w_ref, v_ref, out_ref, xpad_ref, *,
                     batch, seq_len, lp, n_lanes, cin0, num_classes, wbases, fc_base):
    inv_n = 1.0 / float(batch * seq_len)   # BN stats over valid (B, L) positions only
    mask = mask_ref[...]                    # (1, N) f32: 1 at valid columns, 0 at borders/pad

    # Zero the edge lanes of the bf16 padded scratch once (aligned 128-wide stores).
    rows = xpad_ref.shape[0]
    xpad_ref[:, 0:EDGE] = jnp.zeros((rows, EDGE), jnp.bfloat16)
    xpad_ref[:, EDGE + n_lanes:EDGE + n_lanes + EDGE] = jnp.zeros((rows, EDGE), jnp.bfloat16)

    def conv(y, cin, cout, wbase, bias_col):
        """Conv1d(k=7, pad=3) as 7 accumulated shifted matmuls from bf16 xpad."""
        # Masked bf16 write at a 128-aligned lane offset; borders stay zero so each
        # tap read sees correct per-sample zero padding.
        xpad_ref[0:cin, EDGE:EDGE + n_lanes] = (y * mask).astype(jnp.bfloat16)
        acc = None
        for k in range(KSIZE):
            off = EDGE - PAD + k
            tap = xpad_ref[0:cin, off:off + n_lanes]                       # (cin, N) bf16
            wk = w_ref[wbase + k * cout: wbase + (k + 1) * cout, 0:cin]    # (cout, cin) bf16
            if cin < 8:
                # cin == 1 (first conv): VPU broadcast multiply beats a rank-1 MXU dot.
                term = wk.astype(jnp.float32) * tap.astype(jnp.float32)
            else:
                term = jnp.dot(wk, tap, preferred_element_type=jnp.float32)
            acc = term if acc is None else acc + term
        bias = v_ref[0:cout, bias_col:bias_col + 1]                        # (cout, 1) f32
        # Mask the output so border columns contribute nothing to BN statistics.
        return (acc + bias) * mask

    def batchnorm(y, cout, g_col, b_col):
        """Training-mode BatchNorm1d (biased variance over B*L) as one scale/shift."""
        gamma = v_ref[0:cout, g_col:g_col + 1]
        beta = v_ref[0:cout, b_col:b_col + 1]
        s1 = jnp.sum(y, axis=1, keepdims=True)
        s2 = jnp.sum(y * y, axis=1, keepdims=True)
        mean = s1 * inv_n
        var = jnp.maximum(s2 * inv_n - mean * mean, 0.0)   # clamp: one-pass var can go < 0
        scale = gamma * jax.lax.rsqrt(var + BN_EPS)        # rsqrt -> EUP slot
        shift = beta - mean * scale
        return y * scale + shift

    def block(x, cin, cout, wb1, wb2, vbase):
        out = conv(x, cin, cout, wb1, vbase + 0)
        out = batchnorm(out, cout, vbase + 1, vbase + 2)
        out = jnp.maximum(out, 0.0)
        out = conv(out, cout, cout, wb2, vbase + 3)
        out = batchnorm(out, cout, vbase + 4, vbase + 5)
        if cin == cout or cin == 1:
            # layer1: the 1-channel identity broadcasts across the 16 output channels
            # (matches PyTorch's in-place broadcast add).
            out = out + x
        else:
            # TODO(synk): in the reference module `out += identity` with mismatched
            # channel counts (16 vs 32, 32 vs 64) raises a broadcast error (no
            # downsample is ever passed), so the residual add is omitted here.
            pass
        return jnp.maximum(out, 0.0)

    x = x_ref[...]                                                       # (cin0, N) f32
    x = block(x, cin0, CHANNELS[0], wbases[0], wbases[1], 0)             # -> (16, N)
    x = block(x, CHANNELS[0], CHANNELS[1], wbases[2], wbases[3], 6)      # -> (32, N)
    x = block(x, CHANNELS[1], CHANNELS[2], wbases[4], wbases[5], 12)     # -> (64, N)

    # Global average pool: per-sample segmented lane reduction (no pooling matrix).
    cols = []
    for b in range(batch):
        s = b * lp + PAD
        cols.append(jnp.sum(x[:, s:s + seq_len], axis=1, keepdims=True))
    pooled = jnp.concatenate(cols, axis=1) * (1.0 / float(seq_len))      # (64, B) f32

    fc_w = w_ref[fc_base:fc_base + num_classes, 0:CHANNELS[2]]           # (nc, 64) bf16
    fc_b = v_ref[0:num_classes, FC_B_COL:FC_B_COL + 1]                   # (nc, 1) f32
    out_ref[...] = jnp.dot(fc_w, pooled.astype(jnp.bfloat16),
                           preferred_element_type=jnp.float32) + fc_b    # (nc, B)


def init_params(key, input_channels=1, num_classes=5):
    """Deterministic init mirroring the PyTorch module, packed into two slabs:
    a bf16 weight slab (conv taps + fc weight) and an f32 per-channel-vector slab."""
    specs, bases, fc_base = _conv_layout(input_channels)
    keys = jax.random.split(key, 2 * len(specs) + 2)

    r_w = ((fc_base + num_classes + 15) // 16) * 16
    wslab = jnp.zeros((r_w, CHANNELS[2]), jnp.float32)
    vslab = jnp.zeros((CHANNELS[2], NV), jnp.float32)

    idx = 0
    for j, ((ci, co), base) in enumerate(zip(specs, bases)):
        bound = (ci * KSIZE) ** -0.5
        cw = jax.random.uniform(keys[idx], (co, ci, KSIZE), jnp.float32, -bound, bound)
        cb = jax.random.uniform(keys[idx + 1], (co,), jnp.float32, -bound, bound)
        idx += 2
        for k in range(KSIZE):
            wslab = wslab.at[base + k * co: base + (k + 1) * co, 0:ci].set(cw[:, :, k])
        col = (j // 2) * 6 + (j % 2) * 3
        vslab = vslab.at[0:co, col].set(cb)                       # conv bias
        vslab = vslab.at[0:co, col + 1].set(jnp.ones((co,), jnp.float32))  # gamma
        # beta stays zero (PyTorch default init)

    bound = CHANNELS[2] ** -0.5
    fcw = jax.random.uniform(keys[idx], (num_classes, CHANNELS[2]), jnp.float32, -bound, bound)
    fcb = jax.random.uniform(keys[idx + 1], (num_classes,), jnp.float32, -bound, bound)
    wslab = wslab.at[fc_base:fc_base + num_classes, 0:CHANNELS[2]].set(fcw)
    vslab = vslab.at[0:num_classes, FC_B_COL].set(fcb)

    return {"wslab": wslab.astype(jnp.bfloat16), "vslab": vslab,
            "num_classes": num_classes, "input_channels": input_channels}


def _pick_vmem_limit(cin0, n_lanes, wslab, vslab):
    c = CHANNELS[2]
    est = (2 * c * n_lanes * 4                # f32 activation-sized live temps
           + 3 * c * n_lanes * 2              # bf16 taps / operands in flight
           + c * (n_lanes + 2 * EDGE) * 2     # xpad scratch
           + 2 * (cin0 + 1) * n_lanes * 4     # x + mask inputs (double buffered)
           + 2 * (wslab.size * 2 + vslab.size * 4)
           + (8 << 20))                       # headroom
    try:
        phys = int(pltpu.get_tpu_info().vmem_capacity_bytes)
    except Exception:
        phys = 64 << 20                       # most conservative (v7x per-TC)
    return int(min(max(est, 32 << 20), int(phys * 0.85)))


def resnet1d_forward(x_blc, params):
    """x_blc: (B, L, C_in), same as the PyTorch module input (it transposes internally)."""
    B, L, cin = x_blc.shape
    nc = params["num_classes"]
    wslab, vslab = params["wslab"], params["vslab"]
    _, wbases, fc_base = _conv_layout(cin)

    lp = L + 2 * PAD                      # per-sample padded width (own zero border)
    n_valid = B * lp
    n_lanes = max(128, ((n_valid + 127) // 128) * 128)   # lane-dense total width

    # Single host-side transpose, then per-sample zero padding + trailing lane pad.
    x = jnp.transpose(x_blc, (2, 0, 1)).astype(jnp.float32)          # (Cin, B, L)
    x = jnp.pad(x, ((0, 0), (0, 0), (PAD, PAD))).reshape(cin, n_valid)
    if n_lanes > n_valid:
        x = jnp.pad(x, ((0, 0), (0, n_lanes - n_valid)))

    pos = jnp.arange(n_lanes, dtype=jnp.int32)
    within = pos % lp
    valid = (pos < n_valid) & (within >= PAD) & (within < PAD + L)
    mask = valid.astype(jnp.float32)[None, :]                        # (1, N)

    inputs = [x, mask, wslab, vslab]

    def full_spec(a):
        nd = a.ndim
        return pl.BlockSpec(a.shape, lambda i, _nd=nd: (0,) * _nd)

    kernel = functools.partial(
        _resnet1d_kernel, batch=B, seq_len=L, lp=lp, n_lanes=n_lanes,
        cin0=cin, num_classes=nc, wbases=wbases, fc_base=fc_base)

    out = pl.pallas_call(
        kernel,
        grid=(1,),
        in_specs=[full_spec(a) for a in inputs],
        out_specs=pl.BlockSpec((nc, B), lambda i: (0, 0)),
        out_shape=jax.ShapeDtypeStruct((nc, B), jnp.float32),
        scratch_shapes=[
            pltpu.VMEM((CHANNELS[2], n_lanes + 2 * EDGE), jnp.bfloat16),  # zero-edged act
        ],
        compiler_params=pltpu.CompilerParams(
            dimension_semantics=("arbitrary",),
            vmem_limit_bytes=_pick_vmem_limit(cin, n_lanes, wslab, vslab),
        ),
    )(*inputs)
    return out.T                                                     # (B, num_classes)


if __name__ == "__main__":
    key = jax.random.PRNGKey(0)
    k_param, k_x = jax.random.split(key)
    params = init_params(k_param, input_channels=1, num_classes=5)
    x = jax.random.normal(k_x, (2, 16, 1), dtype=jnp.float32)        # (B, L, C_in)
    logits = resnet1d_forward(x, params)
    jax.block_until_ready(logits)
    assert logits.shape == (2, 5), logits.shape
    assert bool(jnp.all(jnp.isfinite(logits)))
    print("KERNEL_OK")
</pallas_src>

<mosaic_0001>
module attributes {stable_mosaic.version = 11 : i64} {
  func.func @_resnet1d_kernel(%arg0: i32, %arg1: memref<1x128xf32, #tpu.memory_space<vmem>>, %arg2: memref<1x128xf32, #tpu.memory_space<vmem>>, %arg3: memref<1584x64xbf16, #tpu.memory_space<vmem>>, %arg4: memref<64x19xf32, #tpu.memory_space<vmem>>, %arg5: memref<5x2xf32, #tpu.memory_space<vmem>>, %arg6: memref<64x384xbf16, #tpu.memory_space<vmem>>) attributes {dimension_semantics = [#tpu.dimension_semantics<arbitrary>], iteration_bounds = array<i64: 1>, scalar_prefetch = 0 : i64, scratch_operands = 1 : i64, tpu.core_type = #tpu.core_type<tc>, window_params = [{pipeline_mode = #tpu.pipeline_mode<synchronous>, transform_indices = @transform_0, window_bounds = array<i64: 1, 128>}, {pipeline_mode = #tpu.pipeline_mode<synchronous>, transform_indices = @transform_1, window_bounds = array<i64: 1, 128>}, {pipeline_mode = #tpu.pipeline_mode<synchronous>, transform_indices = @transform_2, window_bounds = array<i64: 1584, 64>}, {pipeline_mode = #tpu.pipeline_mode<synchronous>, transform_indices = @transform_3, window_bounds = array<i64: 64, 19>}, {pipeline_mode = #tpu.pipeline_mode<synchronous>, transform_indices = @transform_4, window_bounds = array<i64: 5, 2>}]} {
    %c0 = arith.constant 0 : index
    %c0_0 = arith.constant 0 : index
    %0 = vector.load %arg2[%c0, %c0_0] : memref<1x128xf32, #tpu.memory_space<vmem>>, vector<1x128xf32>
    %cst = arith.constant 0.000000e+00 : bf16
    %1 = vector.broadcast %cst : bf16 to vector<64x128xbf16>
    %c0_1 = arith.constant 0 : index
    %c0_2 = arith.constant 0 : index
    %2 = vector.load %arg6[%c0_1, %c0_2] : memref<64x384xbf16, #tpu.memory_space<vmem>>, vector<64x128xbf16>
    tpu.vector_store %arg6[%c0_1, %c0_2], %1 {strides = array<i32>} : memref<64x384xbf16, #tpu.memory_space<vmem>>, vector<64x128xbf16>,
    %cst_3 = arith.constant 0.000000e+00 : bf16
    %3 = vector.broadcast %cst_3 : bf16 to vector<64x128xbf16>
    %c0_4 = arith.constant 0 : index
    %c256 = arith.constant 256 : index
    %4 = vector.load %arg6[%c0_4, %c256] : memref<64x384xbf16, #tpu.memory_space<vmem>>, vector<64x128xbf16>
    tpu.vector_store %arg6[%c0_4, %c256], %3 {strides = array<i32>} : memref<64x384xbf16, #tpu.memory_space<vmem>>, vector<64x128xbf16>,
    %c0_5 = arith.constant 0 : index
    %c0_6 = arith.constant 0 : index
    %5 = vector.load %arg1[%c0_5, %c0_6] : memref<1x128xf32, #tpu.memory_space<vmem>>, vector<1x128xf32>
    %6 = arith.mulf %5, %0 : vector<1x128xf32>
    %7 = arith.truncf %6 : vector<1x128xf32> to vector<1x128xbf16>
    %c0_7 = arith.constant 0 : index
    %c128 = arith.constant 128 : index
    %8 = vector.load %arg6[%c0_7, %c128] : memref<64x384xbf16, #tpu.memory_space<vmem>>, vector<1x128xbf16>
    tpu.vector_store %arg6[%c0_7, %c128], %7 {strides = array<i32>} : memref<64x384xbf16, #tpu.memory_space<vmem>>, vector<1x128xbf16>,
    %c0_8 = arith.constant 0 : index
    %c125 = arith.constant 125 : index
    %9 = vector.load %arg6[%c0_8, %c125] : memref<64x384xbf16, #tpu.memory_space<vmem>>, vector<1x128xbf16>
    %c0_9 = arith.constant 0 : index
    %c0_10 = arith.constant 0 : index
    %10 = vector.load %arg3[%c0_9, %c0_10] : memref<1584x64xbf16, #tpu.memory_space<vmem>>, vector<16x1xbf16>
    %11 = arith.extf %10 : vector<16x1xbf16> to vector<16x1xf32>
    %12 = arith.extf %9 : vector<1x128xbf16> to vector<1x128xf32>
    %13 = vector.broadcast %11 : vector<16x1xf32> to vector<16x128xf32>
    %14 = vector.broadcast %12 : vector<1x128xf32> to vector<16x128xf32>
    %15 = arith.mulf %13, %14 : vector<16x128xf32>
    %c0_11 = arith.constant 0 : index
    %c126 = arith.constant 126 : index
    %16 = vector.load %arg6[%c0_11, %c126] : memref<64x384xbf16, #tpu.memory_space<vmem>>, vector<1x128xbf16>
    %c16 = arith.constant 16 : index
    %c0_12 = arith.constant 0 : index
    %17 = vector.load %arg3[%c16, %c0_12] : memref<1584x64xbf16, #tpu.memory_space<vmem>>, vector<16x1xbf16>
    %18 = arith.extf %17 : vector<16x1xbf16> to vector<16x1xf32>
    %19 = arith.extf %16 : vector<1x128xbf16> to vector<1x128xf32>
    %20 = vector.broadcast %18 : vector<16x1xf32> to vector<16x128xf32>
    %21 = vector.broadcast %19 : vector<1x128xf32> to vector<16x128xf32>
    %22 = arith.mulf %20, %21 : vector<16x128xf32>
    %23 = arith.addf %15, %22 : vector<16x128xf32>
    %c0_13 = arith.constant 0 : index
    %c127 = arith.constant 127 : index
    %24 = vector.load %arg6[%c0_13, %c127] : memref<64x384xbf16, #tpu.memory_space<vmem>>, vector<1x128xbf16>
    %c32 = arith.constant 32 : index
    %c0_14 = arith.constant 0 : index
    %25 = vector.load %arg3[%c32, %c0_14] : memref<1584x64xbf16, #tpu.memory_space<vmem>>, vector<16x1xbf16>
    %26 = arith.extf %25 : vector<16x1xbf16> to vector<16x1xf32>
    %27 = arith.extf %24 : vector<1x128xbf16> to vector<1x128xf32>
    %28 = vector.broadcast %26 : vector<16x1xf32> to vector<16x128xf32>
    %29 = vector.broadcast %27 : vector<1x128xf32> to vector<16x128xf32>
    %30 = arith.mulf %28, %29 : vector<16x128xf32>
    %31 = arith.addf %23, %30 : vector<16x128xf32>
    %c0_15 = arith.constant 0 : index
    %c128_16 = arith.constant 128 : index
    %32 = vector.load %arg6[%c0_15, %c128_16] : memref<64x384xbf16, #tpu.memory_space<vmem>>, vector<1x128xbf16>
    %c48 = arith.constant 48 : index
    %c0_17 = arith.constant 0 : index
    %33 = vector.load %arg3[%c48, %c0_17] : memref<1584x64xbf16, #tpu.memory_space<vmem>>, vector<16x1xbf16>
    %34 = arith.extf %33 : vector<16x1xbf16> to vector<16x1xf32>
    %35 = arith.extf %32 : vector<1x128xbf16> to vector<1x128xf32>
    %36 = vector.broadcast %34 : vector<16x1xf32> to vector<16x128xf32>
    %37 = vector.broadcast %35 : vector<1x128xf32> to vector<16x128xf32>
    %38 = arith.mulf %36, %37 : vector<16x128xf32>
    %39 = arith.addf %31, %38 : vector<16x128xf32>
    %c0_18 = arith.constant 0 : index
    %c129 = arith.constant 129 : index
    %40 = vector.load %arg6[%c0_18, %c129] : memref<64x384xbf16, #tpu.memory_space<vmem>>, vector<1x128xbf16>
    %c64 = arith.constant 64 : index
    %c0_19 = arith.constant 0 : index
    %41 = vector.load %arg3[%c64, %c0_19] : memref<1584x64xbf16, #tpu.memory_space<vmem>>, vector<16x1xbf16>
    %42 = arith.extf %41 : vector<16x1xbf16> to vector<16x1xf32>
    %43 = arith.extf %40 : vector<1x128xbf16> to vector<1x128xf32>
    %44 = vector.broadcast %42 : vector<16x1xf32> to vector<16x128xf32>
    %45 = vector.broadcast %43 : vector<1x128xf32> to vector<16x128xf32>
    %46 = arith.mulf %44, %45 : vector<16x128xf32>
    %47 = arith.addf %39, %46 : vector<16x128xf32>
    %c0_20 = arith.constant 0 : index
    %c130 = arith.constant 130 : index
    %48 = vector.load %arg6[%c0_20, %c130] : memref<64x384xbf16, #tpu.memory_space<vmem>>, vector<1x128xbf16>
    %c80 = arith.constant 80 : index
    %c0_21 = arith.constant 0 : index
    %49 = vector.load %arg3[%c80, %c0_21] : memref<1584x64xbf16, #tpu.memory_space<vmem>>, vector<16x1xbf16>
    %50 = arith.extf %49 : vector<16x1xbf16> to vector<16x1xf32>
    %51 = arith.extf %48 : vector<1x128xbf16> to vector<1x128xf32>
    %52 = vector.broadcast %50 : vector<16x1xf32> to vector<16x128xf32>
    %53 = vector.broadcast %51 : vector<1x128xf32> to vector<16x128xf32>
    %54 = arith.mulf %52, %53 : vector<16x128xf32>
    %55 = arith.addf %47, %54 : vector<16x128xf32>
    %c0_22 = arith.constant 0 : index
    %c131 = arith.constant 131 : index
    %56 = vector.load %arg6[%c0_22, %c131] : memref<64x384xbf16, #tpu.memory_space<vmem>>, vector<1x128xbf16>
    %c96 = arith.constant 96 : index
    %c0_23 = arith.constant 0 : index
    %57 = vector.load %arg3[%c96, %c0_23] : memref<1584x64xbf16, #tpu.memory_space<vmem>>, vector<16x1xbf16>
    %58 = arith.extf %57 : vector<16x1xbf16> to vector<16x1xf32>
    %59 = arith.extf %56 : vector<1x128xbf16> to vector<1x128xf32>
    %60 = vector.broadcast %58 : vector<16x1xf32> to vector<16x128xf32>
    %61 = vector.broadcast %59 : vector<1x128xf32> to vector<16x128xf32>
    %62 = arith.mulf %60, %61 : vector<16x128xf32>
    %63 = arith.addf %55, %62 : vector<16x128xf32>
    %c0_24 = arith.constant 0 : index
    %c0_25 = arith.constant 0 : index
    %64 = vector.load %arg4[%c0_24, %c0_25] : memref<64x19xf32, #tpu.memory_space<vmem>>, vector<16x1xf32>
    %65 = vector.broadcast %64 : vector<16x1xf32> to vector<16x128xf32>
    %66 = arith.addf %63, %65 : vector<16x128xf32>
    %67 = vector.broadcast %0 : vector<1x128xf32> to vector<16x128xf32>
    %68 = arith.mulf %66, %67 : vector<16x128xf32>
    %c0_26 = arith.constant 0 : index
    %c1 = arith.constant 1 : index
    %69 = vector.load %arg4[%c0_26, %c1] : memref<64x19xf32, #tpu.memory_space<vmem>>, vector<16x1xf32>
    %c0_27 = arith.constant 0 : index
    %c2 = arith.constant 2 : index
    %70 = vector.load %arg4[%c0_27, %c2] : memref<64x19xf32, #tpu.memory_space<vmem>>, vector<16x1xf32>
    %cst_28 = arith.constant dense<0.000000e+00> : vector<16xf32>
    %71 = vector.multi_reduction <add>, %68, %cst_28 [1] : vector<16x128xf32> to vector<16xf32>
    %72 = vector.shape_cast %71 : vector<16xf32> to vector<16x1xf32>
    %73 = arith.mulf %68, %68 : vector<16x128xf32>
    %cst_29 = arith.constant dense<0.000000e+00> : vector<16xf32>
    %74 = vector.multi_reduction <add>, %73, %cst_29 [1] : vector<16x128xf32> to vector<16xf32>
    %75 = vector.shape_cast %74 : vector<16xf32> to vector<16x1xf32>
    %cst_30 = arith.constant 3.125000e-02 : f32
    %76 = vector.broadcast %cst_30 : f32 to vector<16x1xf32>
    %77 = arith.mulf %72, %76 : vector<16x1xf32>
    %cst_31 = arith.constant 3.125000e-02 : f32
    %78 = vector.broadcast %cst_31 : f32 to vector<16x1xf32>
    %79 = arith.mulf %75, %78 : vector<16x1xf32>
    %80 = arith.mulf %77, %77 : vector<16x1xf32>
    %81 = arith.subf %79, %80 : vector<16x1xf32>
    %cst_32 = arith.constant 0.000000e+00 : f32
    %82 = vector.broadcast %cst_32 : f32 to vector<16x1xf32>
    %83 = arith.maximumf %81, %82 : vector<16x1xf32>
    %cst_33 = arith.constant 9.99999974E-6 : f32
    %84 = vector.broadcast %cst_33 : f32 to vector<16x1xf32>
    %85 = arith.addf %83, %84 : vector<16x1xf32>
    %86 = math.rsqrt %85 : vector<16x1xf32>
    %87 = arith.mulf %69, %86 : vector<16x1xf32>
    %88 = arith.mulf %77, %87 : vector<16x1xf32>
    %89 = arith.subf %70, %88 : vector<16x1xf32>
    %90 = vector.broadcast %87 : vector<16x1xf32> to vector<16x128xf32>
    %91 = arith.mulf %68, %90 : vector<16x128xf32>
    %92 = vector.broadcast %89 : vector<16x1xf32> to vector<16x128xf32>
    %93 = arith.addf %91, %92 : vector<16x128xf32>
    %cst_34 = arith.constant 0.000000e+00 : f32
    %94 = vector.broadcast %cst_34 : f32 to vector<16x128xf32>
    %95 = arith.maximumf %93, %94 : vector<16x128xf32>
    %96 = vector.broadcast %0 : vector<1x128xf32> to vector<16x128xf32>
    %97 = arith.mulf %95, %96 : vector<16x128xf32>
    %98 = arith.truncf %97 : vector<16x128xf32> to vector<16x128xbf16>
    %c0_35 = arith.constant 0 : index
    %c128_36 = arith.constant 128 : index
    %99 = vector.load %arg6[%c0_35, %c128_36] : memref<64x384xbf16, #tpu.memory_space<vmem>>, vector<16x128xbf16>
    tpu.vector_store %arg6[%c0_35, %c128_36], %98 {strides = array<i32>} : memref<64x384xbf16, #tpu.memory_space<vmem>>, vector<16x128xbf16>,
    %c0_37 = arith.constant 0 : index
    %c125_38 = arith.constant 125 : index
    %100 = vector.load %arg6[%c0_37, %c125_38] : memref<64x384xbf16, #tpu.memory_space<vmem>>, vector<16x128xbf16>
    %c112 = arith.constant 112 : index
    %c0_39 = arith.constant 0 : index
    %101 = vector.load %arg3[%c112, %c0_39] : memref<1584x64xbf16, #tpu.memory_space<vmem>>, vector<16x16xbf16>
    %cst_40 = arith.constant dense<0.000000e+00> : vector<16x128xf32>
    %102 = tpu.matmul %101, %100, %cst_40 {dimension_numbers = #tpu.dot_dimension_numbers<[1], [0], [0], [1], [0, 0, 1, 1], [], []>} : vector<16x16xbf16>, vector<16x128xbf16>, vector<16x128xf32> -> vector<16x128xf32>
    %c0_41 = arith.constant 0 : index
    %c126_42 = arith.constant 126 : index
    %103 = vector.load %arg6[%c0_41, %c126_42] : memref<64x384xbf16, #tpu.memory_space<vmem>>, vector<16x128xbf16>
    %c128_43 = arith.constant 128 : index
    %c0_44 = arith.constant 0 : index
    %104 = vector.load %arg3[%c128_43, %c0_44] : memref<1584x64xbf16, #tpu.memory_space<vmem>>, vector<16x16xbf16>
    %cst_45 = arith.constant dense<0.000000e+00> : vector<16x128xf32>
    %105 = tpu.matmul %104, %103, %cst_45 {dimension_numbers = #tpu.dot_dimension_numbers<[1], [0], [0], [1], [0, 0, 1, 1], [], []>} : vector<16x16xbf16>, vector<16x128xbf16>, vector<16x128xf32> -> vector<16x128xf32>
    %106 = arith.addf %102, %105 : vector<16x128xf32>
    %c0_46 = arith.constant 0 : index
    %c127_47 = arith.constant 127 : index
    %107 = vector.load %arg6[%c0_46, %c127_47] : memref<64x384xbf16, #tpu.memory_space<vmem>>, vector<16x128xbf16>
    %c144 = arith.constant 144 : index
    %c0_48 = arith.constant 0 : index
    %108 = vector.load %arg3[%c144, %c0_48] : memref<1584x64xbf16, #tpu.memory_space<vmem>>, vector<16x16xbf16>
    %cst_49 = arith.constant dense<0.000000e+00> : vector<16x128xf32>
    %109 = tpu.matmul %108, %107, %cst_49 {dimension_numbers = #tpu.dot_dimension_numbers<[1], [0], [0], [1], [0, 0, 1, 1], [], []>} : vector<16x16xbf16>, vector<16x128xbf16>, vector<16x128xf32> -> vector<16x128xf32>
    %110 = arith.addf %106, %109 : vector<16x128xf32>
    %c0_50 = arith.constant 0 : index
    %c128_51 = arith.constant 128 : index
    %111 = vector.load %arg6[%c0_50, %c128_51] : memref<64x384xbf16, #tpu.memory_space<vmem>>, vector<16x128xbf16>
    %c160 = arith.constant 160 : index
    %c0_52 = arith.constant 0 : index
    %112 = vector.load %arg3[%c160, %c0_52] : memref<1584x64xbf16, #tpu.memory_space<vmem>>, vector<16x16xbf16>
    %cst_53 = arith.constant dense<0.000000e+00> : vector<16x128xf32>
    %113 = tpu.matmul %112, %111, %cst_53 {dimension_numbers = #tpu.dot_dimension_numbers<[1], [0], [0], [1], [0, 0, 1, 1], [], []>} : vector<16x16xbf16>, vector<16x128xbf16>, vector<16x128xf32> -> vector<16x128xf32>
    %114 = arith.addf %110, %113 : vector<16x128xf32>
    %c0_54 = arith.constant 0 : index
    %c129_55 = arith.constant 129 : index
    %115 = vector.load %arg6[%c0_54, %c129_55] : memref<64x384xbf16, #tpu.memory_space<vmem>>, vector<16x128xbf16>
    %c176 = arith.constant 176 : index
    %c0_56 = arith.constant 0 : index
    %116 = vector.load %arg3[%c176, %c0_56] : memref<1584x64xbf16, #tpu.memory_space<vmem>>, vector<16x16xbf16>
    %cst_57 = arith.constant dense<0.000000e+00> : vector<16x128xf32>
    %117 = tpu.matmul %116, %115, %cst_57 {dimension_numbers = #tpu.dot_dimension_numbers<[1], [0], [0], [1], [0, 0, 1, 1], [], []>} : vector<16x16xbf16>, vector<16x128xbf16>, vector<16x128xf32> -> vector<16x128xf32>
    %118 = arith.addf %114, %117 : vector<16x128xf32>
    %c0_58 = arith.constant 0 : index
    %c130_59 = arith.constant 130 : index
    %119 = vector.load %arg6[%c0_58, %c130_59] : memref<64x384xbf16, #tpu.memory_space<vmem>>, vector<16x128xbf16>
    %c192 = arith.constant 192 : index
    %c0_60 = arith.constant 0 : index
    %120 = vector.load %arg3[%c192, %c0_60] : memref<1584x64xbf16, #tpu.memory_space<vmem>>, vector<16x16xbf16>
    %cst_61 = arith.constant dense<0.000000e+00> : vector<16x128xf32>
    %121 = tpu.matmul %120, %119, %cst_61 {dimension_numbers = #tpu.dot_dimension_numbers<[1], [0], [0], [1], [0, 0, 1, 1], [], []>} : vector<16x16xbf16>, vector<16x128xbf16>, vector<16x128xf32> -> vector<16x128xf32>
    %122 = arith.addf %118, %121 : vector<16x128xf32>
    %c0_62 = arith.constant 0 : index
    %c131_63 = arith.constant 131 : index
    %123 = vector.load %arg6[%c0_62, %c131_63] : memref<64x384xbf16, #tpu.memory_space<vmem>>, vector<16x128xbf16>
    %c208 = arith.constant 208 : index
    %c0_64 = arith.constant 0 : index
    %124 = vector.load %arg3[%c208, %c0_64] : memref<1584x64xbf16, #tpu.memory_space<vmem>>, vector<16x16xbf16>
    %cst_65 = arith.constant dense<0.000000e+00> : vector<16x128xf32>
    %125 = tpu.matmul %124, %123, %cst_65 {dimension_numbers = #tpu.dot_dimension_numbers<[1], [0], [0], [1], [0, 0, 1, 1], [], []>} : vector<16x16xbf16>, vector<16x128xbf16>, vector<16x128xf32> -> vector<16x128xf32>
    %126 = arith.addf %122, %125 : vector<16x128xf32>
    %c0_66 = arith.constant 0 : index
    %c3 = arith.constant 3 : index
    %127 = vector.load %arg4[%c0_66, %c3] : memref<64x19xf32, #tpu.memory_space<vmem>>, vector<16x1xf32>
    %128 = vector.broadcast %127 : vector<16x1xf32> to vector<16x128xf32>
    %129 = arith.addf %126, %128 : vector<16x128xf32>
    %130 = vector.broadcast %0 : vector<1x128xf32> to vector<16x128xf32>
    %131 = arith.mulf %129, %130 : vector<16x128xf32>
    %c0_67 = arith.constant 0 : index
    %c4 = arith.constant 4 : index
    %132 = vector.load %arg4[%c0_67, %c4] : memref<64x19xf32, #tpu.memory_space<vmem>>, vector<16x1xf32>
    %c0_68 = arith.constant 0 : index
    %c5 = arith.constant 5 : index
    %133 = vector.load %arg4[%c0_68, %c5] : memref<64x19xf32, #tpu.memory_space<vmem>>, vector<16x1xf32>
    %cst_69 = arith.constant dense<0.000000e+00> : vector<16xf32>
    %134 = vector.multi_reduction <add>, %131, %cst_69 [1] : vector<16x128xf32> to vector<16xf32>
    %135 = vector.shape_cast %134 : vector<16xf32> to vector<16x1xf32>
    %136 = arith.mulf %131, %131 : vector<16x128xf32>
    %cst_70 = arith.constant dense<0.000000e+00> : vector<16xf32>
    %137 = vector.multi_reduction <add>, %136, %cst_70 [1] : vector<16x128xf32> to vector<16xf32>
    %138 = vector.shape_cast %137 : vector<16xf32> to vector<16x1xf32>
    %cst_71 = arith.constant 3.125000e-02 : f32
    %139 = vector.broadcast %cst_71 : f32 to vector<16x1xf32>
    %140 = arith.mulf %135, %139 : vector<16x1xf32>
    %cst_72 = arith.constant 3.125000e-02 : f32
    %141 = vector.broadcast %cst_72 : f32 to vector<16x1xf32>
    %142 = arith.mulf %138, %141 : vector<16x1xf32>
    %143 = arith.mulf %140, %140 : vector<16x1xf32>
    %144 = arith.subf %142, %143 : vector<16x1xf32>
    %cst_73 = arith.constant 0.000000e+00 : f32
    %145 = vector.broadcast %cst_73 : f32 to vector<16x1xf32>
    %146 = arith.maximumf %144, %145 : vector<16x1xf32>
    %cst_74 = arith.constant 9.99999974E-6 : f32
    %147 = vector.broadcast %cst_74 : f32 to vector<16x1xf32>
    %148 = arith.addf %146, %147 : vector<16x1xf32>
    %149 = math.rsqrt %148 : vector<16x1xf32>
    %150 = arith.mulf %132, %149 : vector<16x1xf32>
    %151 = arith.mulf %140, %150 : vector<16x1xf32>
    %152 = arith.subf %133, %151 : vector<16x1xf32>
    %153 = vector.broadcast %150 : vector<16x1xf32> to vector<16x128xf32>
    %154 = arith.mulf %131, %153 : vector<16x128xf32>
    %155 = vector.broadcast %152 : vector<16x1xf32> to vector<16x128xf32>
    %156 = arith.addf %154, %155 : vector<16x128xf32>
    %157 = vector.broadcast %5 : vector<1x128xf32> to vector<16x128xf32>
    %158 = arith.addf %156, %157 : vector<16x128xf32>
    %cst_75 = arith.constant 0.000000e+00 : f32
    %159 = vector.broadcast %cst_75 : f32 to vector<16x128xf32>
    %160 = arith.maximumf %158, %159 : vector<16x128xf32>
    %161 = vector.broadcast %0 : vector<1x128xf32> to vector<16x128xf32>
    %162 = arith.mulf %160, %161 : vector<16x128xf32>
    %163 = arith.truncf %162 : vector<16x128xf32> to vector<16x128xbf16>
    %c0_76 = arith.constant 0 : index
    %c128_77 = arith.constant 128 : index
    %164 = vector.load %arg6[%c0_76, %c128_77] : memref<64x384xbf16, #tpu.memory_space<vmem>>, vector<16x128xbf16>
    tpu.vector_store %arg6[%c0_76, %c128_77], %163 {strides = array<i32>} : memref<64x384xbf16, #tpu.memory_space<vmem>>, vector<16x128xbf16>,
    %c0_78 = arith.constant 0 : index
    %c125_79 = arith.constant 125 : index
    %165 = vector.load %arg6[%c0_78, %c125_79] : memref<64x384xbf16, #tpu.memory_space<vmem>>, vector<16x128xbf16>
    %c224 = arith.constant 224 : index
    %c0_80 = arith.constant 0 : index
    %166 = vector.load %arg3[%c224, %c0_80] : memref<1584x64xbf16, #tpu.memory_space<vmem>>, vector<32x16xbf16>
    %cst_81 = arith.constant dense<0.000000e+00> : vector<32x128xf32>
    %167 = tpu.matmul %166, %165, %cst_81 {dimension_numbers = #tpu.dot_dimension_numbers<[1], [0], [0], [1], [0, 0, 1, 1], [], []>} : vector<32x16xbf16>, vector<16x128xbf16>, vector<32x128xf32> -> vector<32x128xf32>
    %c0_82 = arith.constant 0 : index
    %c126_83 = arith.constant 126 : index
    %168 = vector.load %arg6[%c0_82, %c126_83] : memref<64x384xbf16, #tpu.memory_space<vmem>>, vector<16x128xbf16>
    %c256_84 = arith.constant 256 : index
    %c0_85 = arith.constant 0 : index
    %169 = vector.load %arg3[%c256_84, %c0_85] : memref<1584x64xbf16, #tpu.memory_space<vmem>>, vector<32x16xbf16>
    %cst_86 = arith.constant dense<0.000000e+00> : vector<32x128xf32>
    %170 = tpu.matmul %169, %168, %cst_86 {dimension_numbers = #tpu.dot_dimension_numbers<[1], [0], [0], [1], [0, 0, 1, 1], [], []>} : vector<32x16xbf16>, vector<16x128xbf16>, vector<32x128xf32> -> vector<32x128xf32>
    %171 = arith.addf %167, %170 : vector<32x128xf32>
    %c0_87 = arith.constant 0 : index
    %c127_88 = arith.constant 127 : index
    %172 = vector.load %arg6[%c0_87, %c127_88] : memref<64x384xbf16, #tpu.memory_space<vmem>>, vector<16x128xbf16>
    %c288 = arith.constant 288 : index
    %c0_89 = arith.constant 0 : index
    %173 = vector.load %arg3[%c288, %c0_89] : memref<1584x64xbf16, #tpu.memory_space<vmem>>, vector<32x16xbf16>
    %cst_90 = arith.constant dense<0.000000e+00> : vector<32x128xf32>
    %174 = tpu.matmul %173, %172, %cst_90 {dimension_numbers = #tpu.dot_dimension_numbers<[1], [0], [0], [1], [0, 0, 1, 1], [], []>} : vector<32x16xbf16>, vector<16x128xbf16>, vector<32x128xf32> -> vector<32x128xf32>
    %175 = arith.addf %171, %174 : vector<32x128xf32>
    %c0_91 = arith.constant 0 : index
    %c128_92 = arith.constant 128 : index
    %176 = vector.load %arg6[%c0_91, %c128_92] : memref<64x384xbf16, #tpu.memory_space<vmem>>, vector<16x128xbf16>
    %c320 = arith.constant 320 : index
    %c0_93 = arith.constant 0 : index
    %177 = vector.load %arg3[%c320, %c0_93] : memref<1584x64xbf16, #tpu.memory_space<vmem>>, vector<32x16xbf16>
    %cst_94 = arith.constant dense<0.000000e+00> : vector<32x128xf32>
    %178 = tpu.matmul %177, %176, %cst_94 {dimension_numbers = #tpu.dot_dimension_numbers<[1], [0], [0], [1], [0, 0, 1, 1], [], []>} : vector<32x16xbf16>, vector<16x128xbf16>, vector<32x128xf32> -> vector<32x128xf32>
    %179 = arith.addf %175, %178 : vector<32x128xf32>
    %c0_95 = arith.constant 0 : index
    %c129_96 = arith.constant 129 : index
    %180 = vector.load %arg6[%c0_95, %c129_96] : memref<64x384xbf16, #tpu.memory_space<vmem>>, vector<16x128xbf16>
    %c352 = arith.constant 352 : index
    %c0_97 = arith.constant 0 : index
    %181 = vector.load %arg3[%c352, %c0_97] : memref<1584x64xbf16, #tpu.memory_space<vmem>>, vector<32x16xbf16>
    %cst_98 = arith.constant dense<0.000000e+00> : vector<32x128xf32>
    %182 = tpu.matmul %181, %180, %cst_98 {dimension_numbers = #tpu.dot_dimension_numbers<[1], [0], [0], [1], [0, 0, 1, 1], [], []>} : vector<32x16xbf16>, vector<16x128xbf16>, vector<32x128xf32> -> vector<32x128xf32>
    %183 = arith.addf %179, %182 : vector<32x128xf32>
    %c0_99 = arith.constant 0 : index
    %c130_100 = arith.constant 130 : index
    %184 = vector.load %arg6[%c0_99, %c130_100] : memref<64x384xbf16, #tpu.memory_space<vmem>>, vector<16x128xbf16>
    %c384 = arith.constant 384 : index
    %c0_101 = arith.constant 0 : index
    %185 = vector.load %arg3[%c384, %c0_101] : memref<1584x64xbf16, #tpu.memory_space<vmem>>, vector<32x16xbf16>
    %cst_102 = arith.constant dense<0.000000e+00> : vector<32x128xf32>
    %186 = tpu.matmul %185, %184, %cst_102 {dimension_numbers = #tpu.dot_dimension_numbers<[1], [0], [0], [1], [0, 0, 1, 1], [], []>} : vector<32x16xbf16>, vector<16x128xbf16>, vector<32x128xf32> -> vector<32x128xf32>
    %187 = arith.addf %183, %186 : vector<32x128xf32>
    %c0_103 = arith.constant 0 : index
    %c131_104 = arith.constant 131 : index
    %188 = vector.load %arg6[%c0_103, %c131_104] : memref<64x384xbf16, #tpu.memory_space<vmem>>, vector<16x128xbf16>
    %c416 = arith.constant 416 : index
    %c0_105 = arith.constant 0 : index
    %189 = vector.load %arg3[%c416, %c0_105] : memref<1584x64xbf16, #tpu.memory_space<vmem>>, vector<32x16xbf16>
    %cst_106 = arith.constant dense<0.000000e+00> : vector<32x128xf32>
    %190 = tpu.matmul %189, %188, %cst_106 {dimension_numbers = #tpu.dot_dimension_numbers<[1], [0], [0], [1], [0, 0, 1, 1], [], []>} : vector<32x16xbf16>, vector<16x128xbf16>, vector<32x128xf32> -> vector<32x128xf32>
    %191 = arith.addf %187, %190 : vector<32x128xf32>
    %c0_107 = arith.constant 0 : index
    %c6 = arith.constant 6 : index
    %192 = vector.load %arg4[%c0_107, %c6] : memref<64x19xf32, #tpu.memory_space<vmem>>, vector<32x1xf32>
    %193 = vector.broadcast %192 : vector<32x1xf32> to vector<32x128xf32>
    %194 = arith.addf %191, %193 : vector<32x128xf32>
    %195 = vector.broadcast %0 : vector<1x128xf32> to vector<32x128xf32>
    %196 = arith.mulf %194, %195 : vector<32x128xf32>
    %c0_108 = arith.constant 0 : index
    %c7 = arith.constant 7 : index
    %197 = vector.load %arg4[%c0_108, %c7] : memref<64x19xf32, #tpu.memory_space<vmem>>, vector<32x1xf32>
    %c0_109 = arith.constant 0 : index
    %c8 = arith.constant 8 : index
    %198 = vector.load %arg4[%c0_109, %c8] : memref<64x19xf32, #tpu.memory_space<vmem>>, vector<32x1xf32>
    %cst_110 = arith.constant dense<0.000000e+00> : vector<32xf32>
    %199 = vector.multi_reduction <add>, %196, %cst_110 [1] : vector<32x128xf32> to vector<32xf32>
    %200 = vector.shape_cast %199 : vector<32xf32> to vector<32x1xf32>
    %201 = arith.mulf %196, %196 : vector<32x128xf32>
    %cst_111 = arith.constant dense<0.000000e+00> : vector<32xf32>
    %202 = vector.multi_reduction <add>, %201, %cst_111 [1] : vector<32x128xf32> to vector<32xf32>
    %203 = vector.shape_cast %202 : vector<32xf32> to vector<32x1xf32>
    %cst_112 = arith.constant 3.125000e-02 : f32
    %204 = vector.broadcast %cst_112 : f32 to vector<32x1xf32>
    %205 = arith.mulf %200, %204 : vector<32x1xf32>
    %cst_113 = arith.constant 3.125000e-02 : f32
    %206 = vector.broadcast %cst_113 : f32 to vector<32x1xf32>
    %207 = arith.mulf %203, %206 : vector<32x1xf32>
    %208 = arith.mulf %205, %205 : vector<32x1xf32>
    %209 = arith.subf %207, %208 : vector<32x1xf32>
    %cst_114 = arith.constant 0.000000e+00 : f32
    %210 = vector.broadcast %cst_114 : f32 to vector<32x1xf32>
    %211 = arith.maximumf %209, %210 : vector<32x1xf32>
    %cst_115 = arith.constant 9.99999974E-6 : f32
    %212 = vector.broadcast %cst_115 : f32 to vector<32x1xf32>
    %213 = arith.addf %211, %212 : vector<32x1xf32>
    %214 = math.rsqrt %213 : vector<32x1xf32>
    %215 = arith.mulf %197, %214 : vector<32x1xf32>
    %216 = arith.mulf %205, %215 : vector<32x1xf32>
    %217 = arith.subf %198, %216 : vector<32x1xf32>
    %218 = vector.broadcast %215 : vector<32x1xf32> to vector<32x128xf32>
    %219 = arith.mulf %196, %218 : vector<32x128xf32>
    %220 = vector.broadcast %217 : vector<32x1xf32> to vector<32x128xf32>
    %221 = arith.addf %219, %220 : vector<32x128xf32>
    %cst_116 = arith.constant 0.000000e+00 : f32
    %222 = vector.broadcast %cst_116 : f32 to vector<32x128xf32>
    %223 = arith.maximumf %221, %222 : vector<32x128xf32>
    %224 = vector.broadcast %0 : vector<1x128xf32> to vector<32x128xf32>
    %225 = arith.mulf %223, %224 : vector<32x128xf32>
    %226 = arith.truncf %225 : vector<32x128xf32> to vector<32x128xbf16>
    %c0_117 = arith.constant 0 : index
    %c128_118 = arith.constant 128 : index
    %227 = vector.load %arg6[%c0_117, %c128_118] : memref<64x384xbf16, #tpu.memory_space<vmem>>, vector<32x128xbf16>
    tpu.vector_store %arg6[%c0_117, %c128_118], %226 {strides = array<i32>} : memref<64x384xbf16, #tpu.memory_space<vmem>>, vector<32x128xbf16>,
    %c0_119 = arith.constant 0 : index
    %c125_120 = arith.constant 125 : index
    %228 = vector.load %arg6[%c0_119, %c125_120] : memref<64x384xbf16, #tpu.memory_space<vmem>>, vector<32x128xbf16>
    %c448 = arith.constant 448 : index
    %c0_121 = arith.constant 0 : index
    %229 = vector.load %arg3[%c448, %c0_121] : memref<1584x64xbf16, #tpu.memory_space<vmem>>, vector<32x32xbf16>
    %cst_122 = arith.constant dense<0.000000e+00> : vector<32x128xf32>
    %230 = tpu.matmul %229, %228, %cst_122 {dimension_numbers = #tpu.dot_dimension_numbers<[1], [0], [0], [1], [0, 0, 1, 1], [], []>} : vector<32x32xbf16>, vector<32x128xbf16>, vector<32x128xf32> -> vector<32x128xf32>
    %c0_123 = arith.constant 0 : index
    %c126_124 = arith.constant 126 : index
    %231 = vector.load %arg6[%c0_123, %c126_124] : memref<64x384xbf16, #tpu.memory_space<vmem>>, vector<32x128xbf16>
    %c480 = arith.constant 480 : index
    %c0_125 = arith.constant 0 : index
    %232 = vector.load %arg3[%c480, %c0_125] : memref<1584x64xbf16, #tpu.memory_space<vmem>>, vector<32x32xbf16>
    %cst_126 = arith.constant dense<0.000000e+00> : vector<32x128xf32>
    %233 = tpu.matmul %232, %231, %cst_126 {dimension_numbers = #tpu.dot_dimension_numbers<[1], [0], [0], [1], [0, 0, 1, 1], [], []>} : vector<32x32xbf16>, vector<32x128xbf16>, vector<32x128xf32> -> vector<32x128xf32>
    %234 = arith.addf %230, %233 : vector<32x128xf32>
    %c0_127 = arith.constant 0 : index
    %c127_128 = arith.constant 127 : index
    %235 = vector.load %arg6[%c0_127, %c127_128] : memref<64x384xbf16, #tpu.memory_space<vmem>>, vector<32x128xbf16>
    %c512 = arith.constant 512 : index
    %c0_129 = arith.constant 0 : index
    %236 = vector.load %arg3[%c512, %c0_129] : memref<1584x64xbf16, #tpu.memory_space<vmem>>, vector<32x32xbf16>
    %cst_130 = arith.constant dense<0.000000e+00> : vector<32x128xf32>
    %237 = tpu.matmul %236, %235, %cst_130 {dimension_numbers = #tpu.dot_dimension_numbers<[1], [0], [0], [1], [0, 0, 1, 1], [], []>} : vector<32x32xbf16>, vector<32x128xbf16>, vector<32x128xf32> -> vector<32x128xf32>
    %238 = arith.addf %234, %237 : vector<32x128xf32>
    %c0_131 = arith.constant 0 : index
    %c128_132 = arith.constant 128 : index
    %239 = vector.load %arg6[%c0_131, %c128_132] : memref<64x384xbf16, #tpu.memory_space<vmem>>, vector<32x128xbf16>
    %c544 = arith.constant 544 : index
    %c0_133 = arith.constant 0 : index
    %240 = vector.load %arg3[%c544, %c0_133] : memref<1584x64xbf16, #tpu.memory_space<vmem>>, vector<32x32xbf16>
    %cst_134 = arith.constant dense<0.000000e+00> : vector<32x128xf32>
    %241 = tpu.matmul %240, %239, %cst_134 {dimension_numbers = #tpu.dot_dimension_numbers<[1], [0], [0], [1], [0, 0, 1, 1], [], []>} : vector<32x32xbf16>, vector<32x128xbf16>, vector<32x128xf32> -> vector<32x128xf32>
    %242 = arith.addf %238, %241 : vector<32x128xf32>
    %c0_135 = arith.constant 0 : index
    %c129_136 = arith.constant 129 : index
    %243 = vector.load %arg6[%c0_135, %c129_136] : memref<64x384xbf16, #tpu.memory_space<vmem>>, vector<32x128xbf16>
    %c576 = arith.constant 576 : index
    %c0_137 = arith.constant 0 : index
    %244 = vector.load %arg3[%c576, %c0_137] : memref<1584x64xbf16, #tpu.memory_space<vmem>>, vector<32x32xbf16>
    %cst_138 = arith.constant dense<0.000000e+00> : vector<32x128xf32>
    %245 = tpu.matmul %244, %243, %cst_138 {dimension_numbers = #tpu.dot_dimension_numbers<[1], [0], [0], [1], [0, 0, 1, 1], [], []>} : vector<32x32xbf16>, vector<32x128xbf16>, vector<32x128xf32> -> vector<32x128xf32>
    %246 = arith.addf %242, %245 : vector<32x128xf32>
    %c0_139 = arith.constant 0 : index
    %c130_140 = arith.constant 130 : index
    %247 = vector.load %arg6[%c0_139, %c130_140] : memref<64x384xbf16, #tpu.memory_space<vmem>>, vector<32x128xbf16>
    %c608 = arith.constant 608 : index
    %c0_141 = arith.constant 0 : index
    %248 = vector.load %arg3[%c608, %c0_141] : memref<1584x64xbf16, #tpu.memory_space<vmem>>, vector<32x32xbf16>
    %cst_142 = arith.constant dense<0.000000e+00> : vector<32x128xf32>
    %249 = tpu.matmul %248, %247, %cst_142 {dimension_numbers = #tpu.dot_dimension_numbers<[1], [0], [0], [1], [0, 0, 1, 1], [], []>} : vector<32x32xbf16>, vector<32x128xbf16>, vector<32x128xf32> -> vector<32x128xf32>
    %250 = arith.addf %246, %249 : vector<32x128xf32>
    %c0_143 = arith.constant 0 : index
    %c131_144 = arith.constant 131 : index
    %251 = vector.load %arg6[%c0_143, %c131_144] : memref<64x384xbf16, #tpu.memory_space<vmem>>, vector<32x128xbf16>
    %c640 = arith.constant 640 : index
    %c0_145 = arith.constant 0 : index
    %252 = vector.load %arg3[%c640, %c0_145] : memref<1584x64xbf16, #tpu.memory_space<vmem>>, vector<32x32xbf16>
    %cst_146 = arith.constant dense<0.000000e+00> : vector<32x128xf32>
    %253 = tpu.matmul %252, %251, %cst_146 {dimension_numbers = #tpu.dot_dimension_numbers<[1], [0], [0], [1], [0, 0, 1, 1], [], []>} : vector<32x32xbf16>, vector<32x128xbf16>, vector<32x128xf32> -> vector<32x128xf32>
    %254 = arith.addf %250, %253 : vector<32x128xf32>
    %c0_147 = arith.constant 0 : index
    %c9 = arith.constant 9 : index
    %255 = vector.load %arg4[%c0_147, %c9] : memref<64x19xf32, #tpu.memory_space<vmem>>, vector<32x1xf32>
    %256 = vector.broadcast %255 : vector<32x1xf32> to vector<32x128xf32>
    %257 = arith.addf %254, %256 : vector<32x128xf32>
    %258 = vector.broadcast %0 : vector<1x128xf32> to vector<32x128xf32>
    %259 = arith.mulf %257, %258 : vector<32x128xf32>
    %c0_148 = arith.constant 0 : index
    %c10 = arith.constant 10 : index
    %260 = vector.load %arg4[%c0_148, %c10] : memref<64x19xf32, #tpu.memory_space<vmem>>, vector<32x1xf32>
    %c0_149 = arith.constant 0 : index
    %c11 = arith.constant 11 : index
    %261 = vector.load %arg4[%c0_149, %c11] : memref<64x19xf32, #tpu.memory_space<vmem>>, vector<32x1xf32>
    %cst_150 = arith.constant dense<0.000000e+00> : vector<32xf32>
    %262 = vector.multi_reduction <add>, %259, %cst_150 [1] : vector<32x128xf32> to vector<32xf32>
    %263 = vector.shape_cast %262 : vector<32xf32> to vector<32x1xf32>
    %264 = arith.mulf %259, %259 : vector<32x128xf32>
    %cst_151 = arith.constant dense<0.000000e+00> : vector<32xf32>
    %265 = vector.multi_reduction <add>, %264, %cst_151 [1] : vector<32x128xf32> to vector<32xf32>
    %266 = vector.shape_cast %265 : vector<32xf32> to vector<32x1xf32>
    %cst_152 = arith.constant 3.125000e-02 : f32
    %267 = vector.broadcast %cst_152 : f32 to vector<32x1xf32>
    %268 = arith.mulf %263, %267 : vector<32x1xf32>
    %cst_153 = arith.constant 3.125000e-02 : f32
    %269 = vector.broadcast %cst_153 : f32 to vector<32x1xf32>
    %270 = arith.mulf %266, %269 : vector<32x1xf32>
    %271 = arith.mulf %268, %268 : vector<32x1xf32>
    %272 = arith.subf %270, %271 : vector<32x1xf32>
    %cst_154 = arith.constant 0.000000e+00 : f32
    %273 = vector.broadcast %cst_154 : f32 to vector<32x1xf32>
    %274 = arith.maximumf %272, %273 : vector<32x1xf32>
    %cst_155 = arith.constant 9.99999974E-6 : f32
    %275 = vector.broadcast %cst_155 : f32 to vector<32x1xf32>
    %276 = arith.addf %274, %275 : vector<32x1xf32>
    %277 = math.rsqrt %276 : vector<32x1xf32>
    %278 = arith.mulf %260, %277 : vector<32x1xf32>
    %279 = arith.mulf %268, %278 : vector<32x1xf32>
    %280 = arith.subf %261, %279 : vector<32x1xf32>
    %281 = vector.broadcast %278 : vector<32x1xf32> to vector<32x128xf32>
    %282 = arith.mulf %259, %281 : vector<32x128xf32>
    %283 = vector.broadcast %280 : vector<32x1xf32> to vector<32x128xf32>
    %284 = arith.addf %282, %283 : vector<32x128xf32>
    %cst_156 = arith.constant 0.000000e+00 : f32
    %285 = vector.broadcast %cst_156 : f32 to vector<32x128xf32>
    %286 = arith.maximumf %284, %285 : vector<32x128xf32>
    %287 = vector.broadcast %0 : vector<1x128xf32> to vector<32x128xf32>
    %288 = arith.mulf %286, %287 : vector<32x128xf32>
    %289 = arith.truncf %288 : vector<32x128xf32> to vector<32x128xbf16>
    %c0_157 = arith.constant 0 : index
    %c128_158 = arith.constant 128 : index
    %290 = vector.load %arg6[%c0_157, %c128_158] : memref<64x384xbf16, #tpu.memory_space<vmem>>, vector<32x128xbf16>
    tpu.vector_store %arg6[%c0_157, %c128_158], %289 {strides = array<i32>} : memref<64x384xbf16, #tpu.memory_space<vmem>>, vector<32x128xbf16>,
    %c0_159 = arith.constant 0 : index
    %c125_160 = arith.constant 125 : index
    %291 = vector.load %arg6[%c0_159, %c125_160] : memref<64x384xbf16, #tpu.memory_space<vmem>>, vector<32x128xbf16>
    %c672 = arith.constant 672 : index
    %c0_161 = arith.constant 0 : index
    %292 = vector.load %arg3[%c672, %c0_161] : memref<1584x64xbf16, #tpu.memory_space<vmem>>, vector<64x32xbf16>
    %cst_162 = arith.constant dense<0.000000e+00> : vector<64x128xf32>
    %293 = tpu.matmul %292, %291, %cst_162 {dimension_numbers = #tpu.dot_dimension_numbers<[1], [0], [0], [1], [0, 0, 1, 1], [], []>} : vector<64x32xbf16>, vector<32x128xbf16>, vector<64x128xf32> -> vector<64x128xf32>
    %c0_163 = arith.constant 0 : index
    %c126_164 = arith.constant 126 : index
    %294 = vector.load %arg6[%c0_163, %c126_164] : memref<64x384xbf16, #tpu.memory_space<vmem>>, vector<32x128xbf16>
    %c736 = arith.constant 736 : index
    %c0_165 = arith.constant 0 : index
    %295 = vector.load %arg3[%c736, %c0_165] : memref<1584x64xbf16, #tpu.memory_space<vmem>>, vector<64x32xbf16>
    %cst_166 = arith.constant dense<0.000000e+00> : vector<64x128xf32>
    %296 = tpu.matmul %295, %294, %cst_166 {dimension_numbers = #tpu.dot_dimension_numbers<[1], [0], [0], [1], [0, 0, 1, 1], [], []>} : vector<64x32xbf16>, vector<32x128xbf16>, vector<64x128xf32> -> vector<64x128xf32>
    %297 = arith.addf %293, %296 : vector<64x128xf32>
    %c0_167 = arith.constant 0 : index
    %c127_168 = arith.constant 127 : index
    %298 = vector.load %arg6[%c0_167, %c127_168] : memref<64x384xbf16, #tpu.memory_space<vmem>>, vector<32x128xbf16>
    %c800 = arith.constant 800 : index
    %c0_169 = arith.constant 0 : index
    %299 = vector.load %arg3[%c800, %c0_169] : memref<1584x64xbf16, #tpu.memory_space<vmem>>, vector<64x32xbf16>
    %cst_170 = arith.constant dense<0.000000e+00> : vector<64x128xf32>
    %300 = tpu.matmul %299, %298, %cst_170 {dimension_numbers = #tpu.dot_dimension_numbers<[1], [0], [0], [1], [0, 0, 1, 1], [], []>} : vector<64x32xbf16>, vector<32x128xbf16>, vector<64x128xf32> -> vector<64x128xf32>
    %301 = arith.addf %297, %300 : vector<64x128xf32>
    %c0_171 = arith.constant 0 : index
    %c128_172 = arith.constant 128 : index
    %302 = vector.load %arg6[%c0_171, %c128_172] : memref<64x384xbf16, #tpu.memory_space<vmem>>, vector<32x128xbf16>
    %c864 = arith.constant 864 : index
    %c0_173 = arith.constant 0 : index
    %303 = vector.load %arg3[%c864, %c0_173] : memref<1584x64xbf16, #tpu.memory_space<vmem>>, vector<64x32xbf16>
    %cst_174 = arith.constant dense<0.000000e+00> : vector<64x128xf32>
    %304 = tpu.matmul %303, %302, %cst_174 {dimension_numbers = #tpu.dot_dimension_numbers<[1], [0], [0], [1], [0, 0, 1, 1], [], []>} : vector<64x32xbf16>, vector<32x128xbf16>, vector<64x128xf32> -> vector<64x128xf32>
    %305 = arith.addf %301, %304 : vector<64x128xf32>
    %c0_175 = arith.constant 0 : index
    %c129_176 = arith.constant 129 : index
    %306 = vector.load %arg6[%c0_175, %c129_176] : memref<64x384xbf16, #tpu.memory_space<vmem>>, vector<32x128xbf16>
    %c928 = arith.constant 928 : index
    %c0_177 = arith.constant 0 : index
    %307 = vector.load %arg3[%c928, %c0_177] : memref<1584x64xbf16, #tpu.memory_space<vmem>>, vector<64x32xbf16>
    %cst_178 = arith.constant dense<0.000000e+00> : vector<64x128xf32>
    %308 = tpu.matmul %307, %306, %cst_178 {dimension_numbers = #tpu.dot_dimension_numbers<[1], [0], [0], [1], [0, 0, 1, 1], [], []>} : vector<64x32xbf16>, vector<32x128xbf16>, vector<64x128xf32> -> vector<64x128xf32>
    %309 = arith.addf %305, %308 : vector<64x128xf32>
    %c0_179 = arith.constant 0 : index
    %c130_180 = arith.constant 130 : index
    %310 = vector.load %arg6[%c0_179, %c130_180] : memref<64x384xbf16, #tpu.memory_space<vmem>>, vector<32x128xbf16>
    %c992 = arith.constant 992 : index
    %c0_181 = arith.constant 0 : index
    %311 = vector.load %arg3[%c992, %c0_181] : memref<1584x64xbf16, #tpu.memory_space<vmem>>, vector<64x32xbf16>
    %cst_182 = arith.constant dense<0.000000e+00> : vector<64x128xf32>
    %312 = tpu.matmul %311, %310, %cst_182 {dimension_numbers = #tpu.dot_dimension_numbers<[1], [0], [0], [1], [0, 0, 1, 1], [], []>} : vector<64x32xbf16>, vector<32x128xbf16>, vector<64x128xf32> -> vector<64x128xf32>
    %313 = arith.addf %309, %312 : vector<64x128xf32>
    %c0_183 = arith.constant 0 : index
    %c131_184 = arith.constant 131 : index
    %314 = vector.load %arg6[%c0_183, %c131_184] : memref<64x384xbf16, #tpu.memory_space<vmem>>, vector<32x128xbf16>
    %c1056 = arith.constant 1056 : index
    %c0_185 = arith.constant 0 : index
    %315 = vector.load %arg3[%c1056, %c0_185] : memref<1584x64xbf16, #tpu.memory_space<vmem>>, vector<64x32xbf16>
    %cst_186 = arith.constant dense<0.000000e+00> : vector<64x128xf32>
    %316 = tpu.matmul %315, %314, %cst_186 {dimension_numbers = #tpu.dot_dimension_numbers<[1], [0], [0], [1], [0, 0, 1, 1], [], []>} : vector<64x32xbf16>, vector<32x128xbf16>, vector<64x128xf32> -> vector<64x128xf32>
    %317 = arith.addf %313, %316 : vector<64x128xf32>
    %c0_187 = arith.constant 0 : index
    %c12 = arith.constant 12 : index
    %318 = vector.load %arg4[%c0_187, %c12] : memref<64x19xf32, #tpu.memory_space<vmem>>, vector<64x1xf32>
    %319 = vector.broadcast %318 : vector<64x1xf32> to vector<64x128xf32>
    %320 = arith.addf %317, %319 : vector<64x128xf32>
    %321 = vector.broadcast %0 : vector<1x128xf32> to vector<64x128xf32>
    %322 = arith.mulf %320, %321 : vector<64x128xf32>
    %c0_188 = arith.constant 0 : index
    %c13 = arith.constant 13 : index
    %323 = vector.load %arg4[%c0_188, %c13] : memref<64x19xf32, #tpu.memory_space<vmem>>, vector<64x1xf32>
    %c0_189 = arith.constant 0 : index
    %c14 = arith.constant 14 : index
    %324 = vector.load %arg4[%c0_189, %c14] : memref<64x19xf32, #tpu.memory_space<vmem>>, vector<64x1xf32>
    %cst_190 = arith.constant dense<0.000000e+00> : vector<64xf32>
    %325 = vector.multi_reduction <add>, %322, %cst_190 [1] : vector<64x128xf32> to vector<64xf32>
    %326 = vector.shape_cast %325 : vector<64xf32> to vector<64x1xf32>
    %327 = arith.mulf %322, %322 : vector<64x128xf32>
    %cst_191 = arith.constant dense<0.000000e+00> : vector<64xf32>
    %328 = vector.multi_reduction <add>, %327, %cst_191 [1] : vector<64x128xf32> to vector<64xf32>
    %329 = vector.shape_cast %328 : vector<64xf32> to vector<64x1xf32>
    %cst_192 = arith.constant 3.125000e-02 : f32
    %330 = vector.broadcast %cst_192 : f32 to vector<64x1xf32>
    %331 = arith.mulf %326, %330 : vector<64x1xf32>
    %cst_193 = arith.constant 3.125000e-02 : f32
    %332 = vector.broadcast %cst_193 : f32 to vector<64x1xf32>
    %333 = arith.mulf %329, %332 : vector<64x1xf32>
    %334 = arith.mulf %331, %331 : vector<64x1xf32>
    %335 = arith.subf %333, %334 : vector<64x1xf32>
    %cst_194 = arith.constant 0.000000e+00 : f32
    %336 = vector.broadcast %cst_194 : f32 to vector<64x1xf32>
    %337 = arith.maximumf %335, %336 : vector<64x1xf32>
    %cst_195 = arith.constant 9.99999974E-6 : f32
    %338 = vector.broadcast %cst_195 : f32 to vector<64x1xf32>
    %339 = arith.addf %337, %338 : vector<64x1xf32>
    %340 = math.rsqrt %339 : vector<64x1xf32>
    %341 = arith.mulf %323, %340 : vector<64x1xf32>
    %342 = arith.mulf %331, %341 : vector<64x1xf32>
    %343 = arith.subf %324, %342 : vector<64x1xf32>
    %344 = vector.broadcast %341 : vector<64x1xf32> to vector<64x128xf32>
    %345 = arith.mulf %322, %344 : vector<64x128xf32>
    %346 = vector.broadcast %343 : vector<64x1xf32> to vector<64x128xf32>
    %347 = arith.addf %345, %346 : vector<64x128xf32>
    %cst_196 = arith.constant 0.000000e+00 : f32
    %348 = vector.broadcast %cst_196 : f32 to vector<64x128xf32>
    %349 = arith.maximumf %347, %348 : vector<64x128xf32>
    %350 = vector.broadcast %0 : vector<1x128xf32> to vector<64x128xf32>
    %351 = arith.mulf %349, %350 : vector<64x128xf32>
    %352 = arith.truncf %351 : vector<64x128xf32> to vector<64x128xbf16>
    %c0_197 = arith.constant 0 : index
    %c128_198 = arith.constant 128 : index
    %353 = vector.load %arg6[%c0_197, %c128_198] : memref<64x384xbf16, #tpu.memory_space<vmem>>, vector<64x128xbf16>
    tpu.vector_store %arg6[%c0_197, %c128_198], %352 {strides = array<i32>} : memref<64x384xbf16, #tpu.memory_space<vmem>>, vector<64x128xbf16>,
    %c0_199 = arith.constant 0 : index
    %c125_200 = arith.constant 125 : index
    %354 = vector.load %arg6[%c0_199, %c125_200] : memref<64x384xbf16, #tpu.memory_space<vmem>>, vector<64x128xbf16>
    %c1120 = arith.constant 1120 : index
    %c0_201 = arith.constant 0 : index
    %355 = vector.load %arg3[%c1120, %c0_201] : memref<1584x64xbf16, #tpu.memory_space<vmem>>, vector<64x64xbf16>
    %cst_202 = arith.constant dense<0.000000e+00> : vector<64x128xf32>
    %356 = tpu.matmul %355, %354, %cst_202 {dimension_numbers = #tpu.dot_dimension_numbers<[1], [0], [0], [1], [0, 0, 1, 1], [], []>} : vector<64x64xbf16>, vector<64x128xbf16>, vector<64x128xf32> -> vector<64x128xf32>
    %c0_203 = arith.constant 0 : index
    %c126_204 = arith.constant 126 : index
    %357 = vector.load %arg6[%c0_203, %c126_204] : memref<64x384xbf16, #tpu.memory_space<vmem>>, vector<64x128xbf16>
    %c1184 = arith.constant 1184 : index
    %c0_205 = arith.constant 0 : index
    %358 = vector.load %arg3[%c1184, %c0_205] : memref<1584x64xbf16, #tpu.memory_space<vmem>>, vector<64x64xbf16>
    %cst_206 = arith.constant dense<0.000000e+00> : vector<64x128xf32>
    %359 = tpu.matmul %358, %357, %cst_206 {dimension_numbers = #tpu.dot_dimension_numbers<[1], [0], [0], [1], [0, 0, 1, 1], [], []>} : vector<64x64xbf16>, vector<64x128xbf16>, vector<64x128xf32> -> vector<64x128xf32>
    %360 = arith.addf %356, %359 : vector<64x128xf32>
    %c0_207 = arith.constant 0 : index
    %c127_208 = arith.constant 127 : index
    %361 = vector.load %arg6[%c0_207, %c127_208] : memref<64x384xbf16, #tpu.memory_space<vmem>>, vector<64x128xbf16>
    %c1248 = arith.constant 1248 : index
    %c0_209 = arith.constant 0 : index
    %362 = vector.load %arg3[%c1248, %c0_209] : memref<1584x64xbf16, #tpu.memory_space<vmem>>, vector<64x64xbf16>
    %cst_210 = arith.constant dense<0.000000e+00> : vector<64x128xf32>
    %363 = tpu.matmul %362, %361, %cst_210 {dimension_numbers = #tpu.dot_dimension_numbers<[1], [0], [0], [1], [0, 0, 1, 1], [], []>} : vector<64x64xbf16>, vector<64x128xbf16>, vector<64x128xf32> -> vector<64x128xf32>
    %364 = arith.addf %360, %363 : vector<64x128xf32>
    %c0_211 = arith.constant 0 : index
    %c128_212 = arith.constant 128 : index
    %365 = vector.load %arg6[%c0_211, %c128_212] : memref<64x384xbf16, #tpu.memory_space<vmem>>, vector<64x128xbf16>
    %c1312 = arith.constant 1312 : index
    %c0_213 = arith.constant 0 : index
    %366 = vector.load %arg3[%c1312, %c0_213] : memref<1584x64xbf16, #tpu.memory_space<vmem>>, vector<64x64xbf16>
    %cst_214 = arith.constant dense<0.000000e+00> : vector<64x128xf32>
    %367 = tpu.matmul %366, %365, %cst_214 {dimension_numbers = #tpu.dot_dimension_numbers<[1], [0], [0], [1], [0, 0, 1, 1], [], []>} : vector<64x64xbf16>, vector<64x128xbf16>, vector<64x128xf32> -> vector<64x128xf32>
    %368 = arith.addf %364, %367 : vector<64x128xf32>
    %c0_215 = arith.constant 0 : index
    %c129_216 = arith.constant 129 : index
    %369 = vector.load %arg6[%c0_215, %c129_216] : memref<64x384xbf16, #tpu.memory_space<vmem>>, vector<64x128xbf16>
    %c1376 = arith.constant 1376 : index
    %c0_217 = arith.constant 0 : index
    %370 = vector.load %arg3[%c1376, %c0_217] : memref<1584x64xbf16, #tpu.memory_space<vmem>>, vector<64x64xbf16>
    %cst_218 = arith.constant dense<0.000000e+00> : vector<64x128xf32>
    %371 = tpu.matmul %370, %369, %cst_218 {dimension_numbers = #tpu.dot_dimension_numbers<[1], [0], [0], [1], [0, 0, 1, 1], [], []>} : vector<64x64xbf16>, vector<64x128xbf16>, vector<64x128xf32> -> vector<64x128xf32>
    %372 = arith.addf %368, %371 : vector<64x128xf32>
    %c0_219 = arith.constant 0 : index
    %c130_220 = arith.constant 130 : index
    %373 = vector.load %arg6[%c0_219, %c130_220] : memref<64x384xbf16, #tpu.memory_space<vmem>>, vector<64x128xbf16>
    %c1440 = arith.constant 1440 : index
    %c0_221 = arith.constant 0 : index
    %374 = vector.load %arg3[%c1440, %c0_221] : memref<1584x64xbf16, #tpu.memory_space<vmem>>, vector<64x64xbf16>
    %cst_222 = arith.constant dense<0.000000e+00> : vector<64x128xf32>
    %375 = tpu.matmul %374, %373, %cst_222 {dimension_numbers = #tpu.dot_dimension_numbers<[1], [0], [0], [1], [0, 0, 1, 1], [], []>} : vector<64x64xbf16>, vector<64x128xbf16>, vector<64x128xf32> -> vector<64x128xf32>
    %376 = arith.addf %372, %375 : vector<64x128xf32>
    %c0_223 = arith.constant 0 : index
    %c131_224 = arith.constant 131 : index
    %377 = vector.load %arg6[%c0_223, %c131_224] : memref<64x384xbf16, #tpu.memory_space<vmem>>, vector<64x128xbf16>
    %c1504 = arith.constant 1504 : index
    %c0_225 = arith.constant 0 : index
    %378 = vector.load %arg3[%c1504, %c0_225] : memref<1584x64xbf16, #tpu.memory_space<vmem>>, vector<64x64xbf16>
    %cst_226 = arith.constant dense<0.000000e+00> : vector<64x128xf32>
    %379 = tpu.matmul %378, %377, %cst_226 {dimension_numbers = #tpu.dot_dimension_numbers<[1], [0], [0], [1], [0, 0, 1, 1], [], []>} : vector<64x64xbf16>, vector<64x128xbf16>, vector<64x128xf32> -> vector<64x128xf32>
    %380 = arith.addf %376, %379 : vector<64x128xf32>
    %c0_227 = arith.constant 0 : index
    %c15 = arith.constant 15 : index
    %381 = vector.load %arg4[%c0_227, %c15] : memref<64x19xf32, #tpu.memory_space<vmem>>, vector<64x1xf32>
    %382 = vector.broadcast %381 : vector<64x1xf32> to vector<64x128xf32>
    %383 = arith.addf %380, %382 : vector<64x128xf32>
    %384 = vector.broadcast %0 : vector<1x128xf32> to vector<64x128xf32>
    %385 = arith.mulf %383, %384 : vector<64x128xf32>
    %c0_228 = arith.constant 0 : index
    %c16_229 = arith.constant 16 : index
    %386 = vector.load %arg4[%c0_228, %c16_229] : memref<64x19xf32, #tpu.memory_space<vmem>>, vector<64x1xf32>
    %c0_230 = arith.constant 0 : index
    %c17 = arith.constant 17 : index
    %387 = vector.load %arg4[%c0_230, %c17] : memref<64x19xf32, #tpu.memory_space<vmem>>, vector<64x1xf32>
    %cst_231 = arith.constant dense<0.000000e+00> : vector<64xf32>
    %388 = vector.multi_reduction <add>, %385, %cst_231 [1] : vector<64x128xf32> to vector<64xf32>
    %389 = vector.shape_cast %388 : vector<64xf32> to vector<64x1xf32>
    %390 = arith.mulf %385, %385 : vector<64x128xf32>
    %cst_232 = arith.constant dense<0.000000e+00> : vector<64xf32>
    %391 = vector.multi_reduction <add>, %390, %cst_232 [1] : vector<64x128xf32> to vector<64xf32>
    %392 = vector.shape_cast %391 : vector<64xf32> to vector<64x1xf32>
    %cst_233 = arith.constant 3.125000e-02 : f32
    %393 = vector.broadcast %cst_233 : f32 to vector<64x1xf32>
    %394 = arith.mulf %389, %393 : vector<64x1xf32>
    %cst_234 = arith.constant 3.125000e-02 : f32
    %395 = vector.broadcast %cst_234 : f32 to vector<64x1xf32>
    %396 = arith.mulf %392, %395 : vector<64x1xf32>
    %397 = arith.mulf %394, %394 : vector<64x1xf32>
    %398 = arith.subf %396, %397 : vector<64x1xf32>
    %cst_235 = arith.constant 0.000000e+00 : f32
    %399 = vector.broadcast %cst_235 : f32 to vector<64x1xf32>
    %400 = arith.maximumf %398, %399 : vector<64x1xf32>
    %cst_236 = arith.constant 9.99999974E-6 : f32
    %401 = vector.broadcast %cst_236 : f32 to vector<64x1xf32>
    %402 = arith.addf %400, %401 : vector<64x1xf32>
    %403 = math.rsqrt %402 : vector<64x1xf32>
    %404 = arith.mulf %386, %403 : vector<64x1xf32>
    %405 = arith.mulf %394, %404 : vector<64x1xf32>
    %406 = arith.subf %387, %405 : vector<64x1xf32>
    %407 = vector.broadcast %404 : vector<64x1xf32> to vector<64x128xf32>
    %408 = arith.mulf %385, %407 : vector<64x128xf32>
    %409 = vector.broadcast %406 : vector<64x1xf32> to vector<64x128xf32>
    %410 = arith.addf %408, %409 : vector<64x128xf32>
    %cst_237 = arith.constant 0.000000e+00 : f32
    %411 = vector.broadcast %cst_237 : f32 to vector<64x128xf32>
    %412 = arith.maximumf %410, %411 : vector<64x128xf32>
    %413 = vector.extract_strided_slice %412 {offsets = [0, 3], sizes = [64, 16], strides = [1, 1]} : vector<64x128xf32> to vector<64x16xf32>
    %cst_238 = arith.constant dense<0.000000e+00> : vector<64xf32>
    %414 = vector.multi_reduction <add>, %413, %cst_238 [1] : vector<64x16xf32> to vector<64xf32>
    %415 = vector.shape_cast %414 : vector<64xf32> to vector<64x1xf32>
    %416 = vector.extract_strided_slice %412 {offsets = [0, 25], sizes = [64, 16], strides = [1, 1]} : vector<64x128xf32> to vector<64x16xf32>
    %cst_239 = arith.constant dense<0.000000e+00> : vector<64xf32>
    %417 = vector.multi_reduction <add>, %416, %cst_239 [1] : vector<64x16xf32> to vector<64xf32>
    %418 = vector.shape_cast %417 : vector<64xf32> to vector<64x1xf32>
    %419 = tpu.concatenate %415, %418 in 1 : vector<64x1xf32>, vector<64x1xf32> -> vector<64x2xf32>
    %cst_240 = arith.constant 6.250000e-02 : f32
    %420 = vector.broadcast %cst_240 : f32 to vector<64x2xf32>
    %421 = arith.mulf %419, %420 : vector<64x2xf32>
    %c1568 = arith.constant 1568 : index
    %c0_241 = arith.constant 0 : index
    %422 = vector.load %arg3[%c1568, %c0_241] : memref<1584x64xbf16, #tpu.memory_space<vmem>>, vector<5x64xbf16>
    %c0_242 = arith.constant 0 : index
    %c18 = arith.constant 18 : index
    %423 = vector.load %arg4[%c0_242, %c18] : memref<64x19xf32, #tpu.memory_space<vmem>>, vector<5x1xf32>
    %424 = arith.truncf %421 : vector<64x2xf32> to vector<64x2xbf16>
    %cst_243 = arith.constant dense<0.000000e+00> : vector<5x2xf32>
    %425 = tpu.matmul %422, %424, %cst_243 {dimension_numbers = #tpu.dot_dimension_numbers<[1], [0], [0], [1], [0, 0, 1, 1], [], []>} : vector<5x64xbf16>, vector<64x2xbf16>, vector<5x2xf32> -> vector<5x2xf32>
    %426 = vector.broadcast %423 : vector<5x1xf32> to vector<5x2xf32>
    %427 = arith.addf %425, %426 : vector<5x2xf32>
    %c0_244 = arith.constant 0 : index
    %c0_245 = arith.constant 0 : index
    %428 = vector.load %arg5[%c0_244, %c0_245] : memref<5x2xf32, #tpu.memory_space<vmem>>, vector<5x2xf32>
    tpu.vector_store %arg5[%c0_244, %c0_245], %427 {strides = array<i32>} : memref<5x2xf32, #tpu.memory_space<vmem>>, vector<5x2xf32>,
    return
  }
  func.func @transform_0(%arg0: i32) -> (i32, i32) {
    %c0_i32 = arith.constant 0 : i32
    %c0_i32_0 = arith.constant 0 : i32
    %c0_i32_1 = arith.constant 0 : i32
    return %c0_i32, %c0_i32_0 : i32, i32
  }
  func.func @transform_1(%arg0: i32) -> (i32, i32) {
    %c0_i32 = arith.constant 0 : i32
    %c0_i32_0 = arith.constant 0 : i32
    %c0_i32_1 = arith.constant 0 : i32
    return %c0_i32, %c0_i32_0 : i32, i32
  }
  func.func @transform_2(%arg0: i32) -> (i32, i32) {
    %c0_i32 = arith.constant 0 : i32
    %c0_i32_0 = arith.constant 0 : i32
    %c0_i32_1 = arith.constant 0 : i32
    return %c0_i32, %c0_i32_0 : i32, i32
  }
  func.func @transform_3(%arg0: i32) -> (i32, i32) {
    %c0_i32 = arith.constant 0 : i32
    %c0_i32_0 = arith.constant 0 : i32
    %c0_i32_1 = arith.constant 0 : i32
    return %c0_i32, %c0_i32_0 : i32, i32
  }
  func.func @transform_4(%arg0: i32) -> (i32, i32) {
    %c0_i32 = arith.constant 0 : i32
    %c0_i32_0 = arith.constant 0 : i32
    %c0_i32_1 = arith.constant 0 : i32
    return %c0_i32, %c0_i32_0 : i32, i32
  }
}

</mosaic_0001>

<bundles_post_ra>
// kernel: tpu_custom_call.1
= control target key start
LH: loop header
LB: loop body
LE: loop exit
PB: predicated region body
PF: predicated region fallthrough
CT: control target
= control target key end

     0   :  { %v6230_v0 = vmov 0   ;;  %vm30_vm0 = vcmask 1040384   ;;  %vm31_vm1 = vsmask.f32 256  ;;  %v33_v27 = vld [vmem:[#allocation2 + $0x8] sm:$0x1]  ;;  %v54_v37 = vlaneseq  ;;  %s7655_s2 = inlined_call_operand.vmem [shape: bf16[1584,64], index: 2, kind: input, shape index: {}]   ;;  %s7656_s1 = inlined_call_operand.vmem [shape: f32[1,128], index: 1, kind: input, shape index: {}]   ;;  %s7657_s0 = inlined_call_operand.vmem [shape: f32[1,128], index: 0, kind: input, shape index: {}]   ;;  %s7658_s3 = inlined_call_operand.vmem [shape: f32[64,19], index: 3, kind: input, shape index: {}]   ;;  %s7659_s4 = inlined_call_operand.vmem [shape: f32[5,2], index: 4, kind: output, shape index: {}]  }
   0x1   :  { %6003 = vset.pattern.permute.xlu0 %v6230_v0  ;;  %19 = vst [vmem:[#allocation2] sm:$0xff] %v6230_v0  ;;  %23 = vst [vmem:[#allocation2 + $0x10] sm:$0xff] %v6230_v0  ;;  %v5308_v1 = vld [vmem:[%s7655_s2 + $0x8] sm:$0xff]   ;;  %6014 = vset.pattern.permute.xlu1 %v6230_v0  ;;  %v5310_v2 = vld [vmem:[%s7655_s2 + $0x18] sm:$0xff]   ;;  %s6231_s10 = smov 127   ;;  %s6232_s11 = smov 126  }
   0x2   :  { %v5309_v3 = vld [vmem:[%s7655_s2 + $0x10] sm:$0xff]   ;;  %v5286_v4 = vunpack.c.l.bf16 %v5308_v1  ;;  %v5287_v5 = vunpack.c.h.bf16 %v5308_v1  ;;  %v5294_v6 = vunpack.c.l.bf16 %v5310_v2  ;;  %v5295_v7 = vunpack.c.h.bf16 %v5310_v2  ;;  %v5311_v8 = vld [vmem:[%s7655_s2 + $0x20] sm:$0xff]   ;;  %v5312_v9 = vld [vmem:[%s7655_s2 + $0x28] sm:$0xff]   ;;  %s6233_s12 = smov 125   ;;  %s6234_s13 = smov 124  }
   0x3   :  { %v5290_v10 = vunpack.c.l.bf16 %v5309_v3  ;;  %v5291_v11 = vunpack.c.h.bf16 %v5309_v3  ;;  %v5298_v12 = vunpack.c.l.bf16 %v5311_v8  ;;  %v5299_v13 = vunpack.c.h.bf16 %v5311_v8  ;;  %v5313_v14 = vld [vmem:[%s7655_s2 + $0x30] sm:$0xff]   ;;  %v6311_v17 = vld [vmem:[%s7656_s1] sm:$0x1]  ;;  %vm32_vm2 = vmand %vm30_vm0, %vm31_vm1  ;;  %s6235_s14 = smov 123   ;;  %s6236_s15 = smov 122  }
   0x4   :  { %v6004_v15 = vpack.i.bf16 %v5287_v5, %v5286_v4  ;;  %v6015_v16 = vpack.i.bf16 %v5295_v7, %v5294_v6  ;;  %v27_v18 = vld [vmem:[%s7657_s0] sm:$0x1]  ;;  %v5302_v19 = vunpack.c.l.bf16 %v5312_v9  ;;  %v5303_v20 = vunpack.c.h.bf16 %v5312_v9  ;;  %v6330_v36 = vld [vmem:[%s7658_s3 + $0x8] sm:$0xff]  ;;  %s6237_s16 = smov 3   ;;  %s6240_s17 = smov 1  }
   0x5   :  { %v6009_v21 = vpack.i.bf16 %v5291_v11, %v5290_v10  ;;  %v6020_v22 = vpack.i.bf16 %v5299_v13, %v5298_v12  ;;  %v5306_v23 = vunpack.c.l.bf16 %v5313_v14  ;;  %v5307_v24 = vunpack.c.h.bf16 %v5313_v14  ;;  %v5281_v25 = vld [vmem:[%s7655_s2] sm:$0xff]   ;;  %s6241_s18 = smov 2  }
   0x6   :  { %6005 = vperm.xlu0 %6003, %v6004_v15   ;;  %6016 = vperm.xlu1 %6014, %v6015_v16   ;;  %v28_v26 = vmul.f32 %v27_v18, %v6311_v17  ;;  %v6025_v29 = vpack.i.bf16 %v5303_v20, %v5302_v19  ;;  %v5282_v31 = vunpack.c.l.bf16 %v5281_v25  ;;  %v5283_v32 = vunpack.c.h.bf16 %v5281_v25  ;;  %v6324_v34 = vld [vmem:[%s7658_s3] sm:$0xff] }
   0x7   :  { %v6030_v30 = vpack.i.bf16 %v5307_v24, %v5306_v23  ;;  %v55_v38 = vshrl.u32 %v54_v37, 7  ;;  %vm96_vm3 = vcmask 1039360   ;;  %vm137_vm4 = vcmask 1031168  }
   0x8   :  { %v29_v28 = vpack.c.bf16 %v28_v26, %v28_v26  ;;  %v6035_v35 = vpack.i.bf16 %v5283_v32, %v5282_v31  ;;  %v36_v39 = vld [vmem:[#allocation2] sm:$0x1]  ;;  %v177_v62 = vld [vmem:[#allocation2 + $0x10] sm:$0x1]  ;;  %vm218_vm5 = vcmask 1014784   ;;  %vm259_vm6 = vcmask 1006592  }
   0x9   :  { %v42_v41 = vunpack.c.l.bf16 %v36_v39  ;;  %v6333_v42 = vsub.s32 0, %v55_v38  ;;  %v183_v5 = vunpack.c.l.bf16 %v177_v62  ;;  %vm300_vm7 = vcmask 998400  }
   0xa   :  { %6010 = vperm.xlu0 %6003, %v6009_v21   ;;  %6021 = vperm.xlu1 %6014, %v6020_v22   ;;  %v34_v33 = vsel %vm32_vm2, %v29_v28, %v33_v27  ;;  %vm352_vm8 = vcmask 23552   ;;  %vm6243_vm9 = vmmov 0   ;;  %vm478_vm10 = vcmask 15360  }
   0xb   :  { %35 = vst [vmem:[#allocation2 + $0x8] sm:$0x1] %v34_v33  ;;  %v6336_v44 = vrot.slane %v42_v41, %v6333_v42  ;;  %v201_v9 = vrot.slane %v183_v5, %v6333_v42  ;;  %vm481_vm11 = vcmask 130048   ;;  %vm592_vm12 = vcmask 7168  }
   0xc   :  { %vm829_vm13 = vcmask 1022976   ;;  %vm1723_vm14 = vcmask 261120   ;;  %vm3720_vm15 = vcmask 523264   ;;  %vm5091_vm0 = vcmask 12288  }
   0xe   :  { %6026 = vperm.xlu0 %6003, %v6025_v29   ;;  %6031 = vperm.xlu1 %6014, %v6030_v30   ;;  %v6365_v30 = vrot.slane %v6311_v17, %v6333_v42 }
  0x12   :  { %6036 = vperm.xlu0 %6003, %v6035_v35   ;;  %315 = vperm.xlu1 %6014, %v6324_v34   ;;  %v37_v40 = vld [vmem:[#allocation2 + $0x8] sm:$0x1] }
  0x13   :  { %v43_v43 = vunpack.c.l.bf16 %v37_v40  ;;  %v176_v61 = vld [vmem:[#allocation2 + $0x8] sm:$0x1] }
  0x14   :  { %v182_v4 = vunpack.c.l.bf16 %v176_v61 }
  0x15   :  { %v6339_v45 = vrot.slane %v43_v43, %v6333_v42 }
  0x16   :  { %320 = vperm.xlu0 %6003, %v6330_v36   ;;  %v197_v8 = vrot.slane %v182_v4, %v6333_v42 }
  0x85   :  { %v6006_v46 = vpop.permute.xlu0 %6005  ;;  %v6017_v58 = vpop.permute.xlu1 %6016 }
  0x86   :  { %v6007_v47 = vunpack.i.l.bf16 %v6006_v46  ;;  %v6008_v48 = vunpack.i.h.bf16 %v6006_v46  ;;  %v6019_v59 = vunpack.i.h.bf16 %v6017_v58  ;;  %v6018_v60 = vunpack.i.l.bf16 %v6017_v58 }
  0x88   :  { %v80_v49 = vmul.f32 %v6007_v47, %v6336_v44  ;;  %v81_v50 = vmul.f32 %v6007_v47, %v6339_v45  ;;  %v82_v53 = vmul.f32 %v6008_v48, %v6336_v44  ;;  %v83_v54 = vmul.f32 %v6008_v48, %v6339_v45 }
  0x89   :  { %v6011_v51 = vpop.permute.xlu0 %6010  ;;  %v162_v2 = vmul.f32 %v6018_v60, %v6339_v45  ;;  %v163_v3 = vmul.f32 %v6019_v59, %v6339_v45  ;;  %v6022_v6 = vpop.permute.xlu1 %6021 }
  0x8a   :  { %88 = vrot.lane.b32.xlu1 %v80_v49, %s6231_s10  ;;  %90 = vrot.lane.b32.xlu0 %v81_v50, %s6231_s10  ;;  %v6012_v52 = vunpack.i.l.bf16 %v6011_v51  ;;  %v6013_v55 = vunpack.i.h.bf16 %v6011_v51  ;;  %v6023_v7 = vunpack.i.l.bf16 %v6022_v6  ;;  %v6024_v10 = vunpack.i.h.bf16 %v6022_v6 }
  0x8c   :  { %v121_v56 = vmul.f32 %v6012_v52, %v6336_v44  ;;  %v122_v57 = vmul.f32 %v6012_v52, %v6339_v45  ;;  %v123_v63 = vmul.f32 %v6013_v55, %v6336_v44  ;;  %v124_v1 = vmul.f32 %v6013_v55, %v6339_v45 }
  0x8d   :  { %v202_v11 = vmul.f32 %v6023_v7, %v197_v8  ;;  %v203_v12 = vmul.f32 %v6023_v7, %v201_v9  ;;  %v6027_v13 = vpop.permute.xlu0 %6026  ;;  %v204_v15 = vmul.f32 %v6024_v10, %v197_v8  ;;  %v205_v16 = vmul.f32 %v6024_v10, %v201_v9  ;;  %v6032_v21 = vpop.permute.xlu1 %6031 }
  0x8e   :  { %92 = vrot.lane.b32.xlu1 %v82_v53, %s6231_s10  ;;  %94 = vrot.lane.b32.xlu0 %v83_v54, %s6231_s10  ;;  %v6028_v14 = vunpack.i.l.bf16 %v6027_v13  ;;  %v6029_v18 = vunpack.i.h.bf16 %v6027_v13  ;;  %v6033_v22 = vunpack.i.l.bf16 %v6032_v21  ;;  %v6034_v25 = vunpack.i.h.bf16 %v6032_v21 }
  0x90   :  { %v243_v19 = vmul.f32 %v6028_v14, %v197_v8  ;;  %v244_v20 = vmul.f32 %v6028_v14, %v201_v9  ;;  %v245_v23 = vmul.f32 %v6029_v18, %v197_v8  ;;  %v246_v24 = vmul.f32 %v6029_v18, %v201_v9 }
  0x91   :  { %v284_v26 = vmul.f32 %v6033_v22, %v197_v8  ;;  %v285_v27 = vmul.f32 %v6033_v22, %v201_v9  ;;  %v286_v28 = vmul.f32 %v6034_v25, %v197_v8  ;;  %v287_v29 = vmul.f32 %v6034_v25, %v201_v9  ;;  %v6037_v31 = vpop.permute.xlu0 %6036  ;;  %v6369_v32 = vpop.permute.xlu1 %315 }
  0x92   :  { %129 = vrot.lane.b32.xlu1 %v121_v56, %s6232_s11  ;;  %131 = vrot.lane.b32.xlu0 %v122_v57, %s6232_s11  ;;  %v6039_v49 = vunpack.i.h.bf16 %v6037_v31  ;;  %v6038_v50 = vunpack.i.l.bf16 %v6037_v31 }
  0x94   :  { %v64_v54 = vmul.f32 %v6039_v49, %v6336_v44  ;;  %v62_v56 = vmul.f32 %v6038_v50, %v6336_v44  ;;  %v63_v57 = vmul.f32 %v6038_v50, %v6339_v45 }
  0x95   :  { %v6371_v33 = vpop.permute.xlu0 %320 }
  0x96   :  { %133 = vrot.lane.b32.xlu1 %v123_v63, %s6232_s11  ;;  %135 = vrot.lane.b32.xlu0 %v124_v1, %s6232_s11 }
  0x9a   :  { %166 = vrot.lane.b32.xlu1 %v162_v2, %s6233_s12  ;;  %168 = vrot.lane.b32.xlu0 %v163_v3, %s6233_s12  ;;  %v65_v2 = vmul.f32 %v6039_v49, %v6339_v45 }
  0x9e   :  { %210 = vrot.lane.b32.xlu1 %v202_v11, %s6234_s13  ;;  %212 = vrot.lane.b32.xlu0 %v203_v12, %s6234_s13 }
  0xa2   :  { %214 = vrot.lane.b32.xlu1 %v204_v15, %s6234_s13  ;;  %216 = vrot.lane.b32.xlu0 %v205_v16, %s6234_s13 }
  0xa6   :  { %251 = vrot.lane.b32.xlu1 %v243_v19, %s6235_s14  ;;  %253 = vrot.lane.b32.xlu0 %v244_v20, %s6235_s14 }
  0xaa   :  { %255 = vrot.lane.b32.xlu1 %v245_v23, %s6235_s14  ;;  %257 = vrot.lane.b32.xlu0 %v246_v24, %s6235_s14 }
  0xae   :  { %292 = vrot.lane.b32.xlu1 %v284_v26, %s6236_s15  ;;  %294 = vrot.lane.b32.xlu0 %v285_v27, %s6236_s15 }
  0xb2   :  { %296 = vrot.lane.b32.xlu1 %v286_v28, %s6236_s15  ;;  %298 = vrot.lane.b32.xlu0 %v287_v29, %s6236_s15 }
  0xb6   :  { %333 = vrot.lane.b32.xlu1 %v6365_v30, %s6233_s12 }
  0xfc   :  { %v89_v35 = vpop.permute.xlu1 %88  ;;  %v91_v37 = vpop.permute.xlu0 %90 }
  0xfd   :  { %v97_v55 = vsel %vm96_vm3, %v89_v35, %v91_v37  ;;  %v104_v1 = vadd.f32 %v91_v37, %v63_v57 }
  0xfe   :  { %v103_v63 = vadd.f32 %v97_v55, %v62_v56 }
 0x100   :  { %v93_v38 = vpop.permute.xlu1 %92  ;;  %v95_v39 = vpop.permute.xlu0 %94 }
 0x101   :  { %v98_v53 = vsel %vm96_vm3, %v93_v38, %v95_v39  ;;  %v106_v6 = vadd.f32 %v95_v39, %v65_v2 }
 0x102   :  { %v105_v59 = vadd.f32 %v98_v53, %v64_v54 }
 0x104   :  { %v130_v40 = vpop.permute.xlu1 %129  ;;  %v132_v41 = vpop.permute.xlu0 %131 }
 0x105   :  { %v138_v60 = vsel %vm137_vm4, %v130_v40, %v132_v41  ;;  %v145_v5 = vadd.f32 %v132_v41, %v104_v1  ;;  %v6238_v1 = vmov 1  }
 0x106   :  { %v144_v4 = vadd.f32 %v138_v60, %v103_v63  ;;  %6040 = vset.pattern.permute.xlu1 %v6238_v1 }
 0x108   :  { %v134_v43 = vpop.permute.xlu1 %133  ;;  %v136_v46 = vpop.permute.xlu0 %135 }
 0x109   :  { %v139_v58 = vsel %vm137_vm4, %v134_v43, %v136_v46  ;;  %v147_v11 = vadd.f32 %v136_v46, %v106_v6 }
 0x10a   :  { %v146_v3 = vadd.f32 %v139_v58, %v105_v59 }
 0x10c   :  { %v167_v17 = vpop.permute.xlu1 %166  ;;  %v169_v42 = vpop.permute.xlu0 %168 }
 0x10d   :  { %v172_v9 = vadd.f32 %v167_v17, %v144_v4  ;;  %v173_v10 = vadd.f32 %v167_v17, %v145_v5  ;;  %v174_v12 = vadd.f32 %v169_v42, %v146_v3  ;;  %v175_v16 = vadd.f32 %v169_v42, %v147_v11 }
 0x110   :  { %v211_v47 = vpop.permute.xlu1 %210  ;;  %v213_v48 = vpop.permute.xlu0 %212 }
 0x111   :  { %v219_v44 = vsel %vm218_vm5, %v211_v47, %v213_v48  ;;  %v225_v14 = vadd.f32 %v211_v47, %v172_v9 }
 0x112   :  { %v226_v15 = vadd.f32 %v219_v44, %v173_v10 }
 0x114   :  { %v215_v51 = vpop.permute.xlu1 %214  ;;  %v217_v52 = vpop.permute.xlu0 %216 }
 0x115   :  { %v220_v45 = vsel %vm218_vm5, %v215_v51, %v217_v52  ;;  %v227_v18 = vadd.f32 %v215_v51, %v174_v12 }
 0x116   :  { %v228_v25 = vadd.f32 %v220_v45, %v175_v16  ;;  %v6239_v16 = vmov 2  }
 0x117   :  { %6041 = vset.pattern.permute.xlu0 %v6239_v16 }
 0x118   :  { %v252_v61 = vpop.permute.xlu1 %251  ;;  %v254_v62 = vpop.permute.xlu0 %253 }
 0x119   :  { %v260_v13 = vsel %vm259_vm6, %v252_v61, %v254_v62  ;;  %v266_v21 = vadd.f32 %v252_v61, %v225_v14 }
 0x11a   :  { %v267_v22 = vadd.f32 %v260_v13, %v226_v15 }
 0x11c   :  { %v256_v7 = vpop.permute.xlu1 %255  ;;  %v258_v8 = vpop.permute.xlu0 %257 }
 0x11d   :  { %v261_v23 = vsel %vm259_vm6, %v256_v7, %v258_v8  ;;  %v268_v26 = vadd.f32 %v256_v7, %v227_v18 }
 0x11e   :  { %v269_v29 = vadd.f32 %v261_v23, %v228_v25 }
 0x120   :  { %v293_v19 = vpop.permute.xlu1 %292  ;;  %v295_v20 = vpop.permute.xlu0 %294 }
 0x121   :  { %v301_v24 = vsel %vm300_vm7, %v293_v19, %v295_v20  ;;  %v307_v27 = vadd.f32 %v293_v19, %v266_v21 }
 0x122   :  { %v308_v28 = vadd.f32 %v301_v24, %v267_v22 }
 0x123   :  { %v323_v40 = vadd.f32 %v6369_v32, %v307_v27 }
 0x124   :  { %v297_v31 = vpop.permute.xlu1 %296  ;;  %v299_v35 = vpop.permute.xlu0 %298  ;;  %v324_v41 = vadd.f32 %v6369_v32, %v308_v28 }
 0x125   :  { %v309_v37 = vadd.f32 %v297_v31, %v268_v26  ;;  %v302_v38 = vsel %vm300_vm7, %v297_v31, %v299_v35 }
 0x126   :  { %v310_v39 = vadd.f32 %v302_v38, %v269_v29 }
 0x127   :  { %v325_v46 = vadd.f32 %v6371_v33, %v309_v37 }
 0x128   :  { %v6389_v43 = vpop.permute.xlu1 %333  ;;  %v326_v17 = vadd.f32 %v6371_v33, %v310_v39 }
 0x129   :  { %v6394_v42 = vmul.f32 %v6389_v43, %v323_v40  ;;  %v6397_v47 = vmul.f32 %v6389_v43, %v324_v41  ;;  %v6404_v32 = vmul.f32 %v6389_v43, %v325_v46 }
 0x12a   :  { %v6407_v48 = vmul.f32 %v6389_v43, %v326_v17 }
 0x12b   :  { %344 = vrot.lane.b32.xlu0 %v6394_v42, %s6237_s16  ;;  %346 = vrot.lane.b32.xlu1 %v6397_v47, %s6237_s16  ;;  %v361_v33 = vmul.f32 %v6394_v42, %v6394_v42  ;;  %v362_v49 = vmul.f32 %v6397_v47, %v6397_v47  ;;  %v363_v50 = vmul.f32 %v6404_v32, %v6404_v32 }
 0x12c   :  { %v364_v51 = vmul.f32 %v6407_v48, %v6407_v48 }
 0x12f   :  { %348 = vrot.lane.b32.xlu0 %v6404_v32, %s6237_s16  ;;  %350 = vrot.lane.b32.xlu1 %v6407_v48, %s6237_s16 }
 0x133   :  { %369 = vrot.lane.b32.xlu0 %v361_v33, %s6237_s16  ;;  %371 = vrot.lane.b32.xlu1 %v362_v49, %s6237_s16 }
 0x137   :  { %373 = vrot.lane.b32.xlu0 %v363_v50, %s6237_s16  ;;  %375 = vrot.lane.b32.xlu1 %v364_v51, %s6237_s16 }
 0x19d   :  { %v345_v52 = vpop.permute.xlu0 %344  ;;  %v347_v53 = vpop.permute.xlu1 %346 }
 0x19e   :  { %v353_v54 = vsel %vm352_vm8, %v345_v52, %v347_v53 }
 0x19f   :  { %357 = vadd.xlane.f32.xlu0 %v353_v54 }
 0x1a1   :  { %v349_v55 = vpop.permute.xlu0 %348  ;;  %v351_v56 = vpop.permute.xlu1 %350 }
 0x1a2   :  { %v354_v57 = vsel %vm352_vm8, %v349_v55, %v351_v56 }
 0x1a3   :  { %359 = vadd.xlane.f32.xlu1 %v354_v57 }
 0x1a5   :  { %v370_v58 = vpop.permute.xlu0 %369  ;;  %v372_v59 = vpop.permute.xlu1 %371 }
 0x1a6   :  { %v377_v60 = vsel %vm352_vm8, %v370_v58, %v372_v59  ;;  %v6244_v58 = vmov 3  }
 0x1a7   :  { %381 = vadd.xlane.f32.xlu0 %v377_v60 }
 0x1a9   :  { %v374_v61 = vpop.permute.xlu0 %373  ;;  %v376_v62 = vpop.permute.xlu1 %375 }
 0x1aa   :  { %v378_v63 = vsel %vm352_vm8, %v374_v61, %v376_v62 }
 0x1ab   :  { %383 = vadd.xlane.f32.xlu0 %v378_v63  ;;  %v6077_v63 = vld [vmem:[%s7655_s2 + $0x40] sm:$0xff]  }
 0x22c   :  { %v358_v2 = vpop.xlane.xlu0 %357 }
 0x22d   :  { %v385_v3 = vmul.f32 0.03125, %v358_v2  ;;  %v6078_v2 = vld [vmem:[%s7655_s2 + $0x38] sm:$0xff]  }
 0x22f   :  { %v389_v6 = vmul.f32 %v385_v3, %v385_v3 }
 0x230   :  { %v360_v4 = vpop.xlane.xlu1 %359 }
 0x231   :  { %v386_v44 = vmul.f32 0.03125, %v360_v4 }
 0x233   :  { %v390_v10 = vmul.f32 %v386_v44, %v386_v44 }
 0x234   :  { %v382_v5 = vpop.xlane.xlu0 %381 }
 0x235   :  { %v387_v7 = vmul.f32 0.03125, %v382_v5 }
 0x237   :  { %v391_v8 = vsub.f32 %v387_v7, %v389_v6  ;;  %v6079_v6 = vld [vmem:[%s7655_s2 + $0x48] sm:$0xff]  }
 0x238   :  { %v384_v9 = vpop.xlane.xlu0 %383 }
 0x239   :  { %v393_v11 = vmax.f32 %v391_v8, 0.0  ;;  %v388_v12 = vmul.f32 0.03125, %v384_v9  ;;  %v6080_v8 = vld [vmem:[%s7655_s2 + $0x50] sm:$0xff]  }
 0x23b   :  { %v395_v13 = vadd.f32 1e-05, %v393_v11  ;;  %v392_v14 = vsub.f32 %v388_v12, %v390_v10  ;;  %v6081_v12 = vld [vmem:[%s7655_s2 + $0x58] sm:$0xff]  }
 0x23d   :  { %6168 = vrsqrt.f32 %v395_v13  ;;  %v394_v15 = vmax.f32 %v392_v14, 0.0 }
 0x23f   :  { %v396_v45 = vadd.f32 1e-05, %v394_v15 }
 0x241   :  { %6170 = vrsqrt.f32 %v396_v45  ;;  %v6082_v45 = vld [vmem:[%s7655_s2 + $0x60] sm:$0xff]  }
 0x247   :  { %v6169_v18 = vpop.eup %6168 }
 0x248   :  { %v399_v19 = vmul.f32 %v6169_v18, %v6324_v34 }
 0x24a   :  { %v401_v20 = vmul.f32 %v399_v19, %v385_v3 }
 0x24b   :  { %v6171_v21 = vpop.eup %6170 }
 0x24c   :  { %405 = vrot.lane.b32.xlu1 %v401_v20, %s6240_s17  ;;  %v400_v22 = vmul.f32 %v6171_v21, %v6330_v36 }
 0x24e   :  { %v402_v23 = vmul.f32 %v400_v22, %v386_v44 }
 0x250   :  { %415 = vperm.xlu1 %6040, %v399_v19   ;;  %407 = vrot.lane.b32.xlu0 %v402_v23, %s6240_s17 }
 0x254   :  { %420 = vperm.xlu1 %6040, %v400_v22  }
 0x258   :  { %6042 = vset.pattern.permute.xlu1 %v6239_v16  ;;  %v6083_v16 = vld [vmem:[%s7655_s2 + $0x68] sm:$0xff]  }
 0x2be   :  { %v406_v24 = vpop.permute.xlu1 %405 }
 0x2bf   :  { %v411_v25 = vsub.f32 %v6324_v34, %v406_v24 }
 0x2c1   :  { %429 = vperm.xlu0 %6041, %v411_v25  }
 0x2c2   :  { %v408_v26 = vpop.permute.xlu0 %407 }
 0x2c3   :  { %v412_v27 = vsub.f32 %v6330_v36, %v408_v26 }
 0x2c5   :  { %434 = vperm.xlu1 %6042, %v412_v27   ;;  %6044 = vset.pattern.permute.xlu0 %v6244_v58 }
 0x2c9   :  { %6043 = vset.pattern.permute.xlu1 %v6244_v58 }
 0x2cf   :  { %v416_v28 = vpop.permute.xlu1 %415 }
 0x2d0   :  { %v423_v29 = vmul.f32 %v416_v28, %v6394_v42  ;;  %v424_v31 = vmul.f32 %v416_v28, %v6397_v47 }
 0x2d3   :  { %v421_v35 = vpop.permute.xlu1 %420 }
 0x2d4   :  { %v425_v40 = vmul.f32 %v421_v35, %v6404_v32  ;;  %v426_v41 = vmul.f32 %v421_v35, %v6407_v48  ;;  %v6242_v32 = vmov 0.0  }
 0x2d5   :  { %5480 = vmatprep.subr.bf16.mxu0 %v6242_v32  ;;  %5486 = vmatprep.subr.bf16.mxu1 %v6242_v32 }
 0x2d6   :  { %5482 = vmatprep.mubr.msk.bf16.mxu0 %vm6243_vm9, %v6242_v32  ;;  %5488 = vmatprep.mubr.msk.bf16.mxu1 %vm6243_vm9, %v6242_v32 }
 0x340   :  { %v430_v37 = vpop.permute.xlu0 %429 }
 0x341   :  { %v437_v38 = vadd.f32 %v430_v37, %v423_v29  ;;  %v438_v39 = vadd.f32 %v430_v37, %v424_v31 }
 0x343   :  { %v441_v17 = vmax.f32 %v437_v38, 0.0  ;;  %v442_v33 = vmax.f32 %v438_v39, 0.0 }
 0x344   :  { %v435_v46 = vpop.permute.xlu1 %434 }
 0x345   :  { %v439_v49 = vadd.f32 %v435_v46, %v425_v40  ;;  %v440_v50 = vadd.f32 %v435_v46, %v426_v41  ;;  %v446_v53 = vmul.f32 %v442_v33, %v6389_v43  ;;  %v445_v47 = vmul.f32 %v441_v17, %v6389_v43 }
 0x347   :  { %v443_v51 = vmax.f32 %v439_v49, 0.0  ;;  %v444_v52 = vmax.f32 %v440_v50, 0.0 }
 0x349   :  { %v448_v42 = vmul.f32 %v444_v52, %v6389_v43  ;;  %v447_v54 = vmul.f32 %v443_v51, %v6389_v43 }
 0x34b   :  { %v450_v55 = vpack.c.bf16 %v448_v42, %v446_v53  ;;  %v449_v56 = vpack.c.bf16 %v447_v54, %v445_v47 }
 0x34d   :  { %455 = vrot.lane.b32.xlu0 %v450_v55, %s6237_s16  ;;  %453 = vrot.lane.b32.xlu1 %v449_v56, %s6237_s16 }
 0x351   :  { %474 = vrot.lane.b32.xlu1 %v6230_v0, %s6241_s18 }
 0x355   :  { %531 = vrot.lane.b32.xlu1 %v6230_v0, %s6237_s16 }
 0x359   :  { %588 = vrot.lane.b32.xlu1 %v6230_v0, %s6240_s17  ;;  %v6464_v0 = vld [vmem:[#allocation2] sm:$0xff] }
 0x3bf   :  { %v456_v43 = vpop.permute.xlu0 %455  ;;  %v454_v48 = vpop.permute.xlu1 %453 }
 0x3c0   :  { %v458_v57 = vsel %vm352_vm8, %v454_v48, %v456_v43 }
 0x3c1   :  { %705 = vrot.lane.b32.xlu1 %v458_v57, %s6231_s10  ;;  %476 = vrot.lane.b32.xlu0 %v458_v57, %s6241_s18 }
 0x3c3   :  { %v475_v59 = vpop.permute.xlu1 %474 }
 0x3c5   :  { %765 = vrot.lane.b32.xlu1 %v458_v57, %s6232_s11  ;;  %533 = vrot.lane.b32.xlu0 %v458_v57, %s6237_s16 }
 0x3c7   :  { %v532_v60 = vpop.permute.xlu1 %531 }
 0x3c9   :  { %825 = vrot.lane.b32.xlu1 %v458_v57, %s6233_s12  ;;  %590 = vrot.lane.b32.xlu0 %v458_v57, %s6240_s17 }
 0x3cb   :  { %v589_v1 = vpop.permute.xlu1 %588 }
 0x3cd   :  { %707 = vrot.lane.b32.xlu0 %v6464_v0, %s6231_s10  ;;  %882 = vperm.xlu1 %6043, %v6324_v34  }
 0x3d1   :  { %767 = vrot.lane.b32.xlu0 %v6464_v0, %s6232_s11 }
 0x3d5   :  { %827 = vrot.lane.b32.xlu0 %v6464_v0, %s6233_s12 }
 0x3d9   :  { %887 = vperm.xlu0 %6044, %v6330_v36  }
 0x433   :  { %v477_v61 = vpop.permute.xlu0 %476  ;;  %v706_v3 = vpop.permute.xlu1 %705 }
 0x434   :  { %v479_v62 = vsel %vm478_vm10, %v475_v59, %v477_v61 }
 0x435   :  { %5481 = vmatpush3.bf16.msra.mxu0 %v479_v62 }
 0x436   :  { %5492 = vmatprep.subr.bf16.mxu0 %v6242_v32 }
 0x437   :  { %v534_v34 = vpop.permute.xlu0 %533  ;;  %v766_v9 = vpop.permute.xlu1 %765 }
 0x438   :  { %5483 = vmatmul.mubr.msk.bf16.vlgmr.msra.gmra.mrb[0].mxu0 %vm481_vm11, %v6077_v63  ;;  %v535_v36 = vsel %vm352_vm8, %v532_v60, %v534_v34 }
 0x439   :  { %5487 = vmatpush3.bf16.msra.mxu1 %v535_v36  ;;  %5494 = vmatprep.mubr.msk.bf16.mxu0 %vm6243_vm9, %v6242_v32 }
 0x43a   :  { %5498 = vmatprep.subr.bf16.mxu1 %v6242_v32 }
 0x43b   :  { %v591_v4 = vpop.permute.xlu0 %590  ;;  %v826_v13 = vpop.permute.xlu1 %825 }
 0x43c   :  { %v593_v5 = vsel %vm592_vm12, %v589_v1, %v591_v4  ;;  %5489 = vmatmul.mubr.msk.bf16.vlgmr.msra.gmra.mrb[0].mxu1 %vm481_vm11, %v6078_v2 }
 0x43d   :  { %5493 = vmatpush3.bf16.msra.mxu0 %v593_v5  ;;  %5499 = vmatpush3.bf16.msra.mxu1 %v458_v57 }
 0x43e   :  { %5504 = vmatprep.subr.bf16.mxu0 %v6242_v32  ;;  %5500 = vmatprep.mubr.msk.bf16.mxu1 %vm6243_vm9, %v6242_v32 }
 0x43f   :  { %v708_v44 = vpop.permute.xlu0 %707  ;;  %5510 = vmatprep.subr.bf16.mxu1 %v6242_v32 }
 0x440   :  { %v710_v7 = vsel %vm96_vm3, %v706_v3, %v708_v44  ;;  %5495 = vmatmul.mubr.msk.bf16.vlgmr.msra.gmra.mrb[4].mxu0 %vm481_vm11, %v6079_v6  ;;  %v6245_v6 = vmov 4  }
 0x441   :  { %5505 = vmatpush3.bf16.msra.mxu0 %v710_v7  ;;  %5506 = vmatprep.mubr.msk.bf16.mxu0 %vm6243_vm9, %v6242_v32 }
 0x442   :  { %5516 = vmatprep.subr.bf16.mxu0 %v6242_v32  ;;  %6045 = vset.pattern.permute.xlu1 %v6245_v6 }
 0x443   :  { %v768_v10 = vpop.permute.xlu0 %767 }
 0x444   :  { %v770_v11 = vsel %vm137_vm4, %v766_v9, %v768_v10  ;;  %5501 = vmatmul.mubr.msk.bf16.vlgmr.msra.gmra.mrb[4].mxu1 %vm481_vm11, %v6080_v8 }
 0x445   :  { %5511 = vmatpush3.bf16.msra.mxu1 %v770_v11  ;;  %5512 = vmatprep.mubr.msk.bf16.mxu1 %vm6243_vm9, %v6242_v32 }
 0x447   :  { %v828_v14 = vpop.permute.xlu0 %827 }
 0x448   :  { %v830_v15 = vsel %vm829_vm13, %v826_v13, %v828_v14  ;;  %5507 = vmatmul.mubr.msk.bf16.vlgmr.msra.gmra.mrb[8].mxu0 %vm481_vm11, %v6081_v12 }
 0x449   :  { %5517 = vmatpush3.bf16.msra.mxu0 %v830_v15  ;;  %5518 = vmatprep.mubr.msk.bf16.mxu0 %vm6243_vm9, %v6242_v32 }
 0x44c   :  { %5513 = vmatmul.mubr.msk.bf16.vlgmr.msra.gmra.mrb[8].mxu1 %vm481_vm11, %v6082_v45  ;;  %v883_v58 = vpop.permute.xlu1 %882 }
 0x450   :  { %5519 = vmatmul.mubr.msk.bf16.vlgmr.msra.gmra.mrb[12].mxu0 %vm481_vm11, %v6083_v16 }
 0x458   :  { %v888_v62 = vpop.permute.xlu0 %887 }
 0x50b   :  { %v519_v18 = vpop.f32.mrb[0].mxu0 }
 0x50c   :  { %v5484_v19 = vpop.f32.mrb[1].mxu0 }
 0x50d   :  { %v522_v20 = vpop.f32.mrb[2].mxu0 }
 0x50e   :  { %v5485_v21 = vpop.f32.mrb[3].mxu0 }
 0x50f   :  { %v574_v22 = vpop.f32.mrb[0].mxu1 }
 0x510   :  { %v575_v23 = vadd.f32 %v574_v22, %v519_v18  ;;  %v5490_v24 = vpop.f32.mrb[1].mxu1  ;;  %v6246_v22 = vmov 5  }
 0x511   :  { %v577_v25 = vpop.f32.mrb[2].mxu1  ;;  %6046 = vset.pattern.permute.xlu0 %v6246_v22  ;;  %v6225_v24 = vld [vmem:[%s7658_s3] sm:$0xff] }
 0x512   :  { %v578_v26 = vadd.f32 %v577_v25, %v522_v20  ;;  %v5491_v27 = vpop.f32.mrb[3].mxu1 }
 0x513   :  { %v632_v28 = vpop.f32.mrb[4].mxu0 }
 0x514   :  { %v639_v29 = vadd.f32 %v632_v28, %v575_v23  ;;  %v5496_v31 = vpop.f32.mrb[5].mxu0  ;;  %v6226_v28 = vld [vmem:[%s7658_s3 + $0x8] sm:$0xff] }
 0x515   :  { %v635_v35 = vpop.f32.mrb[6].mxu0 }
 0x516   :  { %v640_v37 = vadd.f32 %v635_v35, %v578_v26  ;;  %v5497_v38 = vpop.f32.mrb[7].mxu0 }
 0x517   :  { %v685_v39 = vpop.f32.mrb[4].mxu1 }
 0x518   :  { %v692_v40 = vadd.f32 %v685_v39, %v639_v29  ;;  %v5502_v41 = vpop.f32.mrb[5].mxu1 }
 0x519   :  { %v688_v46 = vpop.f32.mrb[6].mxu1 }
 0x51a   :  { %v693_v17 = vadd.f32 %v688_v46, %v640_v37  ;;  %v5503_v33 = vpop.f32.mrb[7].mxu1 }
 0x51b   :  { %v749_v49 = vpop.f32.mrb[8].mxu0 }
 0x51c   :  { %v756_v50 = vadd.f32 %v749_v49, %v692_v40  ;;  %v5508_v51 = vpop.f32.mrb[9].mxu0 }
 0x51d   :  { %v752_v52 = vpop.f32.mrb[10].mxu0 }
 0x51e   :  { %v757_v53 = vadd.f32 %v752_v52, %v693_v17  ;;  %v5509_v42 = vpop.f32.mrb[11].mxu0  ;;  %v6229_v17 = vld [vmem:[%s7657_s0] ss:$0 sm:$0xff] }
 0x51f   :  { %v809_v47 = vpop.f32.mrb[8].mxu1  ;;  %v6084_v52 = vld [vmem:[%s7655_s2 + $0x80] sm:$0xff]  }
 0x520   :  { %v816_v54 = vadd.f32 %v809_v47, %v756_v50  ;;  %v5514_v55 = vpop.f32.mrb[9].mxu1  ;;  %5524 = vmatprep.mubr.msk.bf16.mxu1 %vm481_vm11, %v6084_v52 }
 0x521   :  { %v812_v56 = vpop.f32.mrb[10].mxu1 }
 0x522   :  { %v817_v43 = vadd.f32 %v812_v56, %v757_v53  ;;  %v5515_v48 = vpop.f32.mrb[11].mxu1 }
 0x523   :  { %v869_v57 = vpop.f32.mrb[12].mxu0 }
 0x524   :  { %v876_v59 = vadd.f32 %v869_v57, %v816_v54  ;;  %v5520_v60 = vpop.f32.mrb[13].mxu0  ;;  %v6563_v57 = vld [vmem:[%s7658_s3] sm:$0xff] }
 0x525   :  { %v872_v61 = vpop.f32.mrb[14].mxu0  ;;  %v6575_v60 = vld [vmem:[%s7658_s3 + $0x10] sm:$0xff] }
 0x526   :  { %v877_v63 = vadd.f32 %v872_v61, %v817_v43  ;;  %v890_v1 = vadd.f32 %v883_v58, %v876_v59  ;;  %v5521_v34 = vpop.f32.mrb[15].mxu0  ;;  %v6247_v58 = vmov 6   ;;  %v6568_v59 = vld [vmem:[%s7658_s3 + $0x8] sm:$0xff]  ;;  %v6581_v61 = vld [vmem:[%s7658_s3 + $0x18] sm:$0xff] }
 0x528   :  { %v892_v36 = vmul.f32 %v890_v1, %v6365_v30  ;;  %v891_v2 = vadd.f32 %v888_v62, %v877_v63 }
 0x52a   :  { %v893_v3 = vmul.f32 %v891_v2, %v6365_v30  ;;  %894 = vadd.xlane.f32.xlu1 %v892_v36  ;;  %v898_v4 = vmul.f32 %v892_v36, %v892_v36  ;;  %v6086_v2 = vld [vmem:[%s7655_s2 + $0x70] sm:$0xff]  }
 0x52c   :  { %896 = vadd.xlane.f32.xlu0 %v893_v3  ;;  %v899_v5 = vmul.f32 %v893_v3, %v893_v3 }
 0x52e   :  { %900 = vadd.xlane.f32.xlu1 %v898_v4 }
 0x530   :  { %902 = vadd.xlane.f32.xlu0 %v899_v5 }
 0x5b7   :  { %v895_v44 = vpop.xlane.xlu1 %894 }
 0x5b8   :  { %v904_v7 = vmul.f32 0.03125, %v895_v44 }
 0x5b9   :  { %v897_v8 = vpop.xlane.xlu0 %896 }
 0x5ba   :  { %v905_v9 = vmul.f32 0.03125, %v897_v8  ;;  %v908_v11 = vmul.f32 %v904_v7, %v904_v7  ;;  %v6088_v8 = vld [vmem:[%s7655_s2 + $0x90] sm:$0xff]  }
 0x5bb   :  { %v901_v10 = vpop.xlane.xlu1 %900 }
 0x5bc   :  { %v906_v12 = vmul.f32 0.03125, %v901_v10  ;;  %v909_v14 = vmul.f32 %v905_v9, %v905_v9  ;;  %v6090_v10 = vld [vmem:[%s7655_s2 + $0xa0] sm:$0xff]  }
 0x5bd   :  { %v903_v13 = vpop.xlane.xlu0 %902 }
 0x5be   :  { %v910_v15 = vsub.f32 %v906_v12, %v908_v11  ;;  %v907_v45 = vmul.f32 0.03125, %v903_v13 }
 0x5c0   :  { %v912_v16 = vmax.f32 %v910_v15, 0.0  ;;  %v911_v18 = vsub.f32 %v907_v45, %v909_v14  ;;  %v6091_v14 = vld [vmem:[%s7655_s2 + $0xa8] sm:$0xff]   ;;  %v6092_v15 = vld [vmem:[%s7655_s2 + $0xb0] sm:$0xff]  }
 0x5c2   :  { %v914_v19 = vadd.f32 1e-05, %v912_v16  ;;  %v913_v20 = vmax.f32 %v911_v18, 0.0 }
 0x5c4   :  { %6172 = vrsqrt.f32 %v914_v19  ;;  %v915_v21 = vadd.f32 1e-05, %v913_v20  ;;  %v6093_v19 = vld [vmem:[%s7655_s2 + $0xb8] sm:$0xff]   ;;  %v6094_v20 = vld [vmem:[%s7655_s2 + $0xc0] sm:$0xff]  }
 0x5c6   :  { %6174 = vrsqrt.f32 %v915_v21 }
 0x5ce   :  { %v6173_v23 = vpop.eup %6172 }
 0x5cf   :  { %v918_v25 = vmul.f32 %v6225_v24, %v6173_v23 }
 0x5d0   :  { %v6175_v26 = vpop.eup %6174 }
 0x5d1   :  { %v920_v27 = vmul.f32 %v918_v25, %v904_v7  ;;  %v919_v29 = vmul.f32 %v6226_v28, %v6175_v26  ;;  %v6087_v7 = vld [vmem:[%s7655_s2 + $0x78] sm:$0xff]  }
 0x5d2   :  { %v6097_v26 = vld [vmem:[%s7655_s2 + $0xd8] sm:$0xff]  }
 0x5d3   :  { %924 = vrot.lane.b32.xlu1 %v920_v27, %s6240_s17  ;;  %v921_v31 = vmul.f32 %v919_v29, %v905_v9  ;;  %v6089_v9 = vld [vmem:[%s7655_s2 + $0x98] sm:$0xff]  }
 0x5d5   :  { %926 = vrot.lane.b32.xlu0 %v921_v31, %s6240_s17 }
 0x5d7   :  { %934 = vperm.xlu1 %6045, %v918_v25   ;;  %v6096_v25 = vld [vmem:[%s7655_s2 + $0xd0] sm:$0xff]  }
 0x5db   :  { %939 = vperm.xlu1 %6045, %v919_v29  }
 0x5df   :  { %6047 = vset.pattern.permute.xlu1 %v6246_v22 }
 0x645   :  { %v925_v35 = vpop.permute.xlu1 %924 }
 0x646   :  { %v930_v37 = vsub.f32 %v6225_v24, %v925_v35  ;;  %v6095_v24 = vld [vmem:[%s7655_s2 + $0xc8] sm:$0xff]  }
 0x647   :  { %v927_v38 = vpop.permute.xlu0 %926 }
 0x648   :  { %v931_v39 = vsub.f32 %v6226_v28, %v927_v38  ;;  %946 = vperm.xlu0 %6046, %v930_v37  }
 0x64a   :  { %951 = vperm.xlu1 %6047, %v931_v39  }
 0x64c   :  { %6049 = vset.pattern.permute.xlu0 %v6247_v58 }
 0x64e   :  { %992 = vrot.lane.b32.xlu1 %v6464_v0, %s6241_s18 }
 0x64f   :  { %6048 = vset.pattern.permute.xlu1 %v6247_v58 }
 0x652   :  { %1063 = vrot.lane.b32.xlu1 %v6464_v0, %s6237_s16 }
 0x656   :  { %1138 = vrot.lane.b32.xlu1 %v6464_v0, %s6240_s17  ;;  %v935_v40 = vpop.permute.xlu1 %934 }
 0x657   :  { %v942_v46 = vmul.f32 %v935_v40, %v892_v36  ;;  %v6085_v36 = vld [vmem:[%s7655_s2 + $0x88] sm:$0xff]  }
 0x65a   :  { %v940_v41 = vpop.permute.xlu1 %939 }
 0x65b   :  { %v943_v49 = vmul.f32 %v940_v41, %v893_v3 }
 0x6c7   :  { %v947_v33 = vpop.permute.xlu0 %946 }
 0x6c8   :  { %v954_v50 = vadd.f32 %v947_v33, %v942_v46 }
 0x6c9   :  { %v952_v51 = vpop.permute.xlu1 %951 }
 0x6ca   :  { %v962_v53 = vadd.f32 %v6229_v17, %v954_v50  ;;  %v955_v42 = vadd.f32 %v952_v51, %v943_v49 }
 0x6cc   :  { %v964_v47 = vmax.f32 %v962_v53, 0.0  ;;  %v963_v54 = vadd.f32 %v6229_v17, %v955_v42 }
 0x6cd   :  { %v993_v62 = vpop.permute.xlu1 %992 }
 0x6ce   :  { %v965_v55 = vmax.f32 %v963_v54, 0.0  ;;  %v966_v56 = vmul.f32 %v964_v47, %v6365_v30  ;;  %v6248_v54 = vmov 7  }
 0x6d0   :  { %v967_v43 = vmul.f32 %v965_v55, %v6365_v30 }
 0x6d1   :  { %v1064_v34 = vpop.permute.xlu1 %1063 }
 0x6d2   :  { %v968_v48 = vpack.c.bf16 %v967_v43, %v966_v56 }
 0x6d4   :  { %1294 = vrot.lane.b32.xlu1 %v968_v48, %s6231_s10  ;;  %994 = vrot.lane.b32.xlu0 %v968_v48, %s6241_s18 }
 0x6d5   :  { %v1139_v5 = vpop.permute.xlu1 %1138 }
 0x6d8   :  { %1373 = vrot.lane.b32.xlu1 %v968_v48, %s6232_s11  ;;  %1065 = vrot.lane.b32.xlu0 %v968_v48, %s6237_s16 }
 0x6dc   :  { %1452 = vrot.lane.b32.xlu1 %v968_v48, %s6233_s12  ;;  %1140 = vrot.lane.b32.xlu0 %v968_v48, %s6240_s17 }
 0x6e0   :  { %1296 = vrot.lane.b32.xlu0 %v6464_v0, %s6231_s10  ;;  %1523 = vperm.xlu1 %6048, %v6563_v57  }
 0x6e4   :  { %1375 = vrot.lane.b32.xlu0 %v6464_v0, %s6232_s11  ;;  %1533 = vperm.xlu1 %6048, %v6575_v60  }
 0x6e8   :  { %1454 = vrot.lane.b32.xlu0 %v6464_v0, %s6233_s12  ;;  %1538 = vperm.xlu1 %6048, %v6581_v61  }
 0x6ec   :  { %1528 = vperm.xlu0 %6049, %v6568_v59   ;;  %6051 = vset.pattern.permute.xlu1 %v6248_v54 }
 0x6f0   :  { %6050 = vset.pattern.permute.xlu0 %v6248_v54 }
 0x746   :  { %v995_v63 = vpop.permute.xlu0 %994  ;;  %v1295_v12 = vpop.permute.xlu1 %1294 }
 0x747   :  { %v996_v1 = vsel %vm478_vm10, %v993_v62, %v995_v63 }
 0x748   :  { %5522 = vmatprep.subr.bf16.mxu1 %v996_v1 }
 0x749   :  { %5523 = vmatpush3.bf16.msra.mxu1 %v996_v1 }
 0x74a   :  { %v1066_v3 = vpop.permute.xlu0 %1065  ;;  %v1374_v16 = vpop.permute.xlu1 %1373 }
 0x74b   :  { %v1067_v4 = vsel %vm352_vm8, %v1064_v34, %v1066_v3 }
 0x74c   :  { %5525 = vmatmul.mubr.msk.bf16.vlgmr.msra.gmra.mrb[12].mxu1 %vm481_vm11, %v6085_v36  ;;  %5528 = vmatprep.subr.bf16.mxu1 %v1067_v4 }
 0x74d   :  { %5529 = vmatpush3.bf16.msra.mxu1 %v1067_v4  ;;  %5530 = vmatprep.mubr.msk.bf16.mxu1 %vm481_vm11, %v6086_v2 }
 0x74e   :  { %v1141_v6 = vpop.permute.xlu0 %1140  ;;  %v1453_v22 = vpop.permute.xlu1 %1452 }
 0x74f   :  { %v1142_v44 = vsel %vm592_vm12, %v1139_v5, %v1141_v6 }
 0x750   :  { %5534 = vmatprep.subr.bf16.mxu1 %v1142_v44 }
 0x752   :  { %v1297_v11 = vpop.permute.xlu0 %1296 }
 0x753   :  { %v1298_v13 = vsel %vm96_vm3, %v1295_v12, %v1297_v11 }
 0x756   :  { %v1376_v45 = vpop.permute.xlu0 %1375 }
 0x757   :  { %v1377_v18 = vsel %vm137_vm4, %v1374_v16, %v1376_v45 }
 0x758   :  { %5531 = vmatmul.mubr.msk.bf16.vlgmr.msra.gmra.mrb[12].mxu1 %vm481_vm11, %v6087_v7 }
 0x759   :  { %5535 = vmatpush3.bf16.msra.mxu1 %v1142_v44  ;;  %5536 = vmatprep.mubr.msk.bf16.mxu1 %vm481_vm11, %v6088_v8 }
 0x75a   :  { %5540 = vmatprep.subr.bf16.mxu1 %v968_v48  ;;  %v1455_v21 = vpop.permute.xlu0 %1454 }
 0x75b   :  { %v1456_v23 = vsel %vm829_vm13, %v1453_v22, %v1455_v21 }
 0x75f   :  { %v1524_v27 = vpop.permute.xlu1 %1523 }
 0x763   :  { %v1534_v28 = vpop.permute.xlu1 %1533 }
 0x764   :  { %5537 = vmatmul.mubr.msk.bf16.vlgmr.msra.gmra.mrb[12].mxu1 %vm481_vm11, %v6089_v9 }
 0x765   :  { %5541 = vmatpush3.bf16.msra.mxu1 %v968_v48  ;;  %5542 = vmatprep.mubr.msk.bf16.mxu1 %vm481_vm11, %v6090_v10 }
 0x766   :  { %5546 = vmatprep.subr.bf16.mxu1 %v1298_v13 }
 0x767   :  { %v1539_v39 = vpop.permute.xlu1 %1538 }
 0x76b   :  { %v1529_v35 = vpop.permute.xlu0 %1528 }
 0x770   :  { %5543 = vmatmul.mubr.msk.bf16.vlgmr.msra.gmra.mrb[12].mxu1 %vm481_vm11, %v6091_v14 }
 0x771   :  { %5547 = vmatpush3.bf16.msra.mxu1 %v1298_v13  ;;  %5548 = vmatprep.mubr.msk.bf16.mxu1 %vm481_vm11, %v6092_v15 }
 0x772   :  { %5552 = vmatprep.subr.bf16.mxu1 %v1377_v18 }
 0x77c   :  { %5549 = vmatmul.mubr.msk.bf16.vlgmr.msra.gmra.mrb[12].mxu1 %vm481_vm11, %v6093_v19 }
 0x77d   :  { %5553 = vmatpush3.bf16.msra.mxu1 %v1377_v18  ;;  %5554 = vmatprep.mubr.msk.bf16.mxu1 %vm481_vm11, %v6094_v20 }
 0x77e   :  { %5558 = vmatprep.subr.bf16.mxu1 %v1456_v23 }
 0x788   :  { %5555 = vmatmul.mubr.msk.bf16.vlgmr.msra.gmra.mrb[12].mxu1 %vm481_vm11, %v6095_v24 }
 0x789   :  { %5559 = vmatpush3.bf16.msra.mxu1 %v1456_v23  ;;  %5560 = vmatprep.mubr.msk.bf16.mxu1 %vm481_vm11, %v6096_v25 }
 0x794   :  { %5561 = vmatmul.mubr.msk.bf16.vlgmr.msra.gmra.mrb[12].mxu1 %vm481_vm11, %v6097_v26 }
 0x867   :  { %v5562_v29 = vpop.f32.mrb[12].mxu1 }
 0x868   :  { %v1498_v31 = vpop.f32.mrb[13].mxu1  ;;  %v1543_v33 = vadd.f32 %v5562_v29, %v1534_v28 }
 0x869   :  { %v1541_v37 = vadd.f32 %v1524_v27, %v1498_v31  ;;  %v5563_v38 = vpop.f32.mrb[14].mxu1 }
 0x86a   :  { %v1501_v40 = vpop.f32.mrb[15].mxu1  ;;  %v1544_v46 = vadd.f32 %v5563_v38, %v1539_v39  ;;  %v6654_v51 = vmul.f32 %v1543_v33, %v6365_v30 }
 0x86b   :  { %v6643_v41 = vmul.f32 %v1541_v37, %v6365_v30  ;;  %v1542_v17 = vadd.f32 %v1529_v35, %v1501_v40  ;;  %v6249_v40 = vmov 8  }
 0x86c   :  { %v6650_v50 = vmul.f32 %v1544_v46, %v6365_v30  ;;  %v1559_v53 = vmul.f32 %v6654_v51, %v6654_v51 }
 0x86d   :  { %v6646_v49 = vmul.f32 %v1542_v17, %v6365_v30  ;;  %1549 = vadd.xlane.f32.xlu0 %v6643_v41  ;;  %v1557_v52 = vmul.f32 %v6643_v41, %v6643_v41 }
 0x86e   :  { %v1560_v47 = vmul.f32 %v6650_v50, %v6650_v50 }
 0x86f   :  { %1551 = vadd.xlane.f32.xlu1 %v6646_v49  ;;  %v1558_v42 = vmul.f32 %v6646_v49, %v6646_v49 }
 0x871   :  { %1555 = vadd.xlane.f32.xlu0 %v6650_v50 }
 0x873   :  { %1553 = vadd.xlane.f32.xlu1 %v6654_v51 }
 0x875   :  { %1561 = vadd.xlane.f32.xlu0 %v1557_v52 }
 0x877   :  { %1565 = vadd.xlane.f32.xlu1 %v1559_v53 }
 0x879   :  { %1563 = vadd.xlane.f32.xlu0 %v1558_v42 }
 0x87d   :  { %1567 = vadd.xlane.f32.xlu0 %v1560_v47 }
 0x8fa   :  { %v1550_v55 = vpop.xlane.xlu0 %1549 }
 0x8fb   :  { %v1569_v48 = vmul.f32 0.03125, %v1550_v55 }
 0x8fc   :  { %v1552_v56 = vpop.xlane.xlu1 %1551 }
 0x8fd   :  { %v1577_v1 = vmul.f32 %v1569_v48, %v1569_v48  ;;  %v1570_v34 = vmul.f32 0.03125, %v1552_v56 }
 0x8fe   :  { %v1556_v43 = vpop.xlane.xlu0 %1555 }
 0x8ff   :  { %v1572_v6 = vmul.f32 0.03125, %v1556_v43  ;;  %v1578_v7 = vmul.f32 %v1570_v34, %v1570_v34 }
 0x900   :  { %v1554_v58 = vpop.xlane.xlu1 %1553 }
 0x901   :  { %v1571_v62 = vmul.f32 0.03125, %v1554_v58  ;;  %v1580_v14 = vmul.f32 %v1572_v6, %v1572_v6 }
 0x902   :  { %v1562_v63 = vpop.xlane.xlu0 %1561 }
 0x903   :  { %v1573_v36 = vmul.f32 0.03125, %v1562_v63  ;;  %v1579_v3 = vmul.f32 %v1571_v62, %v1571_v62 }
 0x904   :  { %v1566_v2 = vpop.xlane.xlu1 %1565 }
 0x905   :  { %v1581_v4 = vsub.f32 %v1573_v36, %v1577_v1  ;;  %v1575_v5 = vmul.f32 0.03125, %v1566_v2 }
 0x906   :  { %v1564_v44 = vpop.xlane.xlu0 %1563 }
 0x907   :  { %v1585_v8 = vmax.f32 %v1581_v4, 0.0  ;;  %v1583_v9 = vsub.f32 %v1575_v5, %v1579_v3  ;;  %v1574_v10 = vmul.f32 0.03125, %v1564_v44 }
 0x909   :  { %v1589_v11 = vadd.f32 1e-05, %v1585_v8  ;;  %v1587_v12 = vmax.f32 %v1583_v9, 0.0  ;;  %v1582_v13 = vsub.f32 %v1574_v10, %v1578_v7 }
 0x90a   :  { %v1568_v15 = vpop.xlane.xlu0 %1567 }
 0x90b   :  { %6176 = vrsqrt.f32 %v1589_v11  ;;  %v1591_v45 = vadd.f32 1e-05, %v1587_v12  ;;  %v1586_v16 = vmax.f32 %v1582_v13, 0.0  ;;  %v1576_v18 = vmul.f32 0.03125, %v1568_v15 }
 0x90d   :  { %6178 = vrsqrt.f32 %v1591_v45  ;;  %v1590_v19 = vadd.f32 1e-05, %v1586_v16  ;;  %v1584_v20 = vsub.f32 %v1576_v18, %v1580_v14  ;;  %v6250_v14 = vmov 9  }
 0x90f   :  { %6180 = vrsqrt.f32 %v1590_v19  ;;  %v1588_v21 = vmax.f32 %v1584_v20, 0.0 }
 0x911   :  { %v1592_v22 = vadd.f32 1e-05, %v1588_v21  ;;  %v6099_v21 = vld [vmem:[%s7655_s2 + $0xf8] sm:$0xff]  }
 0x913   :  { %6182 = vrsqrt.f32 %v1592_v22  ;;  %v6100_v22 = vld [vmem:[%s7655_s2 + $0xe0] sm:$0xff]  }
 0x915   :  { %v6177_v23 = vpop.eup %6176 }
 0x916   :  { %v1597_v24 = vmul.f32 %v6177_v23, %v6563_v57 }
 0x917   :  { %v6179_v25 = vpop.eup %6178 }
 0x918   :  { %v1601_v26 = vmul.f32 %v1597_v24, %v1569_v48  ;;  %v1599_v27 = vmul.f32 %v6179_v25, %v6575_v60 }
 0x919   :  { %v6181_v28 = vpop.eup %6180 }
 0x91a   :  { %1609 = vrot.lane.b32.xlu1 %v1601_v26, %s6240_s17  ;;  %v1598_v29 = vmul.f32 %v6181_v28, %v6568_v59  ;;  %v1603_v35 = vmul.f32 %v1599_v27, %v1571_v62 }
 0x91c   :  { %v1602_v31 = vmul.f32 %v1598_v29, %v1570_v34 }
 0x91d   :  { %v6183_v37 = vpop.eup %6182 }
 0x91e   :  { %1611 = vrot.lane.b32.xlu0 %v1602_v31, %s6240_s17  ;;  %1613 = vrot.lane.b32.xlu1 %v1603_v35, %s6240_s17  ;;  %v1600_v38 = vmul.f32 %v6183_v37, %v6581_v61  ;;  %v6101_v35 = vld [vmem:[%s7655_s2 + $0xe8] sm:$0xff]   ;;  %v6102_v37 = vld [vmem:[%s7655_s2 + $0x100] sm:$0xff]  }
 0x920   :  { %v1604_v39 = vmul.f32 %v1600_v38, %v1572_v6  ;;  %v6098_v6 = vld [vmem:[%s7655_s2 + $0xf0] sm:$0xff]  }
 0x921   :  { %5568 = vmatprep.mubr.msk.bf16.mxu0 %vm1723_vm14, %v6098_v6  ;;  %v6110_v6 = vld [vmem:[%s7655_s2 + $0x140] sm:$0xff]  }
 0x922   :  { %1627 = vperm.xlu0 %6050, %v1597_v24   ;;  %1615 = vrot.lane.b32.xlu1 %v1604_v39, %s6240_s17 }
 0x926   :  { %1632 = vperm.xlu1 %6051, %v1598_v29   ;;  %6053 = vset.pattern.permute.xlu0 %v6249_v40 }
 0x92a   :  { %1637 = vperm.xlu1 %6051, %v1599_v27  }
 0x92e   :  { %1642 = vperm.xlu1 %6051, %v1600_v38  }
 0x932   :  { %6052 = vset.pattern.permute.xlu1 %v6249_v40 }
 0x98c   :  { %v1610_v46 = vpop.permute.xlu1 %1609 }
 0x98d   :  { %v1621_v17 = vsub.f32 %v6563_v57, %v1610_v46  ;;  %v6103_v46 = vld [vmem:[%s7655_s2 + $0x108] sm:$0xff]  }
 0x98f   :  { %1651 = vperm.xlu1 %6052, %v1621_v17   ;;  %v6104_v17 = vld [vmem:[%s7655_s2 + $0x110] sm:$0xff]  }
 0x990   :  { %v1612_v33 = vpop.permute.xlu0 %1611  ;;  %v1614_v52 = vpop.permute.xlu1 %1613 }
 0x991   :  { %v1622_v53 = vsub.f32 %v6568_v59, %v1612_v33  ;;  %v1623_v47 = vsub.f32 %v6575_v60, %v1614_v52 }
 0x993   :  { %1656 = vperm.xlu0 %6053, %v1622_v53  }
 0x994   :  { %v1616_v42 = vpop.permute.xlu1 %1615 }
 0x995   :  { %v1624_v54 = vsub.f32 %v6581_v61, %v1616_v42 }
 0x997   :  { %1661 = vperm.xlu0 %6053, %v1623_v47   ;;  %1666 = vperm.xlu1 %6052, %v1624_v54   ;;  %v6105_v47 = vld [vmem:[%s7655_s2 + $0x118] sm:$0xff]   ;;  %v6106_v54 = vld [vmem:[%s7655_s2 + $0x120] sm:$0xff]  }
 0x99b   :  { %1711 = vrot.lane.b32.xlu0 %v6464_v0, %s6241_s18  ;;  %6055 = vset.pattern.permute.xlu1 %v6250_v14 }
 0x99c   :  { %6054 = vset.pattern.permute.xlu0 %v6250_v14 }
 0x99f   :  { %1715 = vrot.lane.b32.xlu0 %v6464_v0, %s6241_s18 }
 0x9a1   :  { %v1628_v43 = vpop.permute.xlu0 %1627 }
 0x9a2   :  { %v1645_v58 = vmul.f32 %v1628_v43, %v6643_v41 }
 0x9a3   :  { %1789 = vrot.lane.b32.xlu0 %v6464_v0, %s6237_s16 }
 0x9a5   :  { %v1633_v55 = vpop.permute.xlu1 %1632 }
 0x9a6   :  { %v1646_v1 = vmul.f32 %v1633_v55, %v6646_v49 }
 0x9a7   :  { %1793 = vrot.lane.b32.xlu0 %v6464_v0, %s6237_s16 }
 0x9a9   :  { %v1638_v56 = vpop.permute.xlu1 %1637 }
 0x9aa   :  { %v1647_v3 = vmul.f32 %v1638_v56, %v6654_v51 }
 0x9ab   :  { %1870 = vrot.lane.b32.xlu0 %v6464_v0, %s6240_s17 }
 0x9ad   :  { %v1643_v48 = vpop.permute.xlu1 %1642 }
 0x9ae   :  { %v1648_v4 = vmul.f32 %v1643_v48, %v6650_v50 }
 0x9af   :  { %1874 = vrot.lane.b32.xlu0 %v6464_v0, %s6240_s17 }
 0xa0e   :  { %v1652_v62 = vpop.permute.xlu1 %1651 }
 0xa0f   :  { %v1669_v63 = vadd.f32 %v1652_v62, %v1645_v58 }
 0xa11   :  { %v1673_v36 = vmax.f32 %v1669_v63, 0.0  ;;  %v6107_v63 = vld [vmem:[%s7655_s2 + $0x128] sm:$0xff]  }
 0xa12   :  { %v1657_v34 = vpop.permute.xlu0 %1656 }
 0xa13   :  { %v1670_v2 = vadd.f32 %v1657_v34, %v1646_v1  ;;  %v1677_v41 = vmul.f32 %v1673_v36, %v6365_v30  ;;  %v6108_v1 = vld [vmem:[%s7655_s2 + $0x130] sm:$0xff]  }
 0xa15   :  { %v1674_v5 = vmax.f32 %v1670_v2, 0.0 }
 0xa16   :  { %v1662_v44 = vpop.permute.xlu0 %1661  ;;  %v1667_v7 = vpop.permute.xlu1 %1666 }
 0xa17   :  { %v1678_v8 = vmul.f32 %v1674_v5, %v6365_v30  ;;  %v1671_v49 = vadd.f32 %v1662_v44, %v1647_v3  ;;  %v1672_v9 = vadd.f32 %v1667_v7, %v1648_v4  ;;  %v6109_v5 = vld [vmem:[%s7655_s2 + $0x138] sm:$0xff]  }
 0xa19   :  { %v6700_v10 = vpack.c.bf16 %v1678_v8, %v1677_v41  ;;  %v1675_v51 = vmax.f32 %v1671_v49, 0.0  ;;  %v1676_v50 = vmax.f32 %v1672_v9, 0.0  ;;  %v6111_v8 = vld [vmem:[%s7655_s2 + $0x148] sm:$0xff]  }
 0xa1a   :  { %v1712_v15 = vpop.permute.xlu0 %1711 }
 0xa1b   :  { %v1679_v11 = vmul.f32 %v1675_v51, %v6365_v30  ;;  %v1680_v12 = vmul.f32 %v1676_v50, %v6365_v30  ;;  %2036 = vrot.lane.b32.xlu0 %v6700_v10, %s6231_s10  ;;  %1713 = vrot.lane.b32.xlu1 %v6700_v10, %s6241_s18 }
 0xa1d   :  { %v6708_v13 = vpack.c.bf16 %v1680_v12, %v1679_v11 }
 0xa1e   :  { %v1716_v45 = vpop.permute.xlu0 %1715 }
 0xa1f   :  { %2040 = vrot.lane.b32.xlu0 %v6708_v13, %s6231_s10  ;;  %1717 = vrot.lane.b32.xlu1 %v6708_v13, %s6241_s18 }
 0xa22   :  { %v1790_v19 = vpop.permute.xlu0 %1789 }
 0xa23   :  { %2121 = vrot.lane.b32.xlu0 %v6700_v10, %s6232_s11  ;;  %1791 = vrot.lane.b32.xlu1 %v6700_v10, %s6237_s16 }
 0xa26   :  { %v1794_v23 = vpop.permute.xlu0 %1793 }
 0xa27   :  { %2125 = vrot.lane.b32.xlu0 %v6708_v13, %s6232_s11  ;;  %1795 = vrot.lane.b32.xlu1 %v6708_v13, %s6237_s16 }
 0xa2a   :  { %v1871_v28 = vpop.permute.xlu0 %1870 }
 0xa2b   :  { %2206 = vrot.lane.b32.xlu0 %v6700_v10, %s6233_s12  ;;  %1872 = vrot.lane.b32.xlu1 %v6700_v10, %s6240_s17 }
 0xa2e   :  { %v1875_v38 = vpop.permute.xlu0 %1874 }
 0xa2f   :  { %2210 = vrot.lane.b32.xlu0 %v6708_v13, %s6233_s12  ;;  %1876 = vrot.lane.b32.xlu1 %v6708_v13, %s6240_s17 }
 0xa33   :  { %2038 = vrot.lane.b32.xlu1 %v6464_v0, %s6231_s10  ;;  %2283 = vperm.xlu0 %6054, %v6563_v57  }
 0xa37   :  { %2042 = vrot.lane.b32.xlu1 %v6464_v0, %s6231_s10  ;;  %2298 = vperm.xlu0 %6054, %v6581_v61  }
 0xa3b   :  { %2123 = vrot.lane.b32.xlu1 %v6464_v0, %s6232_s11 }
 0xa3f   :  { %2127 = vrot.lane.b32.xlu1 %v6464_v0, %s6232_s11 }
 0xa43   :  { %2208 = vrot.lane.b32.xlu1 %v6464_v0, %s6233_s12 }
 0xa47   :  { %2212 = vrot.lane.b32.xlu1 %v6464_v0, %s6233_s12 }
 0xa4b   :  { %2288 = vperm.xlu1 %6055, %v6568_v59  }
 0xa4f   :  { %2293 = vperm.xlu1 %6055, %v6575_v60  }
 0xa8d   :  { %v1714_v16 = vpop.permute.xlu1 %1713  ;;  %v2037_v52 = vpop.permute.xlu0 %2036 }
 0xa8e   :  { %v1719_v18 = vsel %vm478_vm10, %v1712_v15, %v1714_v16 }
 0xa8f   :  { %5564 = vmatprep.subr.bf16.mxu0 %v1719_v18 }
 0xa90   :  { %5565 = vmatpush3.bf16.msra.mxu0 %v1719_v18 }
 0xa91   :  { %v1718_v0 = vpop.permute.xlu1 %1717  ;;  %v2041_v55 = vpop.permute.xlu0 %2040 }
 0xa92   :  { %v1720_v20 = vsel %vm478_vm10, %v1716_v45, %v1718_v0 }
 0xa93   :  { %5566 = vmatprep.subr.bf16.mxu0 %v1720_v20 }
 0xa94   :  { %5567 = vmatpush3.bf16.msra.mxu0 %v1720_v20 }
 0xa95   :  { %v1792_v24 = vpop.permute.xlu1 %1791  ;;  %v2122_v48 = vpop.permute.xlu0 %2121 }
 0xa96   :  { %v1797_v25 = vsel %vm352_vm8, %v1790_v19, %v1792_v24 }
 0xa97   :  { %5569 = vmatmul.mubr.msk.bf16.vlgmr.msra.gmra.mrb[16].mxu0 %vm1723_vm14, %v6099_v21  ;;  %5572 = vmatprep.subr.bf16.mxu0 %v1797_v25 }
 0xa98   :  { %5573 = vmatpush3.bf16.msra.mxu0 %v1797_v25  ;;  %5576 = vmatprep.mubr.msk.bf16.mxu0 %vm1723_vm14, %v6100_v22  ;;  %v6251_v25 = vmov 10  }
 0xa99   :  { %v1796_v26 = vpop.permute.xlu1 %1795  ;;  %v2126_v34 = vpop.permute.xlu0 %2125  ;;  %6057 = vset.pattern.permute.xlu0 %v6251_v25  ;;  %6056 = vset.pattern.permute.xlu1 %v6251_v25  ;;  %v6850_v25 = vld [vmem:[#allocation2] sm:$0xff] }
 0xa9a   :  { %v1798_v27 = vsel %vm352_vm8, %v1794_v23, %v1796_v26 }
 0xa9b   :  { %5574 = vmatprep.subr.bf16.mxu0 %v1798_v27 }
 0xa9c   :  { %5575 = vmatpush3.bf16.msra.mxu0 %v1798_v27 }
 0xa9d   :  { %v1873_v29 = vpop.permute.xlu1 %1872  ;;  %v2207_v3 = vpop.permute.xlu0 %2206 }
 0xa9e   :  { %v1878_v31 = vsel %vm592_vm12, %v1871_v28, %v1873_v29 }
 0xa9f   :  { %5580 = vmatprep.subr.bf16.mxu0 %v1878_v31 }
 0xaa1   :  { %v1877_v39 = vpop.permute.xlu1 %1876  ;;  %v2211_v7 = vpop.permute.xlu0 %2210 }
 0xaa2   :  { %v1879_v40 = vsel %vm592_vm12, %v1875_v38, %v1877_v39 }
 0xaa3   :  { %5577 = vmatmul.mubr.msk.bf16.vlgmr.msra.gmra.mrb[16].mxu0 %vm1723_vm14, %v6101_v35 }
 0xaa4   :  { %5581 = vmatpush3.bf16.msra.mxu0 %v1878_v31  ;;  %5584 = vmatprep.mubr.msk.bf16.mxu0 %vm1723_vm14, %v6102_v37 }
 0xaa5   :  { %5582 = vmatprep.subr.bf16.mxu0 %v1879_v40  ;;  %v2039_v33 = vpop.permute.xlu1 %2038 }
 0xaa6   :  { %v2044_v53 = vsel %vm96_vm3, %v2037_v52, %v2039_v33 }
 0xaa8   :  { %5583 = vmatpush3.bf16.msra.mxu0 %v1879_v40 }
 0xaa9   :  { %5588 = vmatprep.subr.bf16.mxu0 %v6700_v10  ;;  %v2043_v42 = vpop.permute.xlu1 %2042 }
 0xaaa   :  { %v2045_v56 = vsel %vm96_vm3, %v2041_v55, %v2043_v42 }
 0xaad   :  { %v2124_v43 = vpop.permute.xlu1 %2123 }
 0xaae   :  { %v2129_v58 = vsel %vm137_vm4, %v2122_v48, %v2124_v43 }
 0xaaf   :  { %5585 = vmatmul.mubr.msk.bf16.vlgmr.msra.gmra.mrb[16].mxu0 %vm1723_vm14, %v6103_v46 }
 0xab0   :  { %5589 = vmatpush3.bf16.msra.mxu0 %v6700_v10  ;;  %5592 = vmatprep.mubr.msk.bf16.mxu0 %vm1723_vm14, %v6104_v17 }
 0xab1   :  { %5590 = vmatprep.subr.bf16.mxu0 %v6708_v13  ;;  %v2128_v62 = vpop.permute.xlu1 %2127 }
 0xab2   :  { %v2130_v36 = vsel %vm137_vm4, %v2126_v34, %v2128_v62  ;;  %v2284_v9 = vpop.permute.xlu0 %2283 }
 0xab4   :  { %5591 = vmatpush3.bf16.msra.mxu0 %v6708_v13 }
 0xab5   :  { %5596 = vmatprep.subr.bf16.mxu0 %v2044_v53  ;;  %v2209_v2 = vpop.permute.xlu1 %2208 }
 0xab6   :  { %v2214_v4 = vsel %vm829_vm13, %v2207_v3, %v2209_v2  ;;  %v2299_v12 = vpop.permute.xlu0 %2298 }
 0xab9   :  { %v2213_v44 = vpop.permute.xlu1 %2212 }
 0xaba   :  { %v2215_v41 = vsel %vm829_vm13, %v2211_v7, %v2213_v44 }
 0xabb   :  { %5593 = vmatmul.mubr.msk.bf16.vlgmr.msra.gmra.mrb[16].mxu0 %vm1723_vm14, %v6105_v47 }
 0xabc   :  { %5597 = vmatpush3.bf16.msra.mxu0 %v2044_v53  ;;  %5600 = vmatprep.mubr.msk.bf16.mxu0 %vm1723_vm14, %v6106_v54 }
 0xabd   :  { %5598 = vmatprep.subr.bf16.mxu0 %v2045_v56 }
 0xac0   :  { %5599 = vmatpush3.bf16.msra.mxu0 %v2045_v56 }
 0xac1   :  { %5604 = vmatprep.subr.bf16.mxu0 %v2129_v58 }
 0xac7   :  { %5601 = vmatmul.mubr.msk.bf16.vlgmr.msra.gmra.mrb[16].mxu0 %vm1723_vm14, %v6107_v63 }
 0xac8   :  { %5605 = vmatpush3.bf16.msra.mxu0 %v2129_v58  ;;  %5608 = vmatprep.mubr.msk.bf16.mxu0 %vm1723_vm14, %v6108_v1 }
 0xac9   :  { %5606 = vmatprep.subr.bf16.mxu0 %v2130_v36 }
 0xaca   :  { %v2289_v49 = vpop.permute.xlu1 %2288 }
 0xacc   :  { %5607 = vmatpush3.bf16.msra.mxu0 %v2130_v36 }
 0xacd   :  { %5612 = vmatprep.subr.bf16.mxu0 %v2214_v4 }
 0xace   :  { %v2294_v51 = vpop.permute.xlu1 %2293 }
 0xad3   :  { %5609 = vmatmul.mubr.msk.bf16.vlgmr.msra.gmra.mrb[16].mxu0 %vm1723_vm14, %v6109_v5 }
 0xad4   :  { %5613 = vmatpush3.bf16.msra.mxu0 %v2214_v4  ;;  %5616 = vmatprep.mubr.msk.bf16.mxu0 %vm1723_vm14, %v6110_v6 }
 0xad5   :  { %5614 = vmatprep.subr.bf16.mxu0 %v2215_v41 }
 0xad8   :  { %5615 = vmatpush3.bf16.msra.mxu0 %v2215_v41 }
 0xadf   :  { %5617 = vmatmul.mubr.msk.bf16.vlgmr.msra.gmra.mrb[16].mxu0 %vm1723_vm14, %v6111_v8 }
 0xbb2   :  { %v5618_v10 = vpop.f32.mrb[16].mxu0 }
 0xbb3   :  { %v2303_v50 = vadd.f32 %v5618_v10, %v2294_v51  ;;  %v2258_v11 = vpop.f32.mrb[17].mxu0 }
 0xbb4   :  { %v2301_v13 = vadd.f32 %v2284_v9, %v2258_v11  ;;  %v5619_v14 = vpop.f32.mrb[18].mxu0 }
 0xbb5   :  { %v6815_v15 = vmul.f32 %v2303_v50, %v6365_v30  ;;  %v2261_v45 = vpop.f32.mrb[19].mxu0  ;;  %v2304_v18 = vadd.f32 %v5619_v14, %v2299_v12 }
 0xbb6   :  { %v6818_v16 = vmul.f32 %v2301_v13, %v6365_v30  ;;  %v2302_v19 = vadd.f32 %v2289_v49, %v2261_v45  ;;  %v6252_v13 = vmov 11  }
 0xbb7   :  { %2313 = vadd.xlane.f32.xlu0 %v6815_v15  ;;  %v6826_v20 = vmul.f32 %v2304_v18, %v6365_v30  ;;  %v2319_v23 = vmul.f32 %v6815_v15, %v6815_v15 }
 0xbb8   :  { %v6822_v0 = vmul.f32 %v2302_v19, %v6365_v30  ;;  %2309 = vadd.xlane.f32.xlu1 %v6818_v16  ;;  %v2317_v21 = vmul.f32 %v6818_v16, %v6818_v16 }
 0xbb9   :  { %v2320_v24 = vmul.f32 %v6826_v20, %v6826_v20 }
 0xbba   :  { %v2318_v22 = vmul.f32 %v6822_v0, %v6822_v0 }
 0xbbb   :  { %2311 = vadd.xlane.f32.xlu0 %v6822_v0 }
 0xbbc   :  { %2315 = vadd.xlane.f32.xlu1 %v6826_v20 }
 0xbbf   :  { %2321 = vadd.xlane.f32.xlu0 %v2317_v21 }
 0xbc0   :  { %2323 = vadd.xlane.f32.xlu1 %v2318_v22 }
 0xbc3   :  { %2325 = vadd.xlane.f32.xlu0 %v2319_v23 }
 0xbc4   :  { %2327 = vadd.xlane.f32.xlu1 %v2320_v24 }
 0xc44   :  { %v2314_v26 = vpop.xlane.xlu0 %2313 }
 0xc45   :  { %v2310_v27 = vpop.xlane.xlu1 %2309  ;;  %v2331_v38 = vmul.f32 0.03125, %v2314_v26 }
 0xc46   :  { %v2329_v29 = vmul.f32 0.03125, %v2310_v27 }
 0xc47   :  { %v2339_v54 = vmul.f32 %v2331_v38, %v2331_v38 }
 0xc48   :  { %v2312_v28 = vpop.xlane.xlu0 %2311  ;;  %v2337_v39 = vmul.f32 %v2329_v29, %v2329_v29 }
 0xc49   :  { %v2316_v31 = vpop.xlane.xlu1 %2315  ;;  %v2330_v35 = vmul.f32 0.03125, %v2312_v28 }
 0xc4a   :  { %v2332_v33 = vmul.f32 0.03125, %v2316_v31 }
 0xc4b   :  { %v2338_v17 = vmul.f32 %v2330_v35, %v2330_v35 }
 0xc4c   :  { %v2322_v37 = vpop.xlane.xlu0 %2321  ;;  %v2340_v48 = vmul.f32 %v2332_v33, %v2332_v33 }
 0xc4d   :  { %v2333_v40 = vmul.f32 0.03125, %v2322_v37  ;;  %v2324_v46 = vpop.xlane.xlu1 %2323 }
 0xc4e   :  { %v2334_v52 = vmul.f32 0.03125, %v2324_v46 }
 0xc4f   :  { %v2341_v53 = vsub.f32 %v2333_v40, %v2337_v39 }
 0xc50   :  { %v2342_v42 = vsub.f32 %v2334_v52, %v2338_v17  ;;  %v2326_v47 = vpop.xlane.xlu0 %2325 }
 0xc51   :  { %v2345_v55 = vmax.f32 %v2341_v53, 0.0  ;;  %v2335_v56 = vmul.f32 0.03125, %v2326_v47  ;;  %v2328_v43 = vpop.xlane.xlu1 %2327 }
 0xc52   :  { %v2346_v58 = vmax.f32 %v2342_v42, 0.0  ;;  %v2336_v62 = vmul.f32 0.03125, %v2328_v43  ;;  %v6253_v43 = vmov 12  }
 0xc53   :  { %v2349_v63 = vadd.f32 1e-05, %v2345_v55  ;;  %v2343_v1 = vsub.f32 %v2335_v56, %v2339_v54  ;;  %v6919_v56 = vld [vmem:[%s7658_s3] sm:$0xff] }
 0xc54   :  { %v2350_v34 = vadd.f32 1e-05, %v2346_v58  ;;  %v2344_v36 = vsub.f32 %v2336_v62, %v2340_v48  ;;  %v6924_v48 = vld [vmem:[%s7658_s3 + $0x8] sm:$0xff]  ;;  %v6931_v58 = vld [vmem:[%s7658_s3 + $0x10] sm:$0xff]  ;;  %v6936_v62 = vld [vmem:[%s7658_s3 + $0x20] sm:$0xff] }
 0xc55   :  { %6184 = vrsqrt.f32 %v2349_v63  ;;  %v2347_v2 = vmax.f32 %v2343_v1, 0.0  ;;  %v6943_v1 = vld [vmem:[%s7658_s3 + $0x18] sm:$0xff] }
 0xc56   :  { %6186 = vrsqrt.f32 %v2350_v34  ;;  %v2348_v3 = vmax.f32 %v2344_v36, 0.0  ;;  %v6948_v34 = vld [vmem:[%s7658_s3 + $0x30] sm:$0xff]  ;;  %v6955_v36 = vld [vmem:[%s7658_s3 + $0x28] sm:$0xff] }
 0xc57   :  { %v2351_v4 = vadd.f32 1e-05, %v2347_v2 }
 0xc58   :  { %v2352_v5 = vadd.f32 1e-05, %v2348_v3 }
 0xc59   :  { %6188 = vrsqrt.f32 %v2351_v4 }
 0xc5a   :  { %6190 = vrsqrt.f32 %v2352_v5  ;;  %v6962_v5 = vld [vmem:[%s7658_s3 + $0x38] sm:$0xff] }
 0xc5f   :  { %v6185_v6 = vpop.eup %6184 }
 0xc60   :  { %v6187_v44 = vpop.eup %6186  ;;  %v2357_v7 = vmul.f32 %v6185_v6, %v6563_v57 }
 0xc61   :  { %v2358_v41 = vmul.f32 %v6187_v44, %v6568_v59 }
 0xc62   :  { %v2361_v8 = vmul.f32 %v2357_v7, %v2329_v29 }
 0xc63   :  { %v6189_v49 = vpop.eup %6188  ;;  %v2362_v9 = vmul.f32 %v2358_v41, %v2330_v35 }
 0xc64   :  { %v6191_v10 = vpop.eup %6190  ;;  %2369 = vrot.lane.b32.xlu0 %v2361_v8, %s6240_s17  ;;  %v2359_v51 = vmul.f32 %v6189_v49, %v6575_v60  ;;  %v6114_v8 = vld [vmem:[%s7655_s2 + $0x180] sm:$0xff]  }
 0xc65   :  { %2371 = vrot.lane.b32.xlu1 %v2362_v9, %s6240_s17  ;;  %v2360_v50 = vmul.f32 %v6191_v10, %v6581_v61 }
 0xc66   :  { %v2363_v11 = vmul.f32 %v2359_v51, %v2331_v38 }
 0xc67   :  { %v2364_v12 = vmul.f32 %v2360_v50, %v2332_v33  ;;  %v6112_v33 = vld [vmem:[%s7655_s2 + $0x170] sm:$0xff]  }
 0xc68   :  { %5624 = vmatprep.mubr.msk.bf16.mxu1 %vm1723_vm14, %v6112_v33 }
 0xc69   :  { %2373 = vrot.lane.b32.xlu1 %v2363_v11, %s6240_s17  ;;  %2375 = vrot.lane.b32.xlu0 %v2364_v12, %s6240_s17  ;;  %v6115_v11 = vld [vmem:[%s7655_s2 + $0x188] sm:$0xff]   ;;  %v6116_v12 = vld [vmem:[%s7655_s2 + $0x150] sm:$0xff]  }
 0xc6d   :  { %2387 = vperm.xlu1 %6056, %v2357_v7   ;;  %2392 = vperm.xlu0 %6057, %v2358_v41   ;;  %v6113_v41 = vld [vmem:[%s7655_s2 + $0x178] sm:$0xff]  }
 0xc71   :  { %2402 = vperm.xlu1 %6056, %v2360_v50   ;;  %2397 = vperm.xlu0 %6057, %v2359_v51  }
 0xc75   :  { %6059 = vset.pattern.permute.xlu1 %v6252_v13  ;;  %6058 = vset.pattern.permute.xlu0 %v6252_v13 }
 0xcd6   :  { %v2370_v14 = vpop.permute.xlu0 %2369 }
 0xcd7   :  { %v2381_v45 = vsub.f32 %v6563_v57, %v2370_v14  ;;  %v2372_v18 = vpop.permute.xlu1 %2371 }
 0xcd8   :  { %v2382_v19 = vsub.f32 %v6568_v59, %v2372_v18  ;;  %v6117_v18 = vld [vmem:[%s7655_s2 + $0x158] sm:$0xff]  }
 0xcd9   :  { %2411 = vperm.xlu1 %6059, %v2381_v45  }
 0xcdb   :  { %v2374_v21 = vpop.permute.xlu1 %2373  ;;  %v2376_v22 = vpop.permute.xlu0 %2375 }
 0xcdc   :  { %v2383_v23 = vsub.f32 %v6575_v60, %v2374_v21  ;;  %v2384_v24 = vsub.f32 %v6581_v61, %v2376_v22 }
 0xcdd   :  { %2416 = vperm.xlu1 %6059, %v2382_v19   ;;  %v6118_v19 = vld [vmem:[%s7655_s2 + $0x160] sm:$0xff]  }
 0xcde   :  { %2421 = vperm.xlu0 %6058, %v2383_v23  }
 0xce1   :  { %2426 = vperm.xlu1 %6059, %v2384_v24   ;;  %v6119_v24 = vld [vmem:[%s7655_s2 + $0x168] sm:$0xff]  }
 0xce2   :  { %6061 = vset.pattern.permute.xlu0 %v6253_v43 }
 0xce5   :  { %2489 = vrot.lane.b32.xlu1 %v6850_v25, %s6241_s18 }
 0xce6   :  { %6060 = vset.pattern.permute.xlu1 %v6253_v43  ;;  %v6132_v43 = vld [vmem:[%s7655_s2 + $0x1f0] sm:$0xff]  }
 0xce9   :  { %2493 = vrot.lane.b32.xlu1 %v6850_v25, %s6241_s18 }
 0xcec   :  { %v2388_v57 = vpop.permute.xlu1 %2387  ;;  %v2393_v59 = vpop.permute.xlu0 %2392 }
 0xced   :  { %2598 = vrot.lane.b32.xlu1 %v6850_v25, %s6237_s16  ;;  %v2405_v61 = vmul.f32 %v2388_v57, %v6818_v16  ;;  %v2406_v29 = vmul.f32 %v2393_v59, %v6822_v0  ;;  %v6120_v57 = vld [vmem:[%s7655_s2 + $0x190] sm:$0xff]   ;;  %v6121_v59 = vld [vmem:[%s7655_s2 + $0x198] sm:$0xff]  }
 0xcf0   :  { %v2403_v60 = vpop.permute.xlu1 %2402  ;;  %v2398_v27 = vpop.permute.xlu0 %2397 }
 0xcf1   :  { %2602 = vrot.lane.b32.xlu1 %v6850_v25, %s6237_s16  ;;  %v2407_v31 = vmul.f32 %v2398_v27, %v6815_v15  ;;  %v2408_v46 = vmul.f32 %v2403_v60, %v6826_v20  ;;  %v6122_v60 = vld [vmem:[%s7655_s2 + $0x1a0] sm:$0xff]   ;;  %v6123_v27 = vld [vmem:[%s7655_s2 + $0x1a8] sm:$0xff]  }
 0xcf5   :  { %2715 = vrot.lane.b32.xlu1 %v6850_v25, %s6240_s17 }
 0xcf9   :  { %2719 = vrot.lane.b32.xlu1 %v6850_v25, %s6240_s17 }
 0xd58   :  { %v2412_v26 = vpop.permute.xlu1 %2411 }
 0xd59   :  { %v2429_v28 = vadd.f32 %v2412_v26, %v2405_v61 }
 0xd5b   :  { %v2433_v37 = vmax.f32 %v2429_v28, 0.0 }
 0xd5c   :  { %v2417_v35 = vpop.permute.xlu1 %2416 }
 0xd5d   :  { %v2430_v38 = vadd.f32 %v2417_v35, %v2406_v29  ;;  %v2422_v39 = vpop.permute.xlu0 %2421  ;;  %v2437_v52 = vmul.f32 %v2433_v37, %v6365_v30  ;;  %v6124_v29 = vld [vmem:[%s7655_s2 + $0x1b0] sm:$0xff]   ;;  %v6125_v35 = vld [vmem:[%s7655_s2 + $0x1b8] sm:$0xff]   ;;  %v6126_v37 = vld [vmem:[%s7655_s2 + $0x1c0] sm:$0xff]  }
 0xd5e   :  { %v2431_v40 = vadd.f32 %v2422_v39, %v2407_v31 }
 0xd5f   :  { %v2434_v17 = vmax.f32 %v2430_v38, 0.0 }
 0xd60   :  { %v2427_v16 = vpop.permute.xlu1 %2426  ;;  %v2435_v0 = vmax.f32 %v2431_v40, 0.0 }
 0xd61   :  { %v2438_v53 = vmul.f32 %v2434_v17, %v6365_v30  ;;  %v2432_v42 = vadd.f32 %v2427_v16, %v2408_v46  ;;  %v6127_v17 = vld [vmem:[%s7655_s2 + $0x1c8] sm:$0xff]   ;;  %v6128_v16 = vld [vmem:[%s7655_s2 + $0x1d0] sm:$0xff]  }
 0xd62   :  { %v2439_v54 = vmul.f32 %v2435_v0, %v6365_v30  ;;  %v6130_v0 = vld [vmem:[%s7655_s2 + $0x1e0] sm:$0xff]  }
 0xd63   :  { %v6874_v15 = vpack.c.bf16 %v2438_v53, %v2437_v52  ;;  %v2436_v47 = vmax.f32 %v2432_v42, 0.0  ;;  %v6129_v53 = vld [vmem:[%s7655_s2 + $0x1d8] sm:$0xff]  }
 0xd64   :  { %v2490_v63 = vpop.permute.xlu1 %2489 }
 0xd65   :  { %v2440_v20 = vmul.f32 %v2436_v47, %v6365_v30  ;;  %2961 = vrot.lane.b32.xlu1 %v6874_v15, %s6231_s10  ;;  %2491 = vrot.lane.b32.xlu0 %v6874_v15, %s6241_s18 }
 0xd67   :  { %v6882_v55 = vpack.c.bf16 %v2440_v20, %v2439_v54  ;;  %v6131_v20 = vld [vmem:[%s7655_s2 + $0x1e8] sm:$0xff]  }
 0xd68   :  { %v2494_v2 = vpop.permute.xlu1 %2493 }
 0xd69   :  { %2965 = vrot.lane.b32.xlu1 %v6882_v55, %s6231_s10  ;;  %2495 = vrot.lane.b32.xlu0 %v6882_v55, %s6241_s18 }
 0xd6c   :  { %v2599_v6 = vpop.permute.xlu1 %2598 }
 0xd6d   :  { %3086 = vrot.lane.b32.xlu1 %v6874_v15, %s6232_s11  ;;  %2600 = vrot.lane.b32.xlu0 %v6874_v15, %s6237_s16 }
 0xd70   :  { %v2603_v10 = vpop.permute.xlu1 %2602 }
 0xd71   :  { %3090 = vrot.lane.b32.xlu1 %v6882_v55, %s6232_s11  ;;  %2604 = vrot.lane.b32.xlu0 %v6882_v55, %s6237_s16 }
 0xd74   :  { %v2716_v13 = vpop.permute.xlu1 %2715 }
 0xd75   :  { %3211 = vrot.lane.b32.xlu1 %v6874_v15, %s6233_s12  ;;  %2717 = vrot.lane.b32.xlu0 %v6874_v15, %s6240_s17 }
 0xd78   :  { %v2720_v22 = vpop.permute.xlu1 %2719 }
 0xd79   :  { %3215 = vrot.lane.b32.xlu1 %v6882_v55, %s6233_s12  ;;  %2721 = vrot.lane.b32.xlu0 %v6882_v55, %s6240_s17 }
 0xd7d   :  { %2963 = vrot.lane.b32.xlu0 %v6850_v25, %s6231_s10  ;;  %3318 = vperm.xlu1 %6060, %v6919_v56  }
 0xd81   :  { %2967 = vrot.lane.b32.xlu0 %v6850_v25, %s6231_s10  ;;  %3328 = vperm.xlu1 %6060, %v6931_v58  }
 0xd85   :  { %3088 = vrot.lane.b32.xlu0 %v6850_v25, %s6232_s11  ;;  %3333 = vperm.xlu1 %6060, %v6943_v1  }
 0xd89   :  { %3092 = vrot.lane.b32.xlu0 %v6850_v25, %s6232_s11  ;;  %3343 = vperm.xlu1 %6060, %v6955_v36  }
 0xd8d   :  { %3213 = vrot.lane.b32.xlu0 %v6850_v25, %s6233_s12  ;;  %3353 = vperm.xlu1 %6060, %v6962_v5  }
 0xd91   :  { %3217 = vrot.lane.b32.xlu0 %v6850_v25, %s6233_s12 }
 0xd95   :  { %3323 = vperm.xlu0 %6061, %v6924_v48  }
 0xd99   :  { %3338 = vperm.xlu0 %6061, %v6936_v62  }
 0xd9d   :  { %3348 = vperm.xlu0 %6061, %v6948_v34  }
 0xdd7   :  { %v2492_v3 = vpop.permute.xlu0 %2491  ;;  %v2962_v26 = vpop.permute.xlu1 %2961 }
 0xdd8   :  { %v2497_v4 = vsel %vm478_vm10, %v2490_v63, %v2492_v3  ;;  %v6133_v63 = vld [vmem:[%s7655_s2 + $0x1f8] sm:$0xff]  }
 0xdd9   :  { %5620 = vmatprep.subr.bf16.mxu1 %v2497_v4 }
 0xdda   :  { %5621 = vmatpush3.bf16.msra.mxu1 %v2497_v4 }
 0xddb   :  { %v2496_v44 = vpop.permute.xlu0 %2495  ;;  %v2966_v38 = vpop.permute.xlu1 %2965 }
 0xddc   :  { %v2498_v7 = vsel %vm478_vm10, %v2494_v2, %v2496_v44  ;;  %v6134_v2 = vld [vmem:[%s7655_s2 + $0x200] sm:$0xff]   ;;  %v6135_v44 = vld [vmem:[%s7655_s2 + $0x208] sm:$0xff]  }
 0xddd   :  { %5622 = vmatprep.subr.bf16.mxu1 %v2498_v7 }
 0xdde   :  { %5623 = vmatpush3.bf16.msra.mxu1 %v2498_v7  ;;  %v6136_v7 = vld [vmem:[%s7655_s2 + $0x210] sm:$0xff]  }
 0xddf   :  { %v2601_v49 = vpop.permute.xlu0 %2600  ;;  %v3087_v46 = vpop.permute.xlu1 %3086 }
 0xde0   :  { %v2606_v9 = vsel %vm352_vm8, %v2599_v6, %v2601_v49  ;;  %v6139_v49 = vld [vmem:[%s7655_s2 + $0x228] sm:$0xff]  }
 0xde1   :  { %5625 = vmatmul.mubr.msk.bf16.vlgmr.msra.gmra.mrb[16].mxu1 %vm1723_vm14, %v6113_v41  ;;  %5632 = vmatprep.subr.bf16.mxu1 %v2606_v9  ;;  %v6137_v41 = vld [vmem:[%s7655_s2 + $0x218] sm:$0xff]  }
 0xde2   :  { %5633 = vmatpush3.bf16.msra.mxu1 %v2606_v9  ;;  %5628 = vmatprep.mubr.msk.bf16.mxu1 %vm1723_vm14, %v6114_v8  ;;  %v6138_v8 = vld [vmem:[%s7655_s2 + $0x220] sm:$0xff]  }
 0xde3   :  { %v2605_v51 = vpop.permute.xlu0 %2604  ;;  %v3091_v42 = vpop.permute.xlu1 %3090 }
 0xde4   :  { %v2607_v50 = vsel %vm352_vm8, %v2603_v10, %v2605_v51 }
 0xde5   :  { %5634 = vmatprep.subr.bf16.mxu1 %v2607_v50 }
 0xde6   :  { %5635 = vmatpush3.bf16.msra.mxu1 %v2607_v50 }
 0xde7   :  { %v2718_v14 = vpop.permute.xlu0 %2717  ;;  %v3212_v54 = vpop.permute.xlu1 %3211 }
 0xde8   :  { %v2723_v45 = vsel %vm592_vm12, %v2716_v13, %v2718_v14 }
 0xde9   :  { %5629 = vmatmul.mubr.msk.bf16.gmra.mrb[20].mxu1 %vm1723_vm14, %v6115_v11  ;;  %5644 = vmatprep.subr.bf16.mxu1 %v2723_v45 }
 0xdea   :  { %5636 = vmatprep.mubr.msk.bf16.mxu1 %vm1723_vm14, %v6116_v12 }
 0xdeb   :  { %v2722_v21 = vpop.permute.xlu0 %2721  ;;  %v3216_v4 = vpop.permute.xlu1 %3215 }
 0xdec   :  { %v2724_v23 = vsel %vm592_vm12, %v2720_v22, %v2722_v21 }
 0xdef   :  { %v2964_v61 = vpop.permute.xlu0 %2963 }
 0xdf0   :  { %v2969_v28 = vsel %vm96_vm3, %v2962_v26, %v2964_v61 }
 0xdf1   :  { %5637 = vmatmul.mubr.msk.bf16.vlgmr.msra.gmra.mrb[16].mxu1 %vm1723_vm14, %v6117_v18 }
 0xdf2   :  { %5645 = vmatpush3.bf16.msra.mxu1 %v2723_v45  ;;  %5640 = vmatprep.mubr.msk.bf16.mxu1 %vm1723_vm14, %v6118_v19 }
 0xdf3   :  { %5646 = vmatprep.subr.bf16.mxu1 %v2724_v23  ;;  %v2968_v31 = vpop.permute.xlu0 %2967 }
 0xdf4   :  { %v2970_v39 = vsel %vm96_vm3, %v2966_v38, %v2968_v31 }
 0xdf6   :  { %5647 = vmatpush3.bf16.msra.mxu1 %v2724_v23 }
 0xdf7   :  { %5656 = vmatprep.subr.bf16.mxu1 %v6874_v15  ;;  %v3089_v40 = vpop.permute.xlu0 %3088 }
 0xdf8   :  { %v3094_v33 = vsel %vm137_vm4, %v3087_v46, %v3089_v40 }
 0xdf9   :  { %5641 = vmatmul.mubr.msk.bf16.gmra.mrb[20].mxu1 %vm1723_vm14, %v6119_v24 }
 0xdfa   :  { %5648 = vmatprep.mubr.msk.bf16.mxu1 %vm1723_vm14, %v6120_v57 }
 0xdfb   :  { %v3093_v52 = vpop.permute.xlu0 %3092 }
 0xdfc   :  { %v3319_v9 = vpop.permute.xlu1 %3318 }
 0xdff   :  { %v3214_v47 = vpop.permute.xlu0 %3213 }
 0xe00   :  { %v3329_v51 = vpop.permute.xlu1 %3328 }
 0xe01   :  { %5649 = vmatmul.mubr.msk.bf16.vlgmr.msra.gmra.mrb[16].mxu1 %vm1723_vm14, %v6121_v59 }
 0xe02   :  { %5657 = vmatpush3.bf16.msra.mxu1 %v6874_v15  ;;  %5652 = vmatprep.mubr.msk.bf16.mxu1 %vm1723_vm14, %v6122_v60  ;;  %v3095_v15 = vsel %vm137_vm4, %v3091_v42, %v3093_v52 }
 0xe03   :  { %5658 = vmatprep.subr.bf16.mxu1 %v6882_v55  ;;  %v3218_v3 = vpop.permute.xlu0 %3217 }
 0xe04   :  { %v3220_v6 = vsel %vm829_vm13, %v3216_v4, %v3218_v3  ;;  %v3334_v18 = vpop.permute.xlu1 %3333 }
 0xe06   :  { %5659 = vmatpush3.bf16.msra.mxu1 %v6882_v55  ;;  %v3219_v55 = vsel %vm829_vm13, %v3212_v54, %v3214_v47 }
 0xe07   :  { %5668 = vmatprep.subr.bf16.mxu1 %v2969_v28 }
 0xe09   :  { %5653 = vmatmul.mubr.msk.bf16.gmra.mrb[20].mxu1 %vm1723_vm14, %v6123_v27 }
 0xe0a   :  { %5660 = vmatprep.mubr.msk.bf16.mxu1 %vm1723_vm14, %v6124_v29 }
 0xe11   :  { %5661 = vmatmul.mubr.msk.bf16.vlgmr.msra.gmra.mrb[16].mxu1 %vm1723_vm14, %v6125_v35 }
 0xe12   :  { %5669 = vmatpush3.bf16.msra.mxu1 %v2969_v28  ;;  %5664 = vmatprep.mubr.msk.bf16.mxu1 %vm1723_vm14, %v6126_v37  ;;  %v3344_v37 = vpop.permute.xlu1 %3343 }
 0xe13   :  { %5670 = vmatprep.subr.bf16.mxu1 %v2970_v39 }
 0xe14   :  { %v3324_v10 = vpop.permute.xlu0 %3323 }
 0xe16   :  { %5671 = vmatpush3.bf16.msra.mxu1 %v2970_v39  ;;  %v3354_v46 = vpop.permute.xlu1 %3353 }
 0xe17   :  { %5680 = vmatprep.subr.bf16.mxu1 %v3094_v33 }
 0xe18   :  { %v3339_v45 = vpop.permute.xlu0 %3338 }
 0xe19   :  { %5665 = vmatmul.mubr.msk.bf16.gmra.mrb[20].mxu1 %vm1723_vm14, %v6127_v17 }
 0xe1a   :  { %5672 = vmatprep.mubr.msk.bf16.mxu1 %vm1723_vm14, %v6128_v16 }
 0xe1c   :  { %v3349_v60 = vpop.permute.xlu0 %3348 }
 0xe21   :  { %5673 = vmatmul.mubr.msk.bf16.vlgmr.msra.gmra.mrb[16].mxu1 %vm1723_vm14, %v6129_v53 }
 0xe22   :  { %5681 = vmatpush3.bf16.msra.mxu1 %v3094_v33  ;;  %5676 = vmatprep.mubr.msk.bf16.mxu1 %vm1723_vm14, %v6130_v0 }
 0xe23   :  { %5682 = vmatprep.subr.bf16.mxu1 %v3095_v15 }
 0xe26   :  { %5683 = vmatpush3.bf16.msra.mxu1 %v3095_v15 }
 0xe27   :  { %5692 = vmatprep.subr.bf16.mxu1 %v3219_v55 }
 0xe29   :  { %5677 = vmatmul.mubr.msk.bf16.gmra.mrb[20].mxu1 %vm1723_vm14, %v6131_v20  ;;  %v6254_v20 = vmov 13  }
 0xe2a   :  { %5684 = vmatprep.mubr.msk.bf16.mxu1 %vm1723_vm14, %v6132_v43  ;;  %6062 = vset.pattern.permute.xlu0 %v6254_v20 }
 0xe2b   :  { %6063 = vset.pattern.permute.xlu1 %v6254_v20 }
 0xe31   :  { %5685 = vmatmul.mubr.msk.bf16.vlgmr.msra.gmra.mrb[16].mxu1 %vm1723_vm14, %v6133_v63 }
 0xe32   :  { %5693 = vmatpush3.bf16.msra.mxu1 %v3219_v55  ;;  %5688 = vmatprep.mubr.msk.bf16.mxu1 %vm1723_vm14, %v6134_v2 }
 0xe33   :  { %5694 = vmatprep.subr.bf16.mxu1 %v3220_v6 }
 0xe36   :  { %5695 = vmatpush3.bf16.msra.mxu1 %v3220_v6 }
 0xe37   :  { %5816 = vmatprep.subr.bf16.mxu1 %v6242_v32 }
 0xe39   :  { %5689 = vmatmul.mubr.msk.bf16.gmra.mrb[20].mxu1 %vm1723_vm14, %v6135_v44 }
 0xe3a   :  { %5696 = vmatprep.mubr.msk.bf16.mxu1 %vm1723_vm14, %v6136_v7 }
 0xe41   :  { %5697 = vmatmul.mubr.msk.bf16.vlgmr.msra.gmra.mrb[16].mxu1 %vm1723_vm14, %v6137_v41 }
 0xe42   :  { %5700 = vmatprep.mubr.msk.bf16.mxu1 %vm1723_vm14, %v6138_v8 }
 0xe49   :  { %5701 = vmatmul.mubr.msk.bf16.gmra.mrb[20].mxu1 %vm1723_vm14, %v6139_v49 }
 0xe4a   :  { %5824 = vmatprep.mubr.msk.bf16.mxu1 %vm6243_vm9, %v6242_v32 }
 0xf14   :  { %v5698_v50 = vpop.f32.mrb[16].mxu1 }
 0xf15   :  { %v3358_v11 = vadd.f32 %v5698_v50, %v3329_v51  ;;  %v3269_v12 = vpop.f32.mrb[17].mxu1 }
 0xf16   :  { %v3356_v13 = vadd.f32 %v3319_v9, %v3269_v12  ;;  %v5699_v14 = vpop.f32.mrb[18].mxu1 }
 0xf17   :  { %v7092_v19 = vmul.f32 %v3358_v11, %v6365_v30  ;;  %v3272_v21 = vpop.f32.mrb[19].mxu1  ;;  %v3359_v23 = vadd.f32 %v5699_v14, %v3334_v18 }
 0xf18   :  { %v7095_v22 = vmul.f32 %v3356_v13, %v6365_v30  ;;  %v3357_v24 = vadd.f32 %v3324_v10, %v3272_v21 }
 0xf19   :  { %3376 = vadd.xlane.f32.xlu1 %v7092_v19  ;;  %v3390_v57 = vmul.f32 %v7092_v19, %v7092_v19  ;;  %v7102_v59 = vmul.f32 %v3359_v23, %v6365_v30 }
 0xf1a   :  { %3372 = vadd.xlane.f32.xlu0 %v7095_v22  ;;  %v7106_v28 = vmul.f32 %v3357_v24, %v6365_v30  ;;  %v3388_v35 = vmul.f32 %v7095_v22, %v7095_v22 }
 0xf1b   :  { %v3391_v40 = vmul.f32 %v7102_v59, %v7102_v59 }
 0xf1c   :  { %v5702_v61 = vpop.f32.mrb[20].mxu1  ;;  %v3389_v16 = vmul.f32 %v7106_v28, %v7106_v28 }
 0xf1d   :  { %v3285_v26 = vpop.f32.mrb[21].mxu1  ;;  %3400 = vadd.xlane.f32.xlu1 %v3390_v57  ;;  %v3362_v29 = vadd.f32 %v5702_v61, %v3349_v60 }
 0xf1e   :  { %v5703_v27 = vpop.f32.mrb[22].mxu1  ;;  %3378 = vadd.xlane.f32.xlu0 %v7102_v59  ;;  %v3360_v39 = vadd.f32 %v3339_v45, %v3285_v26 }
 0xf1f   :  { %v3288_v31 = vpop.f32.mrb[23].mxu1  ;;  %v7112_v38 = vmul.f32 %v3362_v29, %v6365_v30  ;;  %v3363_v33 = vadd.f32 %v5703_v27, %v3354_v46 }
 0xf20   :  { %v7118_v17 = vmul.f32 %v3360_v39, %v6365_v30  ;;  %v3361_v0 = vadd.f32 %v3344_v37, %v3288_v31 }
 0xf21   :  { %3374 = vadd.xlane.f32.xlu1 %v7106_v28  ;;  %v7126_v53 = vmul.f32 %v3363_v33, %v6365_v30  ;;  %v3394_v42 = vmul.f32 %v7112_v38, %v7112_v38 }
 0xf22   :  { %3396 = vadd.xlane.f32.xlu0 %v3388_v35  ;;  %v3392_v52 = vmul.f32 %v7118_v17, %v7118_v17  ;;  %v7132_v15 = vmul.f32 %v3361_v0, %v6365_v30 }
 0xf23   :  { %v3395_v54 = vmul.f32 %v7126_v53, %v7126_v53 }
 0xf24   :  { %v3393_v47 = vmul.f32 %v7132_v15, %v7132_v15 }
 0xf25   :  { %3384 = vadd.xlane.f32.xlu1 %v7112_v38 }
 0xf26   :  { %3402 = vadd.xlane.f32.xlu0 %v3391_v40 }
 0xf29   :  { %3380 = vadd.xlane.f32.xlu1 %v7118_v17 }
 0xf2a   :  { %3398 = vadd.xlane.f32.xlu0 %v3389_v16 }
 0xf2d   :  { %3404 = vadd.xlane.f32.xlu1 %v3392_v52 }
 0xf2e   :  { %3386 = vadd.xlane.f32.xlu0 %v7126_v53 }
 0xf31   :  { %3408 = vadd.xlane.f32.xlu1 %v3394_v42 }
 0xf32   :  { %3382 = vadd.xlane.f32.xlu0 %v7132_v15 }
 0xf36   :  { %3406 = vadd.xlane.f32.xlu0 %v3393_v47 }
 0xf3a   :  { %3410 = vadd.xlane.f32.xlu0 %v3395_v54 }
 0xfa6   :  { %v3377_v55 = vpop.xlane.xlu1 %3376 }
 0xfa7   :  { %v7141_v43 = vmul.f32 0.03125, %v3377_v55  ;;  %v3373_v63 = vpop.xlane.xlu0 %3372 }
 0xfa8   :  { %v3412_v44 = vmul.f32 0.03125, %v3373_v63 }
 0xfa9   :  { %v3430_v3 = vmul.f32 %v7141_v43, %v7141_v43 }
 0xfaa   :  { %v3401_v2 = vpop.xlane.xlu1 %3400  ;;  %v3428_v9 = vmul.f32 %v3412_v44, %v3412_v44 }
 0xfab   :  { %v3422_v4 = vmul.f32 0.03125, %v3401_v2  ;;  %v3379_v6 = vpop.xlane.xlu0 %3378 }
 0xfac   :  { %v7145_v10 = vmul.f32 0.03125, %v3379_v6 }
 0xfad   :  { %v3438_v7 = vsub.f32 %v3422_v4, %v3430_v3 }
 0xfae   :  { %v3375_v41 = vpop.xlane.xlu1 %3374  ;;  %v3431_v14 = vmul.f32 %v7145_v10, %v7145_v10 }
 0xfaf   :  { %v3446_v8 = vmax.f32 %v3438_v7, 0.0  ;;  %v3397_v49 = vpop.xlane.xlu0 %3396  ;;  %v7149_v45 = vmul.f32 0.03125, %v3375_v41 }
 0xfb0   :  { %v3420_v51 = vmul.f32 0.03125, %v3397_v49 }
 0xfb1   :  { %v3454_v12 = vadd.f32 1e-05, %v3446_v8  ;;  %v3429_v26 = vmul.f32 %v7149_v45, %v7149_v45 }
 0xfb2   :  { %v3436_v50 = vsub.f32 %v3420_v51, %v3428_v9  ;;  %v3385_v11 = vpop.xlane.xlu1 %3384 }
 0xfb3   :  { %v3403_v13 = vpop.xlane.xlu0 %3402  ;;  %6192 = vrsqrt.f32 %v3454_v12  ;;  %v3418_v39 = vmul.f32 0.03125, %v3385_v11 }
 0xfb4   :  { %v3444_v18 = vmax.f32 %v3436_v50, 0.0  ;;  %v3423_v21 = vmul.f32 0.03125, %v3403_v13 }
 0xfb5   :  { %v3434_v47 = vmul.f32 %v3418_v39, %v3418_v39 }
 0xfb6   :  { %v3452_v23 = vadd.f32 1e-05, %v3444_v18  ;;  %v3439_v24 = vsub.f32 %v3423_v21, %v3431_v14  ;;  %v3381_v57 = vpop.xlane.xlu1 %3380 }
 0xfb7   :  { %v7151_v60 = vmul.f32 0.03125, %v3381_v57  ;;  %v3399_v61 = vpop.xlane.xlu0 %3398 }
 0xfb8   :  { %6194 = vrsqrt.f32 %v3452_v23  ;;  %v3447_v27 = vmax.f32 %v3439_v24, 0.0  ;;  %v3421_v29 = vmul.f32 0.03125, %v3399_v61 }
 0xfb9   :  { %v3432_v40 = vmul.f32 %v7151_v60, %v7151_v60 }
 0xfba   :  { %v3455_v31 = vadd.f32 1e-05, %v3447_v27  ;;  %v3437_v35 = vsub.f32 %v3421_v29, %v3429_v26  ;;  %v3405_v37 = vpop.xlane.xlu1 %3404 }
 0xfbb   :  { %v3424_v46 = vmul.f32 0.03125, %v3405_v37  ;;  %v3387_v33 = vpop.xlane.xlu0 %3386 }
 0xfbc   :  { %6196 = vrsqrt.f32 %v3455_v31  ;;  %v3445_v16 = vmax.f32 %v3437_v35, 0.0  ;;  %v3419_v9 = vmul.f32 0.03125, %v3387_v33 }
 0xfbd   :  { %v3440_v52 = vsub.f32 %v3424_v46, %v3432_v40  ;;  %v6193_v3 = vpop.eup %6192 }
 0xfbe   :  { %v3453_v0 = vadd.f32 1e-05, %v3445_v16  ;;  %v3409_v42 = vpop.xlane.xlu1 %3408  ;;  %v3470_v13 = vmul.f32 %v6193_v3, %v6931_v58  ;;  %v3435_v23 = vmul.f32 %v3419_v9, %v3419_v9 }
 0xfbf   :  { %v3448_v54 = vmax.f32 %v3440_v52, 0.0  ;;  %v3426_v55 = vmul.f32 0.03125, %v3409_v42  ;;  %v3383_v63 = vpop.xlane.xlu0 %3382 }
 0xfc0   :  { %6198 = vrsqrt.f32 %v3453_v0  ;;  %v3417_v2 = vmul.f32 0.03125, %v3383_v63  ;;  %v3478_v61 = vmul.f32 %v3470_v13, %v7141_v43 }
 0xfc1   :  { %v3456_v4 = vadd.f32 1e-05, %v3448_v54  ;;  %v3442_v6 = vsub.f32 %v3426_v55, %v3434_v47 }
 0xfc2   :  { %v6195_v7 = vpop.eup %6194  ;;  %v3433_v51 = vmul.f32 %v3417_v2, %v3417_v2 }
 0xfc3   :  { %6200 = vrsqrt.f32 %v3456_v4  ;;  %v3450_v41 = vmax.f32 %v3442_v6, 0.0  ;;  %v3407_v8 = vpop.xlane.xlu0 %3406  ;;  %v3468_v49 = vmul.f32 %v6195_v7, %v6919_v56 }
 0xfc4   :  { %v3425_v50 = vmul.f32 0.03125, %v3407_v8 }
 0xfc5   :  { %v3458_v11 = vadd.f32 1e-05, %v3450_v41  ;;  %v3476_v12 = vmul.f32 %v3468_v49, %v3412_v44 }
 0xfc6   :  { %v6197_v14 = vpop.eup %6196  ;;  %v3441_v18 = vsub.f32 %v3425_v50, %v3433_v51 }
 0xfc7   :  { %6202 = vrsqrt.f32 %v3458_v11  ;;  %3492 = vrot.lane.b32.xlu1 %v3476_v12, %s6240_s17  ;;  %v3411_v21 = vpop.xlane.xlu0 %3410  ;;  %v3471_v26 = vmul.f32 %v6197_v14, %v6943_v1 }
 0xfc8   :  { %v3449_v24 = vmax.f32 %v3441_v18, 0.0  ;;  %v3427_v57 = vmul.f32 0.03125, %v3411_v21 }
 0xfc9   :  { %v3479_v40 = vmul.f32 %v3471_v26, %v7145_v10 }
 0xfca   :  { %v6199_v27 = vpop.eup %6198  ;;  %v3457_v29 = vadd.f32 1e-05, %v3449_v24  ;;  %v3443_v31 = vsub.f32 %v3427_v57, %v3435_v23 }
 0xfcb   :  { %3496 = vrot.lane.b32.xlu1 %v3478_v61, %s6240_s17  ;;  %v3469_v44 = vmul.f32 %v6199_v27, %v6924_v48 }
 0xfcc   :  { %6204 = vrsqrt.f32 %v3457_v29  ;;  %v3451_v35 = vmax.f32 %v3443_v31, 0.0 }
 0xfcd   :  { %v6201_v37 = vpop.eup %6200  ;;  %v3477_v46 = vmul.f32 %v3469_v44, %v7149_v45 }
 0xfce   :  { %v3459_v33 = vadd.f32 1e-05, %v3451_v35  ;;  %v3472_v16 = vmul.f32 %v6201_v37, %v6936_v62 }
 0xfcf   :  { %3498 = vrot.lane.b32.xlu1 %v3479_v40, %s6240_s17  ;;  %3494 = vrot.lane.b32.xlu0 %v3477_v46, %s6240_s17 }
 0xfd0   :  { %6206 = vrsqrt.f32 %v3459_v33  ;;  %v3480_v43 = vmul.f32 %v3472_v16, %v7151_v60  ;;  %v6255_v60 = vmov 14  }
 0xfd1   :  { %v6203_v52 = vpop.eup %6202 }
 0xfd2   :  { %v3474_v0 = vmul.f32 %v6203_v52, %v6948_v34 }
 0xfd3   :  { %3500 = vrot.lane.b32.xlu0 %v3480_v43, %s6240_s17 }
 0xfd4   :  { %v3482_v42 = vmul.f32 %v3474_v0, %v3418_v39 }
 0xfd6   :  { %v6205_v47 = vpop.eup %6204 }
 0xfd7   :  { %3504 = vrot.lane.b32.xlu0 %v3482_v42, %s6240_s17  ;;  %v3473_v10 = vmul.f32 %v6205_v47, %v6955_v36 }
 0xfd9   :  { %v3481_v45 = vmul.f32 %v3473_v10, %v3417_v2 }
 0xfda   :  { %v6207_v54 = vpop.eup %6206 }
 0xfdb   :  { %3502 = vrot.lane.b32.xlu1 %v3481_v45, %s6240_s17  ;;  %3526 = vperm.xlu0 %6062, %v3468_v49   ;;  %v3475_v55 = vmul.f32 %v6207_v54, %v6962_v5 }
 0xfdd   :  { %v3483_v63 = vmul.f32 %v3475_v55, %v3419_v9 }
 0xfdf   :  { %3506 = vrot.lane.b32.xlu1 %v3483_v63, %s6240_s17  ;;  %3546 = vperm.xlu0 %6062, %v3472_v16  }
 0xfe3   :  { %3531 = vperm.xlu1 %6063, %v3469_v44   ;;  %6065 = vset.pattern.permute.xlu0 %v6255_v60 }
 0xfe7   :  { %3536 = vperm.xlu1 %6063, %v3470_v13  }
 0xfeb   :  { %3541 = vperm.xlu1 %6063, %v3471_v26  }
 0xfef   :  { %6064 = vset.pattern.permute.xlu1 %v6255_v60 }
0x1039   :  { %v3493_v39 = vpop.permute.xlu1 %3492 }
0x103a   :  { %v3516_v3 = vsub.f32 %v6919_v56, %v3493_v39  ;;  %v6140_v39 = vld [vmem:[%s7655_s2 + $0x250] sm:$0xff]  }
0x103b   :  { %5712 = vmatprep.mubr.msk.bf16.mxu0 %vm3720_vm15, %v6140_v39 }
0x103c   :  { %3574 = vperm.xlu1 %6064, %v3516_v3  }
0x103d   :  { %v3497_v2 = vpop.permute.xlu1 %3496 }
0x103e   :  { %v3518_v8 = vsub.f32 %v6931_v58, %v3497_v2 }
0x1041   :  { %v3495_v4 = vpop.permute.xlu0 %3494  ;;  %v3499_v6 = vpop.permute.xlu1 %3498 }
0x1042   :  { %v3517_v7 = vsub.f32 %v6924_v48, %v3495_v4  ;;  %v3519_v41 = vsub.f32 %v6943_v1, %v3499_v6 }
0x1044   :  { %3579 = vperm.xlu0 %6065, %v3517_v7   ;;  %3589 = vperm.xlu1 %6064, %v3519_v41  }
0x1045   :  { %v3501_v49 = vpop.permute.xlu0 %3500 }
0x1046   :  { %v3520_v1 = vsub.f32 %v6936_v62, %v3501_v49 }
0x1048   :  { %3584 = vperm.xlu0 %6065, %v3518_v8   ;;  %6066 = vset.pattern.permute.xlu1 %v6254_v20 }
0x1049   :  { %3551 = vperm.xlu1 %6066, %v3473_v10   ;;  %v3505_v51 = vpop.permute.xlu0 %3504 }
0x104a   :  { %v3522_v48 = vsub.f32 %v6948_v34, %v3505_v51 }
0x104d   :  { %3556 = vperm.xlu1 %6066, %v3474_v0   ;;  %v3503_v9 = vpop.permute.xlu1 %3502 }
0x104e   :  { %v3521_v56 = vsub.f32 %v6955_v36, %v3503_v9 }
0x1050   :  { %3599 = vperm.xlu0 %6065, %v3521_v56  }
0x1051   :  { %3561 = vperm.xlu1 %6066, %v3475_v55   ;;  %v3507_v50 = vpop.permute.xlu1 %3506 }
0x1052   :  { %v3523_v58 = vsub.f32 %v6962_v5, %v3507_v50 }
0x1054   :  { %3604 = vperm.xlu0 %6065, %v3522_v48  }
0x1055   :  { %6067 = vset.pattern.permute.xlu1 %v6255_v60 }
0x1056   :  { %3594 = vperm.xlu1 %6067, %v3520_v1  }
0x1058   :  { %3696 = vrot.lane.b32.xlu0 %v6850_v25, %s6241_s18 }
0x105a   :  { %3609 = vperm.xlu1 %6067, %v3523_v58   ;;  %v3527_v36 = vpop.permute.xlu0 %3526 }
0x105b   :  { %v3564_v11 = vmul.f32 %v3527_v36, %v7095_v22  ;;  %v6256_v36 = vmov 15  }
0x105c   :  { %3700 = vrot.lane.b32.xlu0 %v6850_v25, %s6241_s18 }
0x105d   :  { %6068 = vset.pattern.permute.xlu0 %v6256_v36 }
0x105e   :  { %v3547_v12 = vpop.permute.xlu0 %3546  ;;  %6069 = vset.pattern.permute.xlu1 %v6256_v36 }
0x105f   :  { %v3568_v47 = vmul.f32 %v3547_v12, %v7118_v17  ;;  %v7340_v12 = vld [vmem:[%s7658_s3 + $0x20] sm:$0xff] }
0x1060   :  { %3704 = vrot.lane.b32.xlu0 %v6850_v25, %s6241_s18 }
0x1062   :  { %v3532_v62 = vpop.permute.xlu1 %3531 }
0x1063   :  { %v3565_v14 = vmul.f32 %v3532_v62, %v7106_v28  ;;  %v7315_v62 = vld [vmem:[%s7658_s3 + $0x8] sm:$0xff] }
0x1064   :  { %3708 = vrot.lane.b32.xlu0 %v6850_v25, %s6241_s18 }
0x1066   :  { %v3537_v34 = vpop.permute.xlu1 %3536 }
0x1067   :  { %v3566_v26 = vmul.f32 %v3537_v34, %v7092_v19  ;;  %v7320_v34 = vld [vmem:[%s7658_s3] sm:$0xff] }
0x1068   :  { %3818 = vrot.lane.b32.xlu0 %v6850_v25, %s6237_s16 }
0x106a   :  { %v3542_v5 = vpop.permute.xlu1 %3541 }
0x106b   :  { %v3567_v18 = vmul.f32 %v3542_v5, %v7102_v59  ;;  %v7328_v5 = vld [vmem:[%s7658_s3 + $0x10] sm:$0xff] }
0x106c   :  { %3822 = vrot.lane.b32.xlu0 %v6850_v25, %s6237_s16 }
0x1070   :  { %3826 = vrot.lane.b32.xlu0 %v6850_v25, %s6237_s16 }
0x1074   :  { %3830 = vrot.lane.b32.xlu0 %v6850_v25, %s6237_s16 }
0x1078   :  { %3947 = vrot.lane.b32.xlu0 %v6850_v25, %s6240_s17 }
0x107c   :  { %3951 = vrot.lane.b32.xlu0 %v6850_v25, %s6240_s17 }
0x1080   :  { %3955 = vrot.lane.b32.xlu0 %v6850_v25, %s6240_s17 }
0x1084   :  { %3959 = vrot.lane.b32.xlu0 %v6850_v25, %s6240_s17 }
0x10bb   :  { %v3575_v20 = vpop.permute.xlu1 %3574 }
0x10bc   :  { %v3612_v13 = vadd.f32 %v3575_v20, %v3564_v11  ;;  %v7333_v20 = vld [vmem:[%s7658_s3 + $0x18] sm:$0xff] }
0x10be   :  { %v3620_v24 = vmax.f32 %v3612_v13, 0.0  ;;  %v7345_v13 = vld [vmem:[%s7658_s3 + $0x28] sm:$0xff] }
0x10c0   :  { %v3628_v31 = vmul.f32 %v3620_v24, %v6365_v30 }
0x10c3   :  { %v3580_v21 = vpop.permute.xlu0 %3579  ;;  %v3590_v23 = vpop.permute.xlu1 %3589 }
0x10c4   :  { %v3613_v57 = vadd.f32 %v3580_v21, %v3565_v14  ;;  %v3615_v61 = vadd.f32 %v3590_v23, %v3567_v18  ;;  %v7352_v14 = vld [vmem:[%s7658_s3 + $0x30] sm:$0xff]  ;;  %v7357_v21 = vld [vmem:[%s7658_s3 + $0x38] sm:$0xff] }
0x10c6   :  { %v3621_v27 = vmax.f32 %v3613_v57, 0.0  ;;  %v3623_v22 = vmax.f32 %v3615_v61, 0.0 }
0x10c7   :  { %v3585_v29 = vpop.permute.xlu0 %3584 }
0x10c8   :  { %v3629_v44 = vmul.f32 %v3621_v27, %v6365_v30  ;;  %v3614_v35 = vadd.f32 %v3585_v29, %v3566_v26  ;;  %v3552_v37 = vpop.permute.xlu1 %3551  ;;  %v3631_v59 = vmul.f32 %v3623_v22, %v6365_v30  ;;  %v6141_v27 = vld [vmem:[%s7655_s2 + $0x258] sm:$0xff]   ;;  %v6142_v29 = vld [vmem:[%s7655_s2 + $0x260] sm:$0xff]  }
0x10c9   :  { %v3569_v43 = vmul.f32 %v3552_v37, %v7132_v15 }
0x10ca   :  { %v7216_v40 = vpack.c.bf16 %v3629_v44, %v3628_v31  ;;  %v3622_v28 = vmax.f32 %v3614_v35, 0.0 }
0x10cc   :  { %3640 = vst [vmem:[#allocation2 + $0x8] sm:$0xff] %v7216_v40  ;;  %v3630_v46 = vmul.f32 %v3622_v28, %v6365_v30  ;;  %v3557_v33 = vpop.permute.xlu1 %3556  ;;  %4213 = vrot.lane.b32.xlu0 %v7216_v40, %s6231_s10  ;;  %3698 = vrot.lane.b32.xlu1 %v7216_v40, %s6241_s18  ;;  %v6143_v28 = vld [vmem:[%s7655_s2 + $0x268] sm:$0xff]  }
0x10cd   :  { %v3570_v10 = vmul.f32 %v3557_v33, %v7112_v38 }
0x10ce   :  { %v7225_v19 = vpack.c.bf16 %v3631_v59, %v3630_v46  ;;  %v6144_v59 = vld [vmem:[%s7655_s2 + $0x230] sm:$0xff]  }
0x10cf   :  { %v3600_v16 = vpop.permute.xlu0 %3599 }
0x10d0   :  { %v3562_v52 = vpop.permute.xlu1 %3561  ;;  %4217 = vrot.lane.b32.xlu0 %v7225_v19, %s6231_s10  ;;  %3702 = vrot.lane.b32.xlu1 %v7225_v19, %s6241_s18  ;;  %v3617_v0 = vadd.f32 %v3600_v16, %v3569_v43 }
0x10d1   :  { %v3571_v60 = vmul.f32 %v3562_v52, %v7126_v53 }
0x10d2   :  { %v3625_v54 = vmax.f32 %v3617_v0, 0.0 }
0x10d3   :  { %v3605_v42 = vpop.permute.xlu0 %3604 }
0x10d4   :  { %v3618_v55 = vadd.f32 %v3605_v42, %v3570_v10  ;;  %v3633_v2 = vmul.f32 %v3625_v54, %v6365_v30  ;;  %v6145_v42 = vld [vmem:[%s7655_s2 + $0x238] sm:$0xff]  }
0x10d5   :  { %v3595_v45 = vpop.permute.xlu1 %3594 }
0x10d6   :  { %v3616_v63 = vadd.f32 %v3595_v45, %v3568_v47  ;;  %v3626_v4 = vmax.f32 %v3618_v55, 0.0  ;;  %v6146_v47 = vld [vmem:[%s7655_s2 + $0x240] sm:$0xff]  }
0x10d7   :  { %v3697_v49 = vpop.permute.xlu0 %3696 }
0x10d8   :  { %v3624_v15 = vmax.f32 %v3616_v63, 0.0  ;;  %v3634_v53 = vmul.f32 %v3626_v4, %v6365_v30 }
0x10d9   :  { %v3610_v3 = vpop.permute.xlu1 %3609 }
0x10da   :  { %v3632_v17 = vmul.f32 %v3624_v15, %v6365_v30  ;;  %v3619_v6 = vadd.f32 %v3610_v3, %v3571_v60  ;;  %v6147_v60 = vld [vmem:[%s7655_s2 + $0x248] sm:$0xff]   ;;  %v6148_v15 = vld [vmem:[%s7655_s2 + $0x270] sm:$0xff]  }
0x10db   :  { %v3701_v9 = vpop.permute.xlu0 %3700 }
0x10dc   :  { %v7241_v38 = vpack.c.bf16 %v3633_v2, %v3632_v17  ;;  %v3627_v7 = vmax.f32 %v3619_v6, 0.0  ;;  %v6149_v6 = vld [vmem:[%s7655_s2 + $0x278] sm:$0xff]  }
0x10de   :  { %v3635_v41 = vmul.f32 %v3627_v7, %v6365_v30  ;;  %4221 = vrot.lane.b32.xlu0 %v7241_v38, %s6231_s10  ;;  %3706 = vrot.lane.b32.xlu1 %v7241_v38, %s6241_s18  ;;  %v6150_v7 = vld [vmem:[%s7655_s2 + $0x280] sm:$0xff]  }
0x10df   :  { %v3705_v56 = vpop.permute.xlu0 %3704 }
0x10e0   :  { %v7249_v8 = vpack.c.bf16 %v3635_v41, %v3634_v53 }
0x10e2   :  { %4225 = vrot.lane.b32.xlu0 %v7249_v8, %s6231_s10  ;;  %3710 = vrot.lane.b32.xlu1 %v7249_v8, %s6241_s18 }
0x10e3   :  { %v3709_v51 = vpop.permute.xlu0 %3708 }
0x10e6   :  { %4350 = vrot.lane.b32.xlu0 %v7216_v40, %s6232_s11  ;;  %3820 = vrot.lane.b32.xlu1 %v7216_v40, %s6237_s16 }
0x10e7   :  { %v3819_v50 = vpop.permute.xlu0 %3818 }
0x10ea   :  { %4354 = vrot.lane.b32.xlu0 %v7225_v19, %s6232_s11  ;;  %3824 = vrot.lane.b32.xlu1 %v7225_v19, %s6237_s16 }
0x10eb   :  { %v3823_v11 = vpop.permute.xlu0 %3822 }
0x10ee   :  { %4358 = vrot.lane.b32.xlu0 %v7241_v38, %s6232_s11  ;;  %3828 = vrot.lane.b32.xlu1 %v7241_v38, %s6237_s16 }
0x10ef   :  { %v3827_v18 = vpop.permute.xlu0 %3826 }
0x10f2   :  { %4362 = vrot.lane.b32.xlu0 %v7249_v8, %s6232_s11  ;;  %3832 = vrot.lane.b32.xlu1 %v7249_v8, %s6237_s16 }
0x10f3   :  { %v3831_v57 = vpop.permute.xlu0 %3830 }
0x10f6   :  { %4487 = vrot.lane.b32.xlu0 %v7216_v40, %s6233_s12  ;;  %3949 = vrot.lane.b32.xlu1 %v7216_v40, %s6240_s17 }
0x10f7   :  { %v3948_v22 = vpop.permute.xlu0 %3947 }
0x10fa   :  { %4491 = vrot.lane.b32.xlu0 %v7225_v19, %s6233_s12  ;;  %3953 = vrot.lane.b32.xlu1 %v7225_v19, %s6240_s17 }
0x10fb   :  { %v3952_v46 = vpop.permute.xlu0 %3951 }
0x10fe   :  { %4495 = vrot.lane.b32.xlu0 %v7241_v38, %s6233_s12  ;;  %3957 = vrot.lane.b32.xlu1 %v7241_v38, %s6240_s17 }
0x10ff   :  { %v3956_v0 = vpop.permute.xlu0 %3955 }
0x1102   :  { %4499 = vrot.lane.b32.xlu0 %v7249_v8, %s6233_s12  ;;  %3961 = vrot.lane.b32.xlu1 %v7249_v8, %s6240_s17 }
0x1103   :  { %v3960_v54 = vpop.permute.xlu0 %3959 }
0x1106   :  { %4215 = vrot.lane.b32.xlu1 %v6850_v25, %s6231_s10  ;;  %4606 = vperm.xlu0 %6068, %v7320_v34  }
0x110a   :  { %4219 = vrot.lane.b32.xlu1 %v6850_v25, %s6231_s10  ;;  %4621 = vperm.xlu0 %6068, %v7333_v20  }
0x110e   :  { %4223 = vrot.lane.b32.xlu1 %v6850_v25, %s6231_s10  ;;  %4631 = vperm.xlu0 %6068, %v7345_v13  }
0x1112   :  { %4227 = vrot.lane.b32.xlu1 %v6850_v25, %s6231_s10  ;;  %4641 = vperm.xlu0 %6068, %v7357_v21  }
0x1116   :  { %4352 = vrot.lane.b32.xlu1 %v6850_v25, %s6232_s11 }
0x111a   :  { %4356 = vrot.lane.b32.xlu1 %v6850_v25, %s6232_s11 }
0x111e   :  { %4360 = vrot.lane.b32.xlu1 %v6850_v25, %s6232_s11 }
0x1122   :  { %4364 = vrot.lane.b32.xlu1 %v6850_v25, %s6232_s11 }
0x1126   :  { %4489 = vrot.lane.b32.xlu1 %v6850_v25, %s6233_s12 }
0x112a   :  { %4493 = vrot.lane.b32.xlu1 %v6850_v25, %s6233_s12 }
0x112e   :  { %4497 = vrot.lane.b32.xlu1 %v6850_v25, %s6233_s12 }
0x1132   :  { %4501 = vrot.lane.b32.xlu1 %v6850_v25, %s6233_s12 }
0x1136   :  { %4611 = vperm.xlu1 %6069, %v7315_v62  }
0x113a   :  { %4616 = vperm.xlu1 %6069, %v7328_v5  }
0x113e   :  { %v3699_v48 = vpop.permute.xlu1 %3698  ;;  %4626 = vperm.xlu1 %6069, %v7340_v12   ;;  %v4214_v2 = vpop.permute.xlu0 %4213 }
0x113f   :  { %v3712_v1 = vsel %vm478_vm10, %v3697_v49, %v3699_v48 }
0x1140   :  { %5704 = vmatprep.subr.bf16.mxu0 %v3712_v1 }
0x1141   :  { %5705 = vmatpush3.bf16.msra.mxu0 %v3712_v1 }
0x1142   :  { %v3703_v58 = vpop.permute.xlu1 %3702  ;;  %4636 = vperm.xlu1 %6069, %v7352_v14   ;;  %v4218_v53 = vpop.permute.xlu0 %4217 }
0x1143   :  { %v3713_v25 = vsel %vm478_vm10, %v3701_v9, %v3703_v58  ;;  %v6154_v58 = vld [vmem:[%s7655_s2 + $0x2a0] sm:$0xff]  }
0x1144   :  { %5706 = vmatprep.subr.bf16.mxu0 %v3713_v25 }
0x1145   :  { %5707 = vmatpush3.bf16.msra.mxu0 %v3713_v25 }
0x1150   :  { %v3707_v23 = vpop.permute.xlu1 %3706  ;;  %v4222_v49 = vpop.permute.xlu0 %4221 }
0x1151   :  { %v3714_v24 = vsel %vm478_vm10, %v3705_v56, %v3707_v23  ;;  %v6151_v56 = vld [vmem:[%s7655_s2 + $0x288] sm:$0xff]  }
0x1152   :  { %5708 = vmatprep.subr.bf16.mxu0 %v3714_v24 }
0x1153   :  { %5709 = vmatpush3.bf16.msra.mxu0 %v3714_v24  ;;  %v6156_v24 = vld [vmem:[%s7655_s2 + $0x2b0] sm:$0xff]  }
0x1154   :  { %v3711_v61 = vpop.permute.xlu1 %3710 }
0x1155   :  { %v3715_v26 = vsel %vm478_vm10, %v3709_v51, %v3711_v61  ;;  %v6152_v51 = vld [vmem:[%s7655_s2 + $0x290] sm:$0xff]  }
0x1156   :  { %5710 = vmatprep.subr.bf16.mxu0 %v3715_v26 }
0x1157   :  { %5711 = vmatpush3.bf16.msra.mxu0 %v3715_v26 }
0x1158   :  { %v3821_v31 = vpop.permute.xlu1 %3820 }
0x1159   :  { %v3834_v44 = vsel %vm352_vm8, %v3819_v50, %v3821_v31  ;;  %v6158_v31 = vld [vmem:[%s7655_s2 + $0x2c0] sm:$0xff]  }
0x115a   :  { %5713 = vmatmul.mubr.msk.bf16.vlgmr.msra.gmra.mrb[20].mxu0 %vm3720_vm15, %v6141_v27  ;;  %5720 = vmatprep.subr.bf16.mxu0 %v3834_v44  ;;  %v6157_v27 = vld [vmem:[%s7655_s2 + $0x2b8] sm:$0xff]  }
0x115b   :  { %5721 = vmatpush3.bf16.msra.mxu0 %v3834_v44  ;;  %5716 = vmatprep.mubr.msk.bf16.mxu0 %vm3720_vm15, %v6142_v29 }
0x115c   :  { %v3825_v35 = vpop.permute.xlu1 %3824 }
0x115d   :  { %v3835_v37 = vsel %vm352_vm8, %v3823_v11, %v3825_v35 }
0x115e   :  { %5722 = vmatprep.subr.bf16.mxu0 %v3835_v37 }
0x115f   :  { %5723 = vmatpush3.bf16.msra.mxu0 %v3835_v37 }
0x1160   :  { %v3829_v33 = vpop.permute.xlu1 %3828 }
0x1161   :  { %v3836_v16 = vsel %vm352_vm8, %v3827_v18, %v3829_v33 }
0x1162   :  { %5717 = vmatmul.mubr.msk.bf16.gmra.mrb[24].mxu0 %vm3720_vm15, %v6143_v28  ;;  %5724 = vmatprep.subr.bf16.mxu0 %v3836_v16  ;;  %v6159_v28 = vld [vmem:[%s7655_s2 + $0x2c8] sm:$0xff]  }
0x1163   :  { %5725 = vmatpush3.bf16.msra.mxu0 %v3836_v16  ;;  %5728 = vmatprep.mubr.msk.bf16.mxu0 %vm3720_vm15, %v6144_v59 }
0x1164   :  { %v3833_v43 = vpop.permute.xlu1 %3832 }
0x1165   :  { %v3837_v52 = vsel %vm352_vm8, %v3831_v57, %v3833_v43 }
0x1166   :  { %5726 = vmatprep.subr.bf16.mxu0 %v3837_v52 }
0x1167   :  { %5727 = vmatpush3.bf16.msra.mxu0 %v3837_v52 }
0x1168   :  { %v3950_v10 = vpop.permute.xlu1 %3949 }
0x1169   :  { %v3963_v45 = vsel %vm592_vm12, %v3948_v22, %v3950_v10 }
0x116a   :  { %5729 = vmatmul.mubr.msk.bf16.vlgmr.msra.gmra.mrb[20].mxu0 %vm3720_vm15, %v6145_v42  ;;  %5736 = vmatprep.subr.bf16.mxu0 %v3963_v45 }
0x116b   :  { %5737 = vmatpush3.bf16.msra.mxu0 %v3963_v45  ;;  %5732 = vmatprep.mubr.msk.bf16.mxu0 %vm3720_vm15, %v6146_v47  ;;  %v6162_v47 = vld [vmem:[%s7655_s2 + $0x2e0] sm:$0xff]  }
0x116c   :  { %v3954_v55 = vpop.permute.xlu1 %3953 }
0x116d   :  { %v3964_v63 = vsel %vm592_vm12, %v3952_v46, %v3954_v55  ;;  %v6160_v46 = vld [vmem:[%s7655_s2 + $0x2d0] sm:$0xff]   ;;  %v6163_v55 = vld [vmem:[%s7655_s2 + $0x2e8] sm:$0xff]  }
0x116e   :  { %5738 = vmatprep.subr.bf16.mxu0 %v3964_v63 }
0x116f   :  { %5739 = vmatpush3.bf16.msra.mxu0 %v3964_v63 }
0x1170   :  { %v3958_v39 = vpop.permute.xlu1 %3957 }
0x1171   :  { %v3965_v3 = vsel %vm592_vm12, %v3956_v0, %v3958_v39  ;;  %v6161_v0 = vld [vmem:[%s7655_s2 + $0x2d8] sm:$0xff]  }
0x1172   :  { %5733 = vmatmul.mubr.msk.bf16.gmra.mrb[24].mxu0 %vm3720_vm15, %v6147_v60  ;;  %5740 = vmatprep.subr.bf16.mxu0 %v3965_v3  ;;  %v6164_v60 = vld [vmem:[%s7655_s2 + $0x2f0] sm:$0xff]  }
0x1173   :  { %5741 = vmatpush3.bf16.msra.mxu0 %v3965_v3  ;;  %5744 = vmatprep.mubr.msk.bf16.mxu0 %vm3720_vm15, %v6148_v15 }
0x1174   :  { %v3962_v4 = vpop.permute.xlu1 %3961 }
0x1175   :  { %v3966_v17 = vsel %vm592_vm12, %v3960_v54, %v3962_v4  ;;  %v6166_v4 = vld [vmem:[%s7655_s2 + $0x300] sm:$0xff]  }
0x1176   :  { %5742 = vmatprep.subr.bf16.mxu0 %v3966_v17 }
0x1177   :  { %5743 = vmatpush3.bf16.msra.mxu0 %v3966_v17  ;;  %v6167_v17 = vld [vmem:[%s7655_s2 + $0x308] sm:$0xff]  }
0x1178   :  { %5752 = vmatprep.subr.bf16.mxu0 %v7216_v40  ;;  %v4216_v41 = vpop.permute.xlu1 %4215 }
0x1179   :  { %v4229_v50 = vsel %vm96_vm3, %v4214_v2, %v4216_v41  ;;  %v6165_v2 = vld [vmem:[%s7655_s2 + $0x2f8] sm:$0xff]  }
0x117a   :  { %5745 = vmatmul.mubr.msk.bf16.vlgmr.msra.gmra.mrb[20].mxu0 %vm3720_vm15, %v6149_v6 }
0x117b   :  { %5753 = vmatpush3.bf16.msra.mxu0 %v7216_v40  ;;  %5748 = vmatprep.mubr.msk.bf16.mxu0 %vm3720_vm15, %v6150_v7  ;;  %v4226_v40 = vpop.permute.xlu0 %4225 }
0x117c   :  { %5754 = vmatprep.subr.bf16.mxu0 %v7225_v19  ;;  %v4220_v9 = vpop.permute.xlu1 %4219 }
0x117d   :  { %v4230_v36 = vsel %vm96_vm3, %v4218_v53, %v4220_v9 }
0x117f   :  { %5755 = vmatpush3.bf16.msra.mxu0 %v7225_v19  ;;  %v6153_v19 = vld [vmem:[%s7655_s2 + $0x298] sm:$0xff]   ;;  %v4351_v25 = vpop.permute.xlu0 %4350 }
0x1180   :  { %5756 = vmatprep.subr.bf16.mxu0 %v7241_v38  ;;  %v4224_v48 = vpop.permute.xlu1 %4223 }
0x1181   :  { %v4231_v23 = vsel %vm96_vm3, %v4222_v49, %v4224_v48 }
0x1182   :  { %5749 = vmatmul.mubr.msk.bf16.gmra.mrb[24].mxu0 %vm3720_vm15, %v6151_v56 }
0x1183   :  { %5757 = vmatpush3.bf16.msra.mxu0 %v7241_v38  ;;  %5760 = vmatprep.mubr.msk.bf16.mxu0 %vm3720_vm15, %v6152_v51  ;;  %v4355_v18 = vpop.permute.xlu0 %4354 }
0x1184   :  { %5758 = vmatprep.subr.bf16.mxu0 %v7249_v8  ;;  %v4228_v1 = vpop.permute.xlu1 %4227 }
0x1185   :  { %v4232_v61 = vsel %vm96_vm3, %v4226_v40, %v4228_v1 }
0x1187   :  { %5759 = vmatpush3.bf16.msra.mxu0 %v7249_v8  ;;  %v6155_v8 = vld [vmem:[%s7655_s2 + $0x2a8] sm:$0xff]   ;;  %v4359_v26 = vpop.permute.xlu0 %4358 }
0x1188   :  { %5768 = vmatprep.subr.bf16.mxu0 %v4229_v50  ;;  %v4353_v38 = vpop.permute.xlu1 %4352 }
0x1189   :  { %v4366_v29 = vsel %vm137_vm4, %v4351_v25, %v4353_v38 }
0x118a   :  { %5761 = vmatmul.mubr.msk.bf16.vlgmr.msra.gmra.mrb[20].mxu0 %vm3720_vm15, %v6153_v19 }
0x118b   :  { %5769 = vmatpush3.bf16.msra.mxu0 %v4229_v50  ;;  %5764 = vmatprep.mubr.msk.bf16.mxu0 %vm3720_vm15, %v6154_v58  ;;  %v4363_v22 = vpop.permute.xlu0 %4362 }
0x118c   :  { %5770 = vmatprep.subr.bf16.mxu0 %v4230_v36  ;;  %v4357_v11 = vpop.permute.xlu1 %4356 }
0x118d   :  { %v4367_v35 = vsel %vm137_vm4, %v4355_v18, %v4357_v11 }
0x118f   :  { %5771 = vmatpush3.bf16.msra.mxu0 %v4230_v36  ;;  %v4488_v33 = vpop.permute.xlu0 %4487 }
0x1190   :  { %5772 = vmatprep.subr.bf16.mxu0 %v4231_v23  ;;  %v4361_v57 = vpop.permute.xlu1 %4360 }
0x1191   :  { %v4368_v59 = vsel %vm137_vm4, %v4359_v26, %v4361_v57 }
0x1192   :  { %5765 = vmatmul.mubr.msk.bf16.gmra.mrb[24].mxu0 %vm3720_vm15, %v6155_v8 }
0x1193   :  { %5773 = vmatpush3.bf16.msra.mxu0 %v4231_v23  ;;  %5776 = vmatprep.mubr.msk.bf16.mxu0 %vm3720_vm15, %v6156_v24  ;;  %v4492_v52 = vpop.permute.xlu0 %4491 }
0x1194   :  { %5774 = vmatprep.subr.bf16.mxu0 %v4232_v61  ;;  %v4365_v44 = vpop.permute.xlu1 %4364 }
0x1195   :  { %v4369_v16 = vsel %vm137_vm4, %v4363_v22, %v4365_v44 }
0x1197   :  { %5775 = vmatpush3.bf16.msra.mxu0 %v4232_v61  ;;  %v4496_v54 = vpop.permute.xlu0 %4495 }
0x1198   :  { %5784 = vmatprep.subr.bf16.mxu0 %v4366_v29  ;;  %v4490_v37 = vpop.permute.xlu1 %4489 }
0x1199   :  { %v4503_v42 = vsel %vm829_vm13, %v4488_v33, %v4490_v37 }
0x119a   :  { %5777 = vmatmul.mubr.msk.bf16.vlgmr.msra.gmra.mrb[20].mxu0 %vm3720_vm15, %v6157_v27 }
0x119b   :  { %5785 = vmatpush3.bf16.msra.mxu0 %v4366_v29  ;;  %5780 = vmatprep.mubr.msk.bf16.mxu0 %vm3720_vm15, %v6158_v31  ;;  %v4500_v39 = vpop.permute.xlu0 %4499 }
0x119c   :  { %5786 = vmatprep.subr.bf16.mxu0 %v4367_v35  ;;  %v4494_v43 = vpop.permute.xlu1 %4493 }
0x119d   :  { %v4504_v45 = vsel %vm829_vm13, %v4492_v52, %v4494_v43 }
0x119f   :  { %5787 = vmatpush3.bf16.msra.mxu0 %v4367_v35  ;;  %v4607_v7 = vpop.permute.xlu0 %4606 }
0x11a0   :  { %5788 = vmatprep.subr.bf16.mxu0 %v4368_v59  ;;  %v4498_v10 = vpop.permute.xlu1 %4497 }
0x11a1   :  { %v4505_v63 = vsel %vm829_vm13, %v4496_v54, %v4498_v10 }
0x11a2   :  { %5781 = vmatmul.mubr.msk.bf16.gmra.mrb[24].mxu0 %vm3720_vm15, %v6159_v28 }
0x11a3   :  { %5789 = vmatpush3.bf16.msra.mxu0 %v4368_v59  ;;  %5792 = vmatprep.mubr.msk.bf16.mxu0 %vm3720_vm15, %v6160_v46  ;;  %v4622_v48 = vpop.permute.xlu0 %4621 }
0x11a4   :  { %5790 = vmatprep.subr.bf16.mxu0 %v4369_v16  ;;  %v4502_v15 = vpop.permute.xlu1 %4501 }
0x11a5   :  { %v4506_v3 = vsel %vm829_vm13, %v4500_v39, %v4502_v15 }
0x11a7   :  { %5791 = vmatpush3.bf16.msra.mxu0 %v4369_v16  ;;  %v4632_v18 = vpop.permute.xlu0 %4631 }
0x11a8   :  { %5800 = vmatprep.subr.bf16.mxu0 %v4503_v42 }
0x11aa   :  { %5793 = vmatmul.mubr.msk.bf16.vlgmr.msra.gmra.mrb[20].mxu0 %vm3720_vm15, %v6161_v0 }
0x11ab   :  { %5801 = vmatpush3.bf16.msra.mxu0 %v4503_v42  ;;  %5796 = vmatprep.mubr.msk.bf16.mxu0 %vm3720_vm15, %v6162_v47  ;;  %v4642_v27 = vpop.permute.xlu0 %4641 }
0x11ac   :  { %5802 = vmatprep.subr.bf16.mxu0 %v4504_v45 }
0x11af   :  { %5803 = vmatpush3.bf16.msra.mxu0 %v4504_v45 }
0x11b0   :  { %5804 = vmatprep.subr.bf16.mxu0 %v4505_v63 }
0x11b2   :  { %5797 = vmatmul.mubr.msk.bf16.gmra.mrb[24].mxu0 %vm3720_vm15, %v6163_v55 }
0x11b3   :  { %5805 = vmatpush3.bf16.msra.mxu0 %v4505_v63  ;;  %5808 = vmatprep.mubr.msk.bf16.mxu0 %vm3720_vm15, %v6164_v60 }
0x11b4   :  { %5806 = vmatprep.subr.bf16.mxu0 %v4506_v3 }
0x11b5   :  { %v4612_v6 = vpop.permute.xlu1 %4611 }
0x11b7   :  { %5807 = vmatpush3.bf16.msra.mxu0 %v4506_v3 }
0x11b9   :  { %v4617_v53 = vpop.permute.xlu1 %4616 }
0x11ba   :  { %5809 = vmatmul.mubr.msk.bf16.vlgmr.msra.gmra.mrb[20].mxu0 %vm3720_vm15, %v6165_v2 }
0x11bb   :  { %5812 = vmatprep.mubr.msk.bf16.mxu0 %vm3720_vm15, %v6166_v4 }
0x11bd   :  { %v4627_v38 = vpop.permute.xlu1 %4626 }
0x11c1   :  { %v4637_v26 = vpop.permute.xlu1 %4636 }
0x11c2   :  { %5813 = vmatmul.mubr.msk.bf16.gmra.mrb[24].mxu0 %vm3720_vm15, %v6167_v17 }
0x128d   :  { %v5810_v41 = vpop.f32.mrb[20].mxu0 }
0x128e   :  { %v4646_v49 = vadd.f32 %v5810_v41, %v4617_v53  ;;  %v4557_v9 = vpop.f32.mrb[21].mxu0 }
0x128f   :  { %v4644_v56 = vadd.f32 %v4607_v7, %v4557_v9  ;;  %v5811_v51 = vpop.f32.mrb[22].mxu0 }
0x1290   :  { %v7500_v40 = vmul.f32 %v4646_v49, %v6365_v30  ;;  %v4560_v1 = vpop.f32.mrb[23].mxu0  ;;  %v4647_v50 = vadd.f32 %v5811_v51, %v4622_v48 }
0x1291   :  { %v7503_v19 = vmul.f32 %v4644_v56, %v6365_v30  ;;  %v4645_v58 = vadd.f32 %v4612_v6, %v4560_v1 }
0x1292   :  { %4664 = vadd.xlane.f32.xlu0 %v7500_v40  ;;  %v4678_v25 = vmul.f32 %v7500_v40, %v7500_v40  ;;  %v7510_v36 = vmul.f32 %v4647_v50, %v6365_v30 }
0x1293   :  { %4660 = vadd.xlane.f32.xlu1 %v7503_v19  ;;  %v7514_v24 = vmul.f32 %v4645_v58, %v6365_v30  ;;  %v4676_v31 = vmul.f32 %v7503_v19, %v7503_v19 }
0x1294   :  { %v4679_v61 = vmul.f32 %v7510_v36, %v7510_v36 }
0x1295   :  { %v5814_v11 = vpop.f32.mrb[24].mxu0  ;;  %v4677_v22 = vmul.f32 %v7514_v24, %v7514_v24 }
0x1296   :  { %v4573_v8 = vpop.f32.mrb[25].mxu0  ;;  %4688 = vadd.xlane.f32.xlu0 %v4678_v25  ;;  %v4650_v29 = vadd.f32 %v5814_v11, %v4637_v26 }
0x1297   :  { %4666 = vadd.xlane.f32.xlu1 %v7510_v36  ;;  %v5815_v23 = vpop.f32.mrb[26].mxu0  ;;  %v4648_v37 = vadd.f32 %v4627_v38, %v4573_v8 }
0x1298   :  { %v4576_v57 = vpop.f32.mrb[27].mxu0  ;;  %v4651_v44 = vadd.f32 %v5815_v23, %v4642_v27  ;;  %v7524_v35 = vmul.f32 %v4650_v29, %v6365_v30 }
0x1299   :  { %v4649_v59 = vadd.f32 %v4632_v18, %v4576_v57  ;;  %v7532_v46 = vmul.f32 %v4648_v37, %v6365_v30 }
0x129a   :  { %4662 = vadd.xlane.f32.xlu0 %v7514_v24  ;;  %v7527_v28 = vmul.f32 %v4651_v44, %v6365_v30  ;;  %v4682_v52 = vmul.f32 %v7524_v35, %v7524_v35 }
0x129b   :  { %4690 = vadd.xlane.f32.xlu1 %v4679_v61  ;;  %v7535_v33 = vmul.f32 %v4649_v59, %v6365_v30  ;;  %v4680_v16 = vmul.f32 %v7532_v46, %v7532_v46  ;;  %v6257_v30 = vmov 16  }
0x129c   :  { %v4683_v0 = vmul.f32 %v7527_v28, %v7527_v28  ;;  %6070 = vset.pattern.permute.xlu1 %v6257_v30  ;;  %6071 = vset.pattern.permute.xlu0 %v6257_v30 }
0x129d   :  { %v4681_v43 = vmul.f32 %v7535_v33, %v7535_v33 }
0x129e   :  { %4684 = vadd.xlane.f32.xlu0 %v4676_v31 }
0x129f   :  { %4686 = vadd.xlane.f32.xlu1 %v4677_v22 }
0x12a2   :  { %4672 = vadd.xlane.f32.xlu0 %v7524_v35 }
0x12a3   :  { %4674 = vadd.xlane.f32.xlu1 %v7527_v28 }
0x12a6   :  { %4668 = vadd.xlane.f32.xlu0 %v7532_v46 }
0x12a7   :  { %4670 = vadd.xlane.f32.xlu1 %v7535_v33 }
0x12aa   :  { %4692 = vadd.xlane.f32.xlu0 %v4680_v16 }
0x12ab   :  { %4694 = vadd.xlane.f32.xlu1 %v4681_v43 }
0x12ae   :  { %4696 = vadd.xlane.f32.xlu0 %v4682_v52 }
0x12af   :  { %4698 = vadd.xlane.f32.xlu1 %v4683_v0 }
0x131f   :  { %v4665_v42 = vpop.xlane.xlu0 %4664 }
0x1320   :  { %v7549_v47 = vmul.f32 0.03125, %v4665_v42  ;;  %v4661_v10 = vpop.xlane.xlu1 %4660 }
0x1321   :  { %v7555_v3 = vmul.f32 0.03125, %v4661_v10 }
0x1322   :  { %v4718_v54 = vmul.f32 %v7549_v47, %v7549_v47 }
0x1323   :  { %v4689_v45 = vpop.xlane.xlu0 %4688  ;;  %v4716_v49 = vmul.f32 %v7555_v3, %v7555_v3 }
0x1324   :  { %v4710_v55 = vmul.f32 0.03125, %v4689_v45  ;;  %v4667_v63 = vpop.xlane.xlu1 %4666 }
0x1325   :  { %v7553_v60 = vmul.f32 0.03125, %v4667_v63 }
0x1326   :  { %v4726_v15 = vsub.f32 %v4710_v55, %v4718_v54 }
0x1327   :  { %v4663_v39 = vpop.xlane.xlu0 %4662  ;;  %v4719_v4 = vmul.f32 %v7553_v60, %v7553_v60 }
0x1328   :  { %v4691_v2 = vpop.xlane.xlu1 %4690  ;;  %v7559_v17 = vmul.f32 0.03125, %v4663_v39  ;;  %v4734_v7 = vmax.f32 %v4726_v15, 0.0 }
0x1329   :  { %v4711_v6 = vmul.f32 0.03125, %v4691_v2 }
0x132a   :  { %v4717_v51 = vmul.f32 %v7559_v17, %v7559_v17  ;;  %v4742_v50 = vadd.f32 1e-05, %v4734_v7 }
0x132b   :  { %v4727_v53 = vsub.f32 %v4711_v6, %v4719_v4  ;;  %v4685_v41 = vpop.xlane.xlu0 %4684 }
0x132c   :  { %v4708_v9 = vmul.f32 0.03125, %v4685_v41  ;;  %v4687_v56 = vpop.xlane.xlu1 %4686  ;;  %6208 = vrsqrt.f32 %v4742_v50 }
0x132d   :  { %v4735_v48 = vmax.f32 %v4727_v53, 0.0  ;;  %v4709_v1 = vmul.f32 0.03125, %v4687_v56 }
0x132e   :  { %v4724_v58 = vsub.f32 %v4708_v9, %v4716_v49 }
0x132f   :  { %v4743_v25 = vadd.f32 1e-05, %v4735_v48  ;;  %v4725_v38 = vsub.f32 %v4709_v1, %v4717_v51  ;;  %v4673_v11 = vpop.xlane.xlu0 %4672 }
0x1330   :  { %v4732_v18 = vmax.f32 %v4724_v58, 0.0  ;;  %v4675_v8 = vpop.xlane.xlu1 %4674  ;;  %v4706_v22 = vmul.f32 0.03125, %v4673_v11 }
0x1331   :  { %v4733_v23 = vmax.f32 %v4725_v38, 0.0  ;;  %6210 = vrsqrt.f32 %v4743_v25  ;;  %v4707_v43 = vmul.f32 0.03125, %v4675_v8 }
0x1332   :  { %v4740_v57 = vadd.f32 1e-05, %v4732_v18  ;;  %v4722_v55 = vmul.f32 %v4706_v22, %v4706_v22 }
0x1333   :  { %v4741_v61 = vadd.f32 1e-05, %v4733_v23  ;;  %v4669_v26 = vpop.xlane.xlu0 %4668  ;;  %v4723_v4 = vmul.f32 %v4707_v43, %v4707_v43 }
0x1334   :  { %6212 = vrsqrt.f32 %v4740_v57  ;;  %v4704_v27 = vmul.f32 0.03125, %v4669_v26  ;;  %v4671_v29 = vpop.xlane.xlu1 %4670 }
0x1335   :  { %6214 = vrsqrt.f32 %v4741_v61  ;;  %v4705_v31 = vmul.f32 0.03125, %v4671_v29 }
0x1336   :  { %v4720_v37 = vmul.f32 %v4704_v27, %v4704_v27  ;;  %v6209_v54 = vpop.eup %6208 }
0x1337   :  { %v4693_v44 = vpop.xlane.xlu0 %4692  ;;  %v4721_v52 = vmul.f32 %v4705_v31, %v4705_v31  ;;  %v4758_v8 = vmul.f32 %v6209_v54, %v7328_v5 }
0x1338   :  { %v4712_v59 = vmul.f32 0.03125, %v4693_v44  ;;  %v4695_v16 = vpop.xlane.xlu1 %4694 }
0x1339   :  { %v4713_v0 = vmul.f32 0.03125, %v4695_v16  ;;  %v4766_v61 = vmul.f32 %v4758_v8, %v7549_v47 }
0x133a   :  { %v4728_v42 = vsub.f32 %v4712_v59, %v4720_v37 }
0x133b   :  { %v4729_v10 = vsub.f32 %v4713_v0, %v4721_v52  ;;  %v4697_v45 = vpop.xlane.xlu0 %4696  ;;  %v6211_v2 = vpop.eup %6210 }
0x133c   :  { %v4736_v63 = vmax.f32 %v4728_v42, 0.0  ;;  %v4714_v15 = vmul.f32 0.03125, %v4697_v45  ;;  %v4699_v39 = vpop.xlane.xlu1 %4698  ;;  %v4759_v38 = vmul.f32 %v6211_v2, %v7333_v20 }
0x133d   :  { %v4737_v6 = vmax.f32 %v4729_v10, 0.0  ;;  %v4715_v7 = vmul.f32 0.03125, %v4699_v39 }
0x133e   :  { %v6213_v53 = vpop.eup %6212  ;;  %v4744_v41 = vadd.f32 1e-05, %v4736_v63  ;;  %v4730_v49 = vsub.f32 %v4714_v15, %v4722_v55  ;;  %v4767_v57 = vmul.f32 %v4759_v38, %v7553_v60 }
0x133f   :  { %v6215_v9 = vpop.eup %6214  ;;  %v4745_v56 = vadd.f32 1e-05, %v4737_v6  ;;  %v4731_v51 = vsub.f32 %v4715_v7, %v4723_v4  ;;  %v4756_v48 = vmul.f32 %v6213_v53, %v7320_v34 }
0x1340   :  { %6216 = vrsqrt.f32 %v4744_v41  ;;  %v4738_v1 = vmax.f32 %v4730_v49, 0.0  ;;  %v4757_v50 = vmul.f32 %v6215_v9, %v7315_v62 }
0x1341   :  { %6218 = vrsqrt.f32 %v4745_v56  ;;  %v4739_v58 = vmax.f32 %v4731_v51, 0.0  ;;  %v4764_v25 = vmul.f32 %v4756_v48, %v7555_v3 }
0x1342   :  { %v4746_v11 = vadd.f32 1e-05, %v4738_v1  ;;  %v4765_v18 = vmul.f32 %v4757_v50, %v7559_v17 }
0x1343   :  { %v4747_v23 = vadd.f32 1e-05, %v4739_v58  ;;  %4780 = vrot.lane.b32.xlu0 %v4764_v25, %s6240_s17 }
0x1344   :  { %6220 = vrsqrt.f32 %v4746_v11  ;;  %4782 = vrot.lane.b32.xlu1 %v4765_v18, %s6240_s17 }
0x1345   :  { %6222 = vrsqrt.f32 %v4747_v23 }
0x1347   :  { %4786 = vrot.lane.b32.xlu0 %v4767_v57, %s6240_s17 }
0x1348   :  { %4784 = vrot.lane.b32.xlu1 %v4766_v61, %s6240_s17 }
0x134a   :  { %v6217_v3 = vpop.eup %6216 }
0x134b   :  { %v6219_v26 = vpop.eup %6218  ;;  %v4760_v17 = vmul.f32 %v6217_v3, %v7340_v12 }
0x134c   :  { %v4761_v29 = vmul.f32 %v6219_v26, %v7345_v13 }
0x134d   :  { %v4768_v44 = vmul.f32 %v4760_v17, %v4704_v27  ;;  %v6258_v27 = vmov 17  }
0x134e   :  { %v6221_v37 = vpop.eup %6220  ;;  %v4769_v59 = vmul.f32 %v4761_v29, %v4705_v31 }
0x134f   :  { %v6223_v16 = vpop.eup %6222  ;;  %4788 = vrot.lane.b32.xlu1 %v4768_v44, %s6240_s17  ;;  %v4762_v60 = vmul.f32 %v6221_v37, %v7352_v14 }
0x1350   :  { %4790 = vrot.lane.b32.xlu0 %v4769_v59, %s6240_s17  ;;  %v4763_v47 = vmul.f32 %v6223_v16, %v7357_v21 }
0x1351   :  { %v4770_v52 = vmul.f32 %v4762_v60, %v4706_v22 }
0x1352   :  { %v4771_v0 = vmul.f32 %v4763_v47, %v4707_v43 }
0x1353   :  { %4792 = vrot.lane.b32.xlu1 %v4770_v52, %s6240_s17 }
0x1354   :  { %4794 = vrot.lane.b32.xlu0 %v4771_v0, %s6240_s17  ;;  %s6259_s17 = smov 103  }
0x1357   :  { %4814 = vperm.xlu1 %6070, %v4756_v48  }
0x1358   :  { %4819 = vperm.xlu0 %6071, %v4757_v50  }
0x135b   :  { %4829 = vperm.xlu1 %6070, %v4759_v38  }
0x135c   :  { %4824 = vperm.xlu0 %6071, %v4758_v8  }
0x135f   :  { %4834 = vperm.xlu1 %6070, %v4760_v17  }
0x1360   :  { %4839 = vperm.xlu0 %6071, %v4761_v29  }
0x1363   :  { %4849 = vperm.xlu1 %6070, %v4763_v47  }
0x1364   :  { %6072 = vset.pattern.permute.xlu0 %v6258_v27 }
0x1367   :  { %6074 = vset.pattern.permute.xlu1 %v6258_v27 }
0x13b5   :  { %v4781_v31 = vpop.permute.xlu0 %4780 }
0x13b6   :  { %v4804_v42 = vsub.f32 %v7320_v34, %v4781_v31  ;;  %v4783_v10 = vpop.permute.xlu1 %4782 }
0x13b7   :  { %v4805_v55 = vsub.f32 %v7315_v62, %v4783_v10 }
0x13b8   :  { %4862 = vperm.xlu1 %6074, %v4804_v42  }
0x13b9   :  { %v4787_v22 = vpop.permute.xlu0 %4786 }
0x13ba   :  { %v4807_v43 = vsub.f32 %v7333_v20, %v4787_v22  ;;  %v4785_v45 = vpop.permute.xlu1 %4784 }
0x13bb   :  { %v4806_v54 = vsub.f32 %v7328_v5, %v4785_v45 }
0x13bc   :  { %4877 = vperm.xlu1 %6074, %v4807_v43  }
0x13bd   :  { %4872 = vperm.xlu0 %6072, %v4806_v54  }
0x13c0   :  { %4867 = vperm.xlu1 %6074, %v4805_v55  }
0x13c1   :  { %6073 = vset.pattern.permute.xlu0 %v6257_v30  ;;  %v4789_v63 = vpop.permute.xlu1 %4788 }
0x13c2   :  { %v4808_v15 = vsub.f32 %v7340_v12, %v4789_v63  ;;  %v4791_v39 = vpop.permute.xlu0 %4790  ;;  %4844 = vperm.xlu0 %6073, %v4762_v60  }
0x13c3   :  { %v4809_v2 = vsub.f32 %v7345_v13, %v4791_v39 }
0x13c4   :  { %4882 = vperm.xlu1 %6074, %v4808_v15  }
0x13c5   :  { %v4793_v34 = vpop.permute.xlu1 %4792 }
0x13c6   :  { %v4810_v20 = vsub.f32 %v7352_v14, %v4793_v34  ;;  %6075 = vset.pattern.permute.xlu0 %v6258_v27  ;;  %v4795_v5 = vpop.permute.xlu0 %4794 }
0x13c7   :  { %v4811_v62 = vsub.f32 %v7357_v21, %v4795_v5 }
0x13c8   :  { %4887 = vperm.xlu1 %6074, %v4809_v2   ;;  %4892 = vperm.xlu0 %6075, %v4810_v20  }
0x13cc   :  { %4897 = vperm.xlu1 %6074, %v4811_v62  }
0x13d6   :  { %v4815_v4 = vpop.permute.xlu1 %4814 }
0x13d7   :  { %v4820_v6 = vpop.permute.xlu0 %4819  ;;  %v4852_v25 = vmul.f32 %v4815_v4, %v7503_v19 }
0x13d8   :  { %v4853_v58 = vmul.f32 %v4820_v6, %v7514_v24 }
0x13da   :  { %v4830_v30 = vpop.permute.xlu1 %4829 }
0x13db   :  { %v4825_v12 = vpop.permute.xlu0 %4824  ;;  %v4855_v9 = vmul.f32 %v4830_v30, %v7510_v36 }
0x13dc   :  { %v4854_v13 = vmul.f32 %v4825_v12, %v7500_v40 }
0x13de   :  { %v4835_v7 = vpop.permute.xlu1 %4834 }
0x13df   :  { %v4840_v49 = vpop.permute.xlu0 %4839  ;;  %v4856_v29 = vmul.f32 %v4835_v7, %v7532_v46 }
0x13e0   :  { %v4857_v26 = vmul.f32 %v4840_v49, %v7535_v33 }
0x13e2   :  { %v4850_v53 = vpop.permute.xlu1 %4849 }
0x13e3   :  { %v4859_v19 = vmul.f32 %v4850_v53, %v7527_v28 }
0x1437   :  { %v4863_v41 = vpop.permute.xlu1 %4862 }
0x1438   :  { %v4900_v11 = vadd.f32 %v4863_v41, %v4852_v25 }
0x143a   :  { %v4908_v8 = vmax.f32 %v4900_v11, 0.0 }
0x143b   :  { %v4878_v14 = vpop.permute.xlu1 %4877 }
0x143c   :  { %v4903_v56 = vadd.f32 %v4878_v14, %v4855_v9  ;;  %v4873_v51 = vpop.permute.xlu0 %4872  ;;  %v6260_v14 = vmov 18  }
0x143d   :  { %v4902_v48 = vadd.f32 %v4873_v51, %v4854_v13  ;;  %v5038_v13 = vld [vmem:[%s7658_s3] sm:$0x1f]  ;;  %6076 = vset.pattern.permute.xlu0 %v6260_v14 }
0x143e   :  { %v4911_v1 = vmax.f32 %v4903_v56, 0.0 }
0x143f   :  { %v4910_v50 = vmax.f32 %v4902_v48, 0.0  ;;  %v4868_v21 = vpop.permute.xlu1 %4867 }
0x1440   :  { %4930 = vrot.lane.b32.xlu0 %v4911_v1, %s6233_s12  ;;  %v4901_v38 = vadd.f32 %v4868_v21, %v4853_v58 }
0x1441   :  { %4928 = vrot.lane.b32.xlu1 %v4910_v50, %s6233_s12  ;;  %v4845_v18 = vpop.permute.xlu0 %4844 }
0x1442   :  { %v4909_v40 = vmax.f32 %v4901_v38, 0.0  ;;  %v4858_v24 = vmul.f32 %v4845_v18, %v7524_v35 }
0x1443   :  { %v4883_v36 = vpop.permute.xlu1 %4882 }
0x1444   :  { %4978 = vrot.lane.b32.xlu0 %v4911_v1, %s6259_s17  ;;  %v4904_v59 = vadd.f32 %v4883_v36, %v4856_v29 }
0x1445   :  { %4976 = vrot.lane.b32.xlu1 %v4910_v50, %s6259_s17 }
0x1446   :  { %v4912_v28 = vmax.f32 %v4904_v59, 0.0 }
0x1447   :  { %v4888_v23 = vpop.permute.xlu1 %4887  ;;  %v4893_v57 = vpop.permute.xlu0 %4892 }
0x1448   :  { %4926 = vrot.lane.b32.xlu0 %v4909_v40, %s6233_s12  ;;  %v4906_v61 = vadd.f32 %v4893_v57, %v4858_v24  ;;  %v4905_v44 = vadd.f32 %v4888_v23, %v4857_v26 }
0x1449   :  { %4924 = vrot.lane.b32.xlu1 %v4908_v8, %s6233_s12 }
0x144a   :  { %v4914_v16 = vmax.f32 %v4906_v61, 0.0  ;;  %v4913_v35 = vmax.f32 %v4905_v44, 0.0 }
0x144b   :  { %v4898_v3 = vpop.permute.xlu1 %4897 }
0x144c   :  { %v4907_v17 = vadd.f32 %v4898_v3, %v4859_v19  ;;  %4974 = vrot.lane.b32.xlu0 %v4909_v40, %s6259_s17 }
0x144d   :  { %4972 = vrot.lane.b32.xlu1 %v4908_v8, %s6259_s17 }
0x144e   :  { %v4915_v37 = vmax.f32 %v4907_v17, 0.0 }
0x1450   :  { %4938 = vrot.lane.b32.xlu0 %v4915_v37, %s6233_s12 }
0x1451   :  { %4936 = vrot.lane.b32.xlu1 %v4914_v16, %s6233_s12 }
0x1454   :  { %4934 = vrot.lane.b32.xlu0 %v4913_v35, %s6233_s12 }
0x1455   :  { %4932 = vrot.lane.b32.xlu1 %v4912_v28, %s6233_s12 }
0x1458   :  { %4982 = vrot.lane.b32.xlu0 %v4913_v35, %s6259_s17 }
0x1459   :  { %4980 = vrot.lane.b32.xlu1 %v4912_v28, %s6259_s17 }
0x145c   :  { %4986 = vrot.lane.b32.xlu0 %v4915_v37, %s6259_s17 }
0x145d   :  { %4984 = vrot.lane.b32.xlu1 %v4914_v16, %s6259_s17 }
0x14b2   :  { %v4931_v46 = vpop.permute.xlu0 %4930 }
0x14b3   :  { %v4929_v33 = vpop.permute.xlu1 %4928  ;;  %v4957_v43 = vsel %vm481_vm11, %v4931_v46, 0.0 }
0x14b4   :  { %v4954_v60 = vsel %vm481_vm11, %v4929_v33, 0.0 }
0x14b5   :  { %4955 = vadd.xlane.f32.xlu0 %v4954_v60 }
0x14b6   :  { %v4979_v47 = vpop.permute.xlu0 %4978 }
0x14b7   :  { %v4977_v52 = vpop.permute.xlu1 %4976  ;;  %v5005_v63 = vsel %vm481_vm11, %v4979_v47, 0.0 }
0x14b8   :  { %v5002_v0 = vsel %vm481_vm11, %v4977_v52, 0.0 }
0x14b9   :  { %5003 = vadd.xlane.f32.xlu0 %v5002_v0 }
0x14ba   :  { %v4927_v27 = vpop.permute.xlu0 %4926 }
0x14bb   :  { %v4925_v31 = vpop.permute.xlu1 %4924  ;;  %v4951_v15 = vsel %vm481_vm11, %v4927_v27, 0.0 }
0x14bc   :  { %v4948_v42 = vsel %vm481_vm11, %v4925_v31, 0.0  ;;  %v5037_v31 = vld [vmem:[%s7655_s2 + $0x310] sm:$0x7] }
0x14bd   :  { %4949 = vadd.xlane.f32.xlu1 %v4948_v42 }
0x14be   :  { %v4975_v10 = vpop.permute.xlu0 %4974 }
0x14bf   :  { %v4973_v22 = vpop.permute.xlu1 %4972  ;;  %v4999_v34 = vsel %vm481_vm11, %v4975_v10, 0.0 }
0x14c0   :  { %v4996_v45 = vsel %vm481_vm11, %v4973_v22, 0.0 }
0x14c1   :  { %4958 = vadd.xlane.f32.xlu1 %v4957_v43  ;;  %4997 = vadd.xlane.f32.xlu0 %v4996_v45 }
0x14c2   :  { %v4939_v54 = vpop.permute.xlu0 %4938 }
0x14c3   :  { %v4937_v55 = vpop.permute.xlu1 %4936  ;;  %v4969_v62 = vsel %vm481_vm11, %v4939_v54, 0.0 }
0x14c4   :  { %v4966_v2 = vsel %vm481_vm11, %v4937_v55, 0.0 }
0x14c5   :  { %5006 = vadd.xlane.f32.xlu1 %v5005_v63  ;;  %4952 = vadd.xlane.f32.xlu0 %v4951_v15 }
0x14c6   :  { %v4935_v20 = vpop.permute.xlu0 %4934 }
0x14c7   :  { %v4933_v39 = vpop.permute.xlu1 %4932  ;;  %v4963_v6 = vsel %vm481_vm11, %v4935_v20, 0.0 }
0x14c8   :  { %v4960_v4 = vsel %vm481_vm11, %v4933_v39, 0.0 }
0x14c9   :  { %5000 = vadd.xlane.f32.xlu1 %v4999_v34  ;;  %4967 = vadd.xlane.f32.xlu0 %v4966_v2 }
0x14ca   :  { %v4983_v30 = vpop.permute.xlu0 %4982 }
0x14cb   :  { %v4981_v5 = vpop.permute.xlu1 %4980  ;;  %v5011_v53 = vsel %vm481_vm11, %v4983_v30, 0.0 }
0x14cc   :  { %v5008_v7 = vsel %vm481_vm11, %v4981_v5, 0.0 }
0x14cd   :  { %4970 = vadd.xlane.f32.xlu1 %v4969_v62  ;;  %4961 = vadd.xlane.f32.xlu0 %v4960_v4 }
0x14ce   :  { %v4987_v49 = vpop.permute.xlu0 %4986 }
0x14cf   :  { %v4985_v12 = vpop.permute.xlu1 %4984  ;;  %v5017_v9 = vsel %vm481_vm11, %v4987_v49, 0.0 }
0x14d0   :  { %v5014_v41 = vsel %vm481_vm11, %v4985_v12, 0.0 }
0x14d1   :  { %4964 = vadd.xlane.f32.xlu1 %v4963_v6  ;;  %5009 = vadd.xlane.f32.xlu0 %v5008_v7 }
0x14d5   :  { %5012 = vadd.xlane.f32.xlu1 %v5011_v53  ;;  %5015 = vadd.xlane.f32.xlu0 %v5014_v41 }
0x14d9   :  { %5018 = vadd.xlane.f32.xlu1 %v5017_v9 }
0x14eb   :  { %5045 = vperm.xlu0 %6076, %v5038_v13  }
0x1542   :  { %v4956_v56 = vpop.xlane.xlu0 %4955 }
0x1546   :  { %v5004_v51 = vpop.xlane.xlu0 %5003 }
0x1547   :  { %v5023_v23 = vsel %vm592_vm12, %v4956_v56, %v5004_v51 }
0x1548   :  { %v5031_v3 = vmul.f32 0.0625, %v5023_v23 }
0x154a   :  { %v4950_v48 = vpop.xlane.xlu1 %4949 }
0x154e   :  { %v4998_v1 = vpop.xlane.xlu0 %4997  ;;  %v4959_v50 = vpop.xlane.xlu1 %4958 }
0x154f   :  { %v5021_v25 = vsel %vm592_vm12, %v4950_v48, %v4998_v1 }
0x1550   :  { %v5029_v40 = vmul.f32 0.0625, %v5021_v25 }
0x1552   :  { %v4953_v21 = vpop.xlane.xlu0 %4952  ;;  %v5007_v58 = vpop.xlane.xlu1 %5006 }
0x1553   :  { %v5024_v36 = vsel %vm592_vm12, %v4959_v50, %v5007_v58 }
0x1554   :  { %v5032_v57 = vmul.f32 0.0625, %v5024_v36 }
0x1556   :  { %v4968_v38 = vpop.xlane.xlu0 %4967  ;;  %v5001_v11 = vpop.xlane.xlu1 %5000  ;;  %v5040_v26 = vpack.c.bf16 %v5032_v57, %v5031_v3 }
0x1557   :  { %v5022_v18 = vsel %vm592_vm12, %v4953_v21, %v5001_v11 }
0x1558   :  { %v5030_v8 = vmul.f32 0.0625, %v5022_v18 }
0x155a   :  { %v5039_v24 = vpack.c.bf16 %v5030_v8, %v5029_v40  ;;  %v4962_v19 = vpop.xlane.xlu0 %4961  ;;  %v4971_v61 = vpop.xlane.xlu1 %4970 }
0x155c   :  { %5817 = vmatpush3.bf16.msra.mxu1 %v5039_v24 }
0x155d   :  { %5818 = vmatprep.subr.bf16.mxu1 %v6242_v32 }
0x155e   :  { %v5010_v17 = vpop.xlane.xlu0 %5009  ;;  %v4965_v29 = vpop.xlane.xlu1 %4964 }
0x155f   :  { %v5025_v44 = vsel %vm592_vm12, %v4962_v19, %v5010_v17 }
0x1560   :  { %5819 = vmatpush3.bf16.msra.mxu1 %v5040_v26  ;;  %v5033_v35 = vmul.f32 0.0625, %v5025_v44 }
0x1561   :  { %5820 = vmatprep.subr.bf16.mxu1 %v6242_v32 }
0x1562   :  { %v5016_v37 = vpop.xlane.xlu0 %5015  ;;  %v5013_v59 = vpop.xlane.xlu1 %5012 }
0x1563   :  { %v5026_v16 = vsel %vm592_vm12, %v4965_v29, %v5013_v59  ;;  %v5027_v46 = vsel %vm592_vm12, %v4968_v38, %v5016_v37 }
0x1564   :  { %v5034_v28 = vmul.f32 0.0625, %v5026_v16  ;;  %v5035_v52 = vmul.f32 0.0625, %v5027_v46 }
0x1566   :  { %v5041_v33 = vpack.c.bf16 %v5034_v28, %v5033_v35  ;;  %v5019_v60 = vpop.xlane.xlu1 %5018 }
0x1567   :  { %v5028_v47 = vsel %vm592_vm12, %v4971_v61, %v5019_v60 }
0x1568   :  { %v5036_v0 = vmul.f32 0.0625, %v5028_v47  ;;  %5821 = vmatpush3.bf16.msra.mxu1 %v5041_v33 }
0x1569   :  { %5822 = vmatprep.subr.bf16.mxu1 %v6242_v32 }
0x156a   :  { %v5042_v27 = vpack.c.bf16 %v5036_v0, %v5035_v52  ;;  %v5046_v42 = vpop.permute.xlu0 %5045 }
0x156c   :  { %5823 = vmatpush3.bf16.msra.mxu1 %v5042_v27 }
0x156f   :  { %5825 = vmatmul.mubr.msk.bf16.vlgmr.msra.gmra.mrb[24].mxu1 %vm3720_vm15, %v5037_v31 }
0x1642   :  { %v5085_v10 = vpop.f32.mrb[24].mxu1 }
0x1643   :  { %v5826_v22 = vpop.f32.mrb[25].mxu1  ;;  %v5086_v43 = vadd.f32 %v5085_v10, %v5046_v42 }
0x1644   :  { %v5088_v45 = vpop.f32.mrb[26].mxu1 }
0x1645   :  { %5092 = vst.msk [vmem:[%s7659_s4] sm:$0x1f] %vm5091_vm0, %v5086_v43  ;;  %v5827_v54 = vpop.f32.mrb[27].mxu1 }

</bundles_post_ra>
